<compile_context>
chip_gen: v7x
topology: tpu7x:2x2x1
jax: 0.10.0
libtpu: 0.0.40
codegen_flags: <defaults>
</compile_context>

<pallas_src>
import functools
import math

import jax
import jax.numpy as jnp
from jax import lax
from jax.experimental import pallas as pl


MHA_KEYS = ("wq", "wk", "wv", "wo", "bq", "bk", "bv", "bo", "gamma", "beta")
FUSE_KEYS = ("wfa", "wfc", "bf", "w1", "b1", "w2", "b2", "gamma", "beta")


# ------------------------------------------------------------------ utilities

def _layer_norm(y, gamma, beta, eps=1e-5):
    mu = jnp.mean(y, axis=-1, keepdims=True)
    var = jnp.mean((y - mu) ** 2, axis=-1, keepdims=True)
    return (y - mu) * lax.rsqrt(var + eps) * gamma + beta


# ----------------------------------------------- in-kernel building blocks

def _combined_mask(mcol, nq, nk, batch):
    """(nq, nk) additive mask over flattened (l-major, b-minor) rows/cols.

    0 where the query row and key column belong to the same batch element and
    the key is not padded; large-negative otherwise.  Cross-batch entries
    underflow to exactly 0 after softmax, so the batched score matmul is exact.
    """
    rb = lax.broadcasted_iota(jnp.int32, (nq, nk), 0) % batch
    cb = lax.broadcasted_iota(jnp.int32, (nq, nk), 1) % batch
    return jnp.where(rb == cb, jnp.broadcast_to(mcol, (nq, nk)), -1e30)


def _mha(x_res, p_q, q_off, p_kv, k_off, v_off, wo, bo, gamma, beta,
         mask, heads, dh, scale):
    """Multi-head attention + residual + LayerNorm, with no head-axis transposes.

    Heads come from static lane slices of the fused projection slabs; batches
    are separated by the additive mask.  Per-head context is accumulated
    straight into the output projection, so no lane concatenation either.
    """
    nq = p_q.shape[0]
    e = heads * dh
    acc = jnp.zeros((nq, e), jnp.float32)
    for h in range(heads):                                   # unrolled, heads == 4
        q_h = p_q[:, q_off + h * dh: q_off + (h + 1) * dh]
        k_h = p_kv[:, k_off + h * dh: k_off + (h + 1) * dh]
        v_h = p_kv[:, v_off + h * dh: v_off + (h + 1) * dh]
        s = lax.dot_general(q_h, k_h, (((1,), (1,)), ((), ())),
                            preferred_element_type=jnp.float32) * scale
        s = s + mask
        s = s - jnp.max(s, axis=-1, keepdims=True)
        p = jnp.exp(s)
        p = p / jnp.sum(p, axis=-1, keepdims=True)           # exact divide (parity)
        ctx = jnp.dot(p, v_h, preferred_element_type=jnp.float32)         # (nq, dh)
        acc = acc + jnp.dot(ctx, wo[h * dh:(h + 1) * dh, :],
                            preferred_element_type=jnp.float32)
    return _layer_norm(x_res + acc + bo, gamma, beta)


def _fuse_ffn(a, c, wfa, wfc, bf, w1, b1, w2, b2, gamma, beta):
    """Gate fusion + FFN + residual + output LayerNorm on flattened (N, E) rows."""
    gate = jax.nn.sigmoid(
        jnp.dot(a, wfa, preferred_element_type=jnp.float32)
        + jnp.dot(c, wfc, preferred_element_type=jnp.float32) + bf)
    fused = gate * a + (1.0 - gate) * c
    h = jnp.maximum(jnp.dot(fused, w1, preferred_element_type=jnp.float32) + b1, 0.0)
    ffn = jnp.dot(h, w2, preferred_element_type=jnp.float32) + b2
    return _layer_norm(fused + ffn, gamma, beta)


# ------------------------------------------------------------ fused kernel

def _co_layer_kernel(x1_ref, x2_ref, mcol1_ref, mcol2_ref,
                     wproj_ref, bproj_ref, wee_ref, vecs_ref,
                     w1_ref, b1_ref, w2_ref,
                     out1_ref, out2_ref, *, num_heads, batch):
    e = x1_ref.shape[-1]
    heads = num_heads
    dh = e // heads
    scale = 1.0 / math.sqrt(dh)
    n1 = x1_ref.shape[0]
    n2 = x2_ref.shape[0]

    x1 = x1_ref[...]                    # (n1, E) rows in l-major / b-minor order
    x2 = x2_ref[...]                    # (n2, E)
    mcol1 = mcol1_ref[...]              # (1, n1) additive key-padding mask
    mcol2 = mcol2_ref[...]              # (1, n2)
    bproj = bproj_ref[...]              # (2, 6E)
    vecs = vecs_ref[...]                # (20, E): bo*4 | ln_g*4 | ln_b*4 | bf*2 | b2*2 | og*2 | ob*2
    b1p = b1_ref[...]                   # (2, FF)

    def vrow(i):
        return vecs[i:i + 1, :]

    # Fused q|k|v|co_q|co_k|co_v projections: one (n, E) @ (E, 6E) dot per stream
    # -> >=128 MXU output lanes instead of six 32-lane dots.
    p1 = jnp.dot(x1, wproj_ref[0], preferred_element_type=jnp.float32) + bproj[0:1, :]
    p2 = jnp.dot(x2, wproj_ref[1], preferred_element_type=jnp.float32) + bproj[1:2, :]

    m11 = _combined_mask(mcol1, n1, n1, batch)   # attn1:    q=x1, kv=x1
    m22 = _combined_mask(mcol2, n2, n2, batch)   # attn2:    q=x2, kv=x2
    m12 = _combined_mask(mcol2, n1, n2, batch)   # co_attn1: q=x1, kv=x2
    m21 = _combined_mask(mcol1, n2, n1, batch)   # co_attn2: q=x2, kv=x1

    a1 = _mha(x1, p1, 0, p1, e, 2 * e, wee_ref[0], vrow(0), vrow(4), vrow(8),
              m11, heads, dh, scale)
    a2 = _mha(x2, p2, 0, p2, e, 2 * e, wee_ref[1], vrow(1), vrow(5), vrow(9),
              m22, heads, dh, scale)
    c1 = _mha(x1, p1, 3 * e, p2, 4 * e, 5 * e, wee_ref[2], vrow(2), vrow(6), vrow(10),
              m12, heads, dh, scale)
    c2 = _mha(x2, p2, 3 * e, p1, 4 * e, 5 * e, wee_ref[3], vrow(3), vrow(7), vrow(11),
              m21, heads, dh, scale)

    o1 = _fuse_ffn(a1, c1, wee_ref[4], wee_ref[5], vrow(12),
                   w1_ref[0], b1p[0:1, :], w2_ref[0], vrow(14), vrow(16), vrow(18))
    o2 = _fuse_ffn(a2, c2, wee_ref[6], wee_ref[7], vrow(13),
                   w1_ref[1], b1p[1:2, :], w2_ref[1], vrow(15), vrow(17), vrow(19))

    out1_ref[...] = o1.astype(out1_ref.dtype)
    out2_ref[...] = o2.astype(out2_ref.dtype)


# ---------------------------------------------------------- parameter packing

def pack_params(params):
    """One-time packing of the nested param dict into a few kernel slabs."""
    a1, a2 = params["attn1"], params["attn2"]
    c1, c2 = params["co_attn1"], params["co_attn2"]
    f1, f2 = params["fuse1"], params["fuse2"]

    w_proj = jnp.stack([
        jnp.concatenate([a1["wq"], a1["wk"], a1["wv"], c1["wq"], c2["wk"], c2["wv"]], axis=1),
        jnp.concatenate([a2["wq"], a2["wk"], a2["wv"], c2["wq"], c1["wk"], c1["wv"]], axis=1),
    ])                                                                    # (2, E, 6E)
    b_proj = jnp.concatenate([
        jnp.concatenate([a1["bq"], a1["bk"], a1["bv"], c1["bq"], c2["bk"], c2["bv"]], axis=1),
        jnp.concatenate([a2["bq"], a2["bk"], a2["bv"], c2["bq"], c1["bk"], c1["bv"]], axis=1),
    ], axis=0)                                                            # (2, 6E)
    w_ee = jnp.stack([a1["wo"], a2["wo"], c1["wo"], c2["wo"],
                      f1["wfa"], f1["wfc"], f2["wfa"], f2["wfc"]])        # (8, E, E)
    vecs = jnp.concatenate([
        a1["bo"], a2["bo"], c1["bo"], c2["bo"],
        a1["gamma"], a2["gamma"], c1["gamma"], c2["gamma"],
        a1["beta"], a2["beta"], c1["beta"], c2["beta"],
        f1["bf"], f2["bf"], f1["b2"], f2["b2"],
        f1["gamma"], f2["gamma"], f1["beta"], f2["beta"],
    ], axis=0)                                                            # (20, E)
    w1 = jnp.stack([f1["w1"], f2["w1"]])                                  # (2, E, FF)
    b1 = jnp.concatenate([f1["b1"], f2["b1"]], axis=0)                    # (2, FF)
    w2 = jnp.stack([f1["w2"], f2["w2"]])                                  # (2, FF, E)
    return dict(w_proj=w_proj, b_proj=b_proj, w_ee=w_ee, vecs=vecs,
                w1=w1, b1=b1, w2=w2)


# -------------------------------------------------------------- wrapper

def _cost_estimate(n1, n2, E, FF, H, inputs):
    def attn(nq, nk):
        return 4 * nq * nk * E + 2 * nq * E * E        # scores+ctx (all heads) + out-proj
    flops = 2 * (n1 + n2) * E * 6 * E                   # fused q/k/v/co projections
    flops += attn(n1, n1) + attn(n2, n2) + attn(n1, n2) + attn(n2, n1)
    flops += (n1 + n2) * (4 * E * E + 4 * E * FF)       # gate (2x ExE) + FFN
    transc = H * (n1 * n1 + n2 * n2 + 2 * n1 * n2) + (n1 + n2) * (E + 6)
    bytes_acc = sum(int(a.size) * a.dtype.itemsize for a in inputs) + (n1 + n2) * E * 4
    return pl.CostEstimate(flops=int(flops), transcendentals=int(transc),
                           bytes_accessed=int(bytes_acc))


def co_transformer_layer2(seqs1, seqs2, padding_mask1, padding_mask2, packed,
                          *, num_heads):
    """
    seqs1: (L1, B, E), seqs2: (L2, B, E)   (PyTorch sequence-major layout)
    padding_mask1: (B, L1) bool, padding_mask2: (B, L2) bool (True = pad)
    packed: output of pack_params()
    """
    L1, B, E = seqs1.shape
    L2 = seqs2.shape[0]
    FF = packed["w1"].shape[-1]
    n1, n2 = L1 * B, L2 * B

    # (L, B, E) -> (L*B, E): contiguous reshape (free); keeps the kernel I/O 2-D.
    x1 = seqs1.reshape(n1, E)
    x2 = seqs2.reshape(n2, E)
    # Additive key-padding mask indexed by flattened key row c = lk*B + b.
    mcol1 = jnp.where(padding_mask1, -1e9, 0.0).astype(jnp.float32).T.reshape(1, n1)
    mcol2 = jnp.where(padding_mask2, -1e9, 0.0).astype(jnp.float32).T.reshape(1, n2)

    inputs = [x1, x2, mcol1, mcol2, packed["w_proj"], packed["b_proj"],
              packed["w_ee"], packed["vecs"], packed["w1"], packed["b1"], packed["w2"]]

    kernel = functools.partial(_co_layer_kernel, num_heads=num_heads, batch=B)
    o1, o2 = pl.pallas_call(
        kernel,
        out_shape=(jax.ShapeDtypeStruct((n1, E), jnp.float32),
                   jax.ShapeDtypeStruct((n2, E), jnp.float32)),
        cost_estimate=_cost_estimate(n1, n2, E, FF, num_heads, inputs),
    )(*inputs)
    return o1.reshape(L1, B, E), o2.reshape(L2, B, E)


# ---------------------------------------------------------------- parameters

def init_params(key, E, FF):
    keys = iter(jax.random.split(key, 64))

    def w(shape, scale):
        return jax.random.normal(next(keys), shape, jnp.float32) * scale

    def mha_params():
        s = 1.0 / math.sqrt(E)
        return {
            "wq": w((E, E), s), "wk": w((E, E), s),
            "wv": w((E, E), s), "wo": w((E, E), s),
            "bq": w((1, E), 0.01), "bk": w((1, E), 0.01),
            "bv": w((1, E), 0.01), "bo": w((1, E), 0.01),
            "gamma": jnp.ones((1, E), jnp.float32),
            "beta": jnp.zeros((1, E), jnp.float32),
        }

    def fuse_params():
        return {
            "wfa": w((E, E), 1.0 / math.sqrt(2 * E)),
            "wfc": w((E, E), 1.0 / math.sqrt(2 * E)),
            "bf": w((1, E), 0.01),
            "w1": w((E, FF), 1.0 / math.sqrt(E)),
            "b1": w((1, FF), 0.01),
            "w2": w((FF, E), 1.0 / math.sqrt(FF)),
            "b2": w((1, E), 0.01),
            "gamma": jnp.ones((1, E), jnp.float32),
            "beta": jnp.zeros((1, E), jnp.float32),
        }

    return {
        "attn1": mha_params(), "attn2": mha_params(),
        "co_attn1": mha_params(), "co_attn2": mha_params(),
        "fuse1": fuse_params(), "fuse2": fuse_params(),
    }


# ---------------------------------------------------- pure-JAX reference

def _reference(seqs1, seqs2, pm1, pm2, params, num_heads):
    def mha(xq, xkv, pm, p):
        lq, b, e = xq.shape
        lk = xkv.shape[0]
        dh = e // num_heads
        q = (xq @ p["wq"] + p["bq"]).reshape(lq, b, num_heads, dh)
        k = (xkv @ p["wk"] + p["bk"]).reshape(lk, b, num_heads, dh)
        v = (xkv @ p["wv"] + p["bv"]).reshape(lk, b, num_heads, dh)
        s = jnp.einsum("qbhd,kbhd->bhqk", q, k) / math.sqrt(dh)
        s = s + jnp.where(pm, -1e9, 0.0)[:, None, None, :]
        a = jax.nn.softmax(s, axis=-1)
        ctx = jnp.einsum("bhqk,kbhd->qbhd", a, v).reshape(lq, b, e)
        return _layer_norm(xq + ctx @ p["wo"] + p["bo"], p["gamma"], p["beta"])

    def fuse(a, c, p):
        gate = jax.nn.sigmoid(a @ p["wfa"] + c @ p["wfc"] + p["bf"])
        fused = gate * a + (1.0 - gate) * c
        h = jnp.maximum(fused @ p["w1"] + p["b1"], 0.0)
        return _layer_norm(fused + h @ p["w2"] + p["b2"], p["gamma"], p["beta"])

    a1 = mha(seqs1, seqs1, pm1, params["attn1"])
    a2 = mha(seqs2, seqs2, pm2, params["attn2"])
    c1 = mha(seqs1, seqs2, pm2, params["co_attn1"])
    c2 = mha(seqs2, seqs1, pm1, params["co_attn2"])
    return fuse(a1, c1, params["fuse1"]), fuse(a2, c2, params["fuse2"])


# ---------------------------------------------------------------------- main

if __name__ == "__main__":
    EMBED_DIM = 32
    NUM_HEADS = 4
    DIM_FF = 64
    B = 2
    L1 = 8
    L2 = 16

    key = jax.random.PRNGKey(0)
    k_params, k_s1, k_s2 = jax.random.split(key, 3)

    params = init_params(k_params, EMBED_DIM, DIM_FF)
    seqs1 = jax.random.normal(k_s1, (L1, B, EMBED_DIM), jnp.float32)
    seqs2 = jax.random.normal(k_s2, (L2, B, EMBED_DIM), jnp.float32)

    # True = padded position (ignored as attention key), like PyTorch key_padding_mask.
    padding_mask1 = jnp.zeros((B, L1), jnp.bool_).at[1, L1 - 2:].set(True)
    padding_mask2 = jnp.zeros((B, L2), jnp.bool_).at[1, L2 - 4:].set(True)

    packed = pack_params(params)        # one-time packing, outside the hot path

    fwd = jax.jit(functools.partial(co_transformer_layer2, num_heads=NUM_HEADS))
    out1, out2 = fwd(seqs1, seqs2, padding_mask1, padding_mask2, packed)
    out1 = jax.block_until_ready(out1)
    out2 = jax.block_until_ready(out2)

    assert out1.shape == (L1, B, EMBED_DIM)
    assert out2.shape == (L2, B, EMBED_DIM)
    assert bool(jnp.all(jnp.isfinite(out1))) and bool(jnp.all(jnp.isfinite(out2)))

    ref1, ref2 = _reference(seqs1, seqs2, padding_mask1, padding_mask2, params, NUM_HEADS)
    assert jnp.allclose(out1, ref1, atol=2e-3, rtol=2e-3)
    assert jnp.allclose(out2, ref2, atol=2e-3, rtol=2e-3)

    print("KERNEL_OK")
</pallas_src>

<mosaic_0001>
module attributes {stable_mosaic.version = 11 : i64} {
  func.func @_co_layer_kernel(%arg0: memref<16x32xf32, #tpu.memory_space<vmem>>, %arg1: memref<32x32xf32, #tpu.memory_space<vmem>>, %arg2: memref<1x16xf32, #tpu.memory_space<vmem>>, %arg3: memref<1x32xf32, #tpu.memory_space<vmem>>, %arg4: memref<2x32x192xf32, #tpu.memory_space<vmem>>, %arg5: memref<2x192xf32, #tpu.memory_space<vmem>>, %arg6: memref<8x32x32xf32, #tpu.memory_space<vmem>>, %arg7: memref<20x32xf32, #tpu.memory_space<vmem>>, %arg8: memref<2x32x64xf32, #tpu.memory_space<vmem>>, %arg9: memref<2x64xf32, #tpu.memory_space<vmem>>, %arg10: memref<2x64x32xf32, #tpu.memory_space<vmem>>, %arg11: memref<16x32xf32, #tpu.memory_space<vmem>>, %arg12: memref<32x32xf32, #tpu.memory_space<vmem>>) attributes {dimension_semantics = [], scalar_prefetch = 0 : i64, scratch_operands = 0 : i64, tpu.core_type = #tpu.core_type<tc>} {
    %c0 = arith.constant 0 : index
    %c0_0 = arith.constant 0 : index
    %0 = vector.load %arg0[%c0, %c0_0] : memref<16x32xf32, #tpu.memory_space<vmem>>, vector<16x32xf32>
    %c0_1 = arith.constant 0 : index
    %c0_2 = arith.constant 0 : index
    %1 = vector.load %arg1[%c0_1, %c0_2] : memref<32x32xf32, #tpu.memory_space<vmem>>, vector<32x32xf32>
    %c0_3 = arith.constant 0 : index
    %c0_4 = arith.constant 0 : index
    %2 = vector.load %arg2[%c0_3, %c0_4] : memref<1x16xf32, #tpu.memory_space<vmem>>, vector<1x16xf32>
    %c0_5 = arith.constant 0 : index
    %c0_6 = arith.constant 0 : index
    %3 = vector.load %arg3[%c0_5, %c0_6] : memref<1x32xf32, #tpu.memory_space<vmem>>, vector<1x32xf32>
    %c0_7 = arith.constant 0 : index
    %c0_8 = arith.constant 0 : index
    %4 = vector.load %arg5[%c0_7, %c0_8] : memref<2x192xf32, #tpu.memory_space<vmem>>, vector<2x192xf32>
    %c0_9 = arith.constant 0 : index
    %c0_10 = arith.constant 0 : index
    %5 = vector.load %arg7[%c0_9, %c0_10] : memref<20x32xf32, #tpu.memory_space<vmem>>, vector<20x32xf32>
    %c0_11 = arith.constant 0 : index
    %c0_12 = arith.constant 0 : index
    %6 = vector.load %arg9[%c0_11, %c0_12] : memref<2x64xf32, #tpu.memory_space<vmem>>, vector<2x64xf32>
    %c0_13 = arith.constant 0 : index
    %c0_14 = arith.constant 0 : index
    %c0_15 = arith.constant 0 : index
    %7 = vector.load %arg4[%c0_13, %c0_14, %c0_15] : memref<2x32x192xf32, #tpu.memory_space<vmem>>, vector<1x32x192xf32>
    %8 = vector.shape_cast %7 : vector<1x32x192xf32> to vector<32x192xf32>
    %cst = arith.constant dense<0.000000e+00> : vector<16x192xf32>
    %9 = tpu.matmul %0, %8, %cst {dimension_numbers = #tpu.dot_dimension_numbers<[1], [0], [0], [1], [0, 0, 1, 1], [], []>} : vector<16x32xf32>, vector<32x192xf32>, vector<16x192xf32> -> vector<16x192xf32>
    %10 = vector.extract_strided_slice %4 {offsets = [0, 0], sizes = [1, 192], strides = [1, 1]} : vector<2x192xf32> to vector<1x192xf32>
    %11 = vector.broadcast %10 : vector<1x192xf32> to vector<16x192xf32>
    %12 = arith.addf %9, %11 : vector<16x192xf32>
    %c1 = arith.constant 1 : index
    %c0_16 = arith.constant 0 : index
    %c0_17 = arith.constant 0 : index
    %13 = vector.load %arg4[%c1, %c0_16, %c0_17] : memref<2x32x192xf32, #tpu.memory_space<vmem>>, vector<1x32x192xf32>
    %14 = vector.shape_cast %13 : vector<1x32x192xf32> to vector<32x192xf32>
    %cst_18 = arith.constant dense<0.000000e+00> : vector<32x192xf32>
    %15 = tpu.matmul %1, %14, %cst_18 {dimension_numbers = #tpu.dot_dimension_numbers<[1], [0], [0], [1], [0, 0, 1, 1], [], []>} : vector<32x32xf32>, vector<32x192xf32>, vector<32x192xf32> -> vector<32x192xf32>
    %16 = vector.extract_strided_slice %4 {offsets = [1, 0], sizes = [1, 192], strides = [1, 1]} : vector<2x192xf32> to vector<1x192xf32>
    %17 = vector.broadcast %16 : vector<1x192xf32> to vector<32x192xf32>
    %18 = arith.addf %15, %17 : vector<32x192xf32>
    %19 = tpu.iota {dimensions = array<i32: 0>} : vector<16x16xi32>
    %c2_i32 = arith.constant 2 : i32
    %c0_i32 = arith.constant 0 : i32
    %20 = arith.cmpi eq, %c2_i32, %c0_i32 : i32
    %c1_i32 = arith.constant 1 : i32
    %21 = arith.select %20, %c1_i32, %c2_i32 : i32
    %22 = vector.broadcast %21 : i32 to vector<16x16xi32>
    %23 = arith.remsi %19, %22 : vector<16x16xi32>
    %c0_i32_19 = arith.constant 0 : i32
    %24 = vector.broadcast %c0_i32_19 : i32 to vector<16x16xi32>
    %25 = arith.cmpi ne, %23, %24 : vector<16x16xi32>
    %c0_i32_20 = arith.constant 0 : i32
    %26 = vector.broadcast %c0_i32_20 : i32 to vector<16x16xi32>
    %27 = arith.cmpi slt, %23, %26 : vector<16x16xi32>
    %c0_i32_21 = arith.constant 0 : i32
    %28 = arith.cmpi slt, %21, %c0_i32_21 : i32
    %29 = vector.broadcast %28 : i1 to vector<16x16xi1>
    %30 = vector.broadcast %29 : vector<16x16xi1> to vector<16x16xi1>
    %31 = arith.xori %27, %30 : vector<16x16xi1>
    %32 = arith.andi %31, %25 : vector<16x16xi1>
    %33 = vector.broadcast %21 : i32 to vector<16x16xi32>
    %34 = arith.addi %23, %33 : vector<16x16xi32>
    %35 = arith.select %32, %34, %23 : vector<16x16xi1>, vector<16x16xi32>
    %36 = tpu.iota {dimensions = array<i32: 1>} : vector<16x16xi32>
    %c2_i32_22 = arith.constant 2 : i32
    %c0_i32_23 = arith.constant 0 : i32
    %37 = arith.cmpi eq, %c2_i32_22, %c0_i32_23 : i32
    %c1_i32_24 = arith.constant 1 : i32
    %38 = arith.select %37, %c1_i32_24, %c2_i32_22 : i32
    %39 = vector.broadcast %38 : i32 to vector<16x16xi32>
    %40 = arith.remsi %36, %39 : vector<16x16xi32>
    %c0_i32_25 = arith.constant 0 : i32
    %41 = vector.broadcast %c0_i32_25 : i32 to vector<16x16xi32>
    %42 = arith.cmpi ne, %40, %41 : vector<16x16xi32>
    %c0_i32_26 = arith.constant 0 : i32
    %43 = vector.broadcast %c0_i32_26 : i32 to vector<16x16xi32>
    %44 = arith.cmpi slt, %40, %43 : vector<16x16xi32>
    %c0_i32_27 = arith.constant 0 : i32
    %45 = arith.cmpi slt, %38, %c0_i32_27 : i32
    %46 = vector.broadcast %45 : i1 to vector<16x16xi1>
    %47 = vector.broadcast %46 : vector<16x16xi1> to vector<16x16xi1>
    %48 = arith.xori %44, %47 : vector<16x16xi1>
    %49 = arith.andi %48, %42 : vector<16x16xi1>
    %50 = vector.broadcast %38 : i32 to vector<16x16xi32>
    %51 = arith.addi %40, %50 : vector<16x16xi32>
    %52 = arith.select %49, %51, %40 : vector<16x16xi1>, vector<16x16xi32>
    %53 = arith.cmpi eq, %35, %52 : vector<16x16xi32>
    %54 = vector.shape_cast %2 : vector<1x16xf32> to vector<1x16xf32>
    %55 = vector.broadcast %54 : vector<1x16xf32> to vector<16x16xf32>
    %cst_28 = arith.constant -1.000000e+30 : f32
    %56 = vector.broadcast %cst_28 : f32 to vector<16x16xf32>
    %57 = arith.select %53, %55, %56 : vector<16x16xi1>, vector<16x16xf32>
    %58 = tpu.iota {dimensions = array<i32: 0>} : vector<32x32xi32>
    %c2_i32_29 = arith.constant 2 : i32
    %c0_i32_30 = arith.constant 0 : i32
    %59 = arith.cmpi eq, %c2_i32_29, %c0_i32_30 : i32
    %c1_i32_31 = arith.constant 1 : i32
    %60 = arith.select %59, %c1_i32_31, %c2_i32_29 : i32
    %61 = vector.broadcast %60 : i32 to vector<32x32xi32>
    %62 = arith.remsi %58, %61 : vector<32x32xi32>
    %c0_i32_32 = arith.constant 0 : i32
    %63 = vector.broadcast %c0_i32_32 : i32 to vector<32x32xi32>
    %64 = arith.cmpi ne, %62, %63 : vector<32x32xi32>
    %c0_i32_33 = arith.constant 0 : i32
    %65 = vector.broadcast %c0_i32_33 : i32 to vector<32x32xi32>
    %66 = arith.cmpi slt, %62, %65 : vector<32x32xi32>
    %c0_i32_34 = arith.constant 0 : i32
    %67 = arith.cmpi slt, %60, %c0_i32_34 : i32
    %68 = vector.broadcast %67 : i1 to vector<32x32xi1>
    %69 = vector.broadcast %68 : vector<32x32xi1> to vector<32x32xi1>
    %70 = arith.xori %66, %69 : vector<32x32xi1>
    %71 = arith.andi %70, %64 : vector<32x32xi1>
    %72 = vector.broadcast %60 : i32 to vector<32x32xi32>
    %73 = arith.addi %62, %72 : vector<32x32xi32>
    %74 = arith.select %71, %73, %62 : vector<32x32xi1>, vector<32x32xi32>
    %75 = tpu.iota {dimensions = array<i32: 1>} : vector<32x32xi32>
    %c2_i32_35 = arith.constant 2 : i32
    %c0_i32_36 = arith.constant 0 : i32
    %76 = arith.cmpi eq, %c2_i32_35, %c0_i32_36 : i32
    %c1_i32_37 = arith.constant 1 : i32
    %77 = arith.select %76, %c1_i32_37, %c2_i32_35 : i32
    %78 = vector.broadcast %77 : i32 to vector<32x32xi32>
    %79 = arith.remsi %75, %78 : vector<32x32xi32>
    %c0_i32_38 = arith.constant 0 : i32
    %80 = vector.broadcast %c0_i32_38 : i32 to vector<32x32xi32>
    %81 = arith.cmpi ne, %79, %80 : vector<32x32xi32>
    %c0_i32_39 = arith.constant 0 : i32
    %82 = vector.broadcast %c0_i32_39 : i32 to vector<32x32xi32>
    %83 = arith.cmpi slt, %79, %82 : vector<32x32xi32>
    %c0_i32_40 = arith.constant 0 : i32
    %84 = arith.cmpi slt, %77, %c0_i32_40 : i32
    %85 = vector.broadcast %84 : i1 to vector<32x32xi1>
    %86 = vector.broadcast %85 : vector<32x32xi1> to vector<32x32xi1>
    %87 = arith.xori %83, %86 : vector<32x32xi1>
    %88 = arith.andi %87, %81 : vector<32x32xi1>
    %89 = vector.broadcast %77 : i32 to vector<32x32xi32>
    %90 = arith.addi %79, %89 : vector<32x32xi32>
    %91 = arith.select %88, %90, %79 : vector<32x32xi1>, vector<32x32xi32>
    %92 = arith.cmpi eq, %74, %91 : vector<32x32xi32>
    %93 = vector.shape_cast %3 : vector<1x32xf32> to vector<1x32xf32>
    %94 = vector.broadcast %93 : vector<1x32xf32> to vector<32x32xf32>
    %cst_41 = arith.constant -1.000000e+30 : f32
    %95 = vector.broadcast %cst_41 : f32 to vector<32x32xf32>
    %96 = arith.select %92, %94, %95 : vector<32x32xi1>, vector<32x32xf32>
    %97 = tpu.iota {dimensions = array<i32: 0>} : vector<16x32xi32>
    %c2_i32_42 = arith.constant 2 : i32
    %c0_i32_43 = arith.constant 0 : i32
    %98 = arith.cmpi eq, %c2_i32_42, %c0_i32_43 : i32
    %c1_i32_44 = arith.constant 1 : i32
    %99 = arith.select %98, %c1_i32_44, %c2_i32_42 : i32
    %100 = vector.broadcast %99 : i32 to vector<16x32xi32>
    %101 = arith.remsi %97, %100 : vector<16x32xi32>
    %c0_i32_45 = arith.constant 0 : i32
    %102 = vector.broadcast %c0_i32_45 : i32 to vector<16x32xi32>
    %103 = arith.cmpi ne, %101, %102 : vector<16x32xi32>
    %c0_i32_46 = arith.constant 0 : i32
    %104 = vector.broadcast %c0_i32_46 : i32 to vector<16x32xi32>
    %105 = arith.cmpi slt, %101, %104 : vector<16x32xi32>
    %c0_i32_47 = arith.constant 0 : i32
    %106 = arith.cmpi slt, %99, %c0_i32_47 : i32
    %107 = vector.broadcast %106 : i1 to vector<16x32xi1>
    %108 = vector.broadcast %107 : vector<16x32xi1> to vector<16x32xi1>
    %109 = arith.xori %105, %108 : vector<16x32xi1>
    %110 = arith.andi %109, %103 : vector<16x32xi1>
    %111 = vector.broadcast %99 : i32 to vector<16x32xi32>
    %112 = arith.addi %101, %111 : vector<16x32xi32>
    %113 = arith.select %110, %112, %101 : vector<16x32xi1>, vector<16x32xi32>
    %114 = tpu.iota {dimensions = array<i32: 1>} : vector<16x32xi32>
    %c2_i32_48 = arith.constant 2 : i32
    %c0_i32_49 = arith.constant 0 : i32
    %115 = arith.cmpi eq, %c2_i32_48, %c0_i32_49 : i32
    %c1_i32_50 = arith.constant 1 : i32
    %116 = arith.select %115, %c1_i32_50, %c2_i32_48 : i32
    %117 = vector.broadcast %116 : i32 to vector<16x32xi32>
    %118 = arith.remsi %114, %117 : vector<16x32xi32>
    %c0_i32_51 = arith.constant 0 : i32
    %119 = vector.broadcast %c0_i32_51 : i32 to vector<16x32xi32>
    %120 = arith.cmpi ne, %118, %119 : vector<16x32xi32>
    %c0_i32_52 = arith.constant 0 : i32
    %121 = vector.broadcast %c0_i32_52 : i32 to vector<16x32xi32>
    %122 = arith.cmpi slt, %118, %121 : vector<16x32xi32>
    %c0_i32_53 = arith.constant 0 : i32
    %123 = arith.cmpi slt, %116, %c0_i32_53 : i32
    %124 = vector.broadcast %123 : i1 to vector<16x32xi1>
    %125 = vector.broadcast %124 : vector<16x32xi1> to vector<16x32xi1>
    %126 = arith.xori %122, %125 : vector<16x32xi1>
    %127 = arith.andi %126, %120 : vector<16x32xi1>
    %128 = vector.broadcast %116 : i32 to vector<16x32xi32>
    %129 = arith.addi %118, %128 : vector<16x32xi32>
    %130 = arith.select %127, %129, %118 : vector<16x32xi1>, vector<16x32xi32>
    %131 = arith.cmpi eq, %113, %130 : vector<16x32xi32>
    %132 = vector.shape_cast %3 : vector<1x32xf32> to vector<1x32xf32>
    %133 = vector.broadcast %132 : vector<1x32xf32> to vector<16x32xf32>
    %cst_54 = arith.constant -1.000000e+30 : f32
    %134 = vector.broadcast %cst_54 : f32 to vector<16x32xf32>
    %135 = arith.select %131, %133, %134 : vector<16x32xi1>, vector<16x32xf32>
    %136 = tpu.iota {dimensions = array<i32: 0>} : vector<32x16xi32>
    %c2_i32_55 = arith.constant 2 : i32
    %c0_i32_56 = arith.constant 0 : i32
    %137 = arith.cmpi eq, %c2_i32_55, %c0_i32_56 : i32
    %c1_i32_57 = arith.constant 1 : i32
    %138 = arith.select %137, %c1_i32_57, %c2_i32_55 : i32
    %139 = vector.broadcast %138 : i32 to vector<32x16xi32>
    %140 = arith.remsi %136, %139 : vector<32x16xi32>
    %c0_i32_58 = arith.constant 0 : i32
    %141 = vector.broadcast %c0_i32_58 : i32 to vector<32x16xi32>
    %142 = arith.cmpi ne, %140, %141 : vector<32x16xi32>
    %c0_i32_59 = arith.constant 0 : i32
    %143 = vector.broadcast %c0_i32_59 : i32 to vector<32x16xi32>
    %144 = arith.cmpi slt, %140, %143 : vector<32x16xi32>
    %c0_i32_60 = arith.constant 0 : i32
    %145 = arith.cmpi slt, %138, %c0_i32_60 : i32
    %146 = vector.broadcast %145 : i1 to vector<32x16xi1>
    %147 = vector.broadcast %146 : vector<32x16xi1> to vector<32x16xi1>
    %148 = arith.xori %144, %147 : vector<32x16xi1>
    %149 = arith.andi %148, %142 : vector<32x16xi1>
    %150 = vector.broadcast %138 : i32 to vector<32x16xi32>
    %151 = arith.addi %140, %150 : vector<32x16xi32>
    %152 = arith.select %149, %151, %140 : vector<32x16xi1>, vector<32x16xi32>
    %153 = tpu.iota {dimensions = array<i32: 1>} : vector<32x16xi32>
    %c2_i32_61 = arith.constant 2 : i32
    %c0_i32_62 = arith.constant 0 : i32
    %154 = arith.cmpi eq, %c2_i32_61, %c0_i32_62 : i32
    %c1_i32_63 = arith.constant 1 : i32
    %155 = arith.select %154, %c1_i32_63, %c2_i32_61 : i32
    %156 = vector.broadcast %155 : i32 to vector<32x16xi32>
    %157 = arith.remsi %153, %156 : vector<32x16xi32>
    %c0_i32_64 = arith.constant 0 : i32
    %158 = vector.broadcast %c0_i32_64 : i32 to vector<32x16xi32>
    %159 = arith.cmpi ne, %157, %158 : vector<32x16xi32>
    %c0_i32_65 = arith.constant 0 : i32
    %160 = vector.broadcast %c0_i32_65 : i32 to vector<32x16xi32>
    %161 = arith.cmpi slt, %157, %160 : vector<32x16xi32>
    %c0_i32_66 = arith.constant 0 : i32
    %162 = arith.cmpi slt, %155, %c0_i32_66 : i32
    %163 = vector.broadcast %162 : i1 to vector<32x16xi1>
    %164 = vector.broadcast %163 : vector<32x16xi1> to vector<32x16xi1>
    %165 = arith.xori %161, %164 : vector<32x16xi1>
    %166 = arith.andi %165, %159 : vector<32x16xi1>
    %167 = vector.broadcast %155 : i32 to vector<32x16xi32>
    %168 = arith.addi %157, %167 : vector<32x16xi32>
    %169 = arith.select %166, %168, %157 : vector<32x16xi1>, vector<32x16xi32>
    %170 = arith.cmpi eq, %152, %169 : vector<32x16xi32>
    %171 = vector.shape_cast %2 : vector<1x16xf32> to vector<1x16xf32>
    %172 = vector.broadcast %171 : vector<1x16xf32> to vector<32x16xf32>
    %cst_67 = arith.constant -1.000000e+30 : f32
    %173 = vector.broadcast %cst_67 : f32 to vector<32x16xf32>
    %174 = arith.select %170, %172, %173 : vector<32x16xi1>, vector<32x16xf32>
    %c0_68 = arith.constant 0 : index
    %c0_69 = arith.constant 0 : index
    %c0_70 = arith.constant 0 : index
    %175 = vector.load %arg6[%c0_68, %c0_69, %c0_70] : memref<8x32x32xf32, #tpu.memory_space<vmem>>, vector<1x32x32xf32>
    %176 = vector.shape_cast %175 : vector<1x32x32xf32> to vector<32x32xf32>
    %177 = vector.extract_strided_slice %5 {offsets = [0, 0], sizes = [1, 32], strides = [1, 1]} : vector<20x32xf32> to vector<1x32xf32>
    %178 = vector.extract_strided_slice %5 {offsets = [4, 0], sizes = [1, 32], strides = [1, 1]} : vector<20x32xf32> to vector<1x32xf32>
    %179 = vector.extract_strided_slice %5 {offsets = [8, 0], sizes = [1, 32], strides = [1, 1]} : vector<20x32xf32> to vector<1x32xf32>
    %cst_71 = arith.constant 0.000000e+00 : f32
    %180 = vector.broadcast %cst_71 : f32 to vector<16x32xf32>
    %181 = vector.extract_strided_slice %12 {offsets = [0, 0], sizes = [16, 8], strides = [1, 1]} : vector<16x192xf32> to vector<16x8xf32>
    %182 = vector.extract_strided_slice %12 {offsets = [0, 32], sizes = [16, 8], strides = [1, 1]} : vector<16x192xf32> to vector<16x8xf32>
    %183 = vector.extract_strided_slice %12 {offsets = [0, 64], sizes = [16, 8], strides = [1, 1]} : vector<16x192xf32> to vector<16x8xf32>
    %cst_72 = arith.constant dense<0.000000e+00> : vector<16x16xf32>
    %184 = tpu.matmul %181, %182, %cst_72 {dimension_numbers = #tpu.dot_dimension_numbers<[1], [1], [0], [0], [0, 0, 1, 0], [], []>} : vector<16x8xf32>, vector<16x8xf32>, vector<16x16xf32> -> vector<16x16xf32>
    %cst_73 = arith.constant 0.353553385 : f32
    %185 = vector.broadcast %cst_73 : f32 to vector<16x16xf32>
    %186 = arith.mulf %184, %185 : vector<16x16xf32>
    %187 = arith.addf %186, %57 : vector<16x16xf32>
    %cst_74 = arith.constant dense<0xFF800000> : vector<16xf32>
    %188 = vector.multi_reduction <maximumf>, %187, %cst_74 [1] : vector<16x16xf32> to vector<16xf32>
    %189 = vector.shape_cast %188 : vector<16xf32> to vector<16x1xf32>
    %190 = vector.broadcast %189 : vector<16x1xf32> to vector<16x16xf32>
    %191 = arith.subf %187, %190 : vector<16x16xf32>
    %192 = math.exp %191 : vector<16x16xf32>
    %cst_75 = arith.constant dense<0.000000e+00> : vector<16xf32>
    %193 = vector.multi_reduction <add>, %192, %cst_75 [1] : vector<16x16xf32> to vector<16xf32>
    %194 = vector.shape_cast %193 : vector<16xf32> to vector<16x1xf32>
    %195 = vector.broadcast %194 : vector<16x1xf32> to vector<16x16xf32>
    %196 = arith.divf %192, %195 : vector<16x16xf32>
    %cst_76 = arith.constant dense<0.000000e+00> : vector<16x8xf32>
    %197 = tpu.matmul %196, %183, %cst_76 {dimension_numbers = #tpu.dot_dimension_numbers<[1], [0], [0], [1], [0, 0, 1, 1], [], []>} : vector<16x16xf32>, vector<16x8xf32>, vector<16x8xf32> -> vector<16x8xf32>
    %198 = vector.extract_strided_slice %176 {offsets = [0, 0], sizes = [8, 32], strides = [1, 1]} : vector<32x32xf32> to vector<8x32xf32>
    %cst_77 = arith.constant dense<0.000000e+00> : vector<16x32xf32>
    %199 = tpu.matmul %197, %198, %cst_77 {dimension_numbers = #tpu.dot_dimension_numbers<[1], [0], [0], [1], [0, 0, 1, 1], [], []>} : vector<16x8xf32>, vector<8x32xf32>, vector<16x32xf32> -> vector<16x32xf32>
    %200 = arith.addf %180, %199 : vector<16x32xf32>
    %201 = vector.extract_strided_slice %12 {offsets = [0, 8], sizes = [16, 8], strides = [1, 1]} : vector<16x192xf32> to vector<16x8xf32>
    %202 = vector.extract_strided_slice %12 {offsets = [0, 40], sizes = [16, 8], strides = [1, 1]} : vector<16x192xf32> to vector<16x8xf32>
    %203 = vector.extract_strided_slice %12 {offsets = [0, 72], sizes = [16, 8], strides = [1, 1]} : vector<16x192xf32> to vector<16x8xf32>
    %cst_78 = arith.constant dense<0.000000e+00> : vector<16x16xf32>
    %204 = tpu.matmul %201, %202, %cst_78 {dimension_numbers = #tpu.dot_dimension_numbers<[1], [1], [0], [0], [0, 0, 1, 0], [], []>} : vector<16x8xf32>, vector<16x8xf32>, vector<16x16xf32> -> vector<16x16xf32>
    %cst_79 = arith.constant 0.353553385 : f32
    %205 = vector.broadcast %cst_79 : f32 to vector<16x16xf32>
    %206 = arith.mulf %204, %205 : vector<16x16xf32>
    %207 = arith.addf %206, %57 : vector<16x16xf32>
    %cst_80 = arith.constant dense<0xFF800000> : vector<16xf32>
    %208 = vector.multi_reduction <maximumf>, %207, %cst_80 [1] : vector<16x16xf32> to vector<16xf32>
    %209 = vector.shape_cast %208 : vector<16xf32> to vector<16x1xf32>
    %210 = vector.broadcast %209 : vector<16x1xf32> to vector<16x16xf32>
    %211 = arith.subf %207, %210 : vector<16x16xf32>
    %212 = math.exp %211 : vector<16x16xf32>
    %cst_81 = arith.constant dense<0.000000e+00> : vector<16xf32>
    %213 = vector.multi_reduction <add>, %212, %cst_81 [1] : vector<16x16xf32> to vector<16xf32>
    %214 = vector.shape_cast %213 : vector<16xf32> to vector<16x1xf32>
    %215 = vector.broadcast %214 : vector<16x1xf32> to vector<16x16xf32>
    %216 = arith.divf %212, %215 : vector<16x16xf32>
    %cst_82 = arith.constant dense<0.000000e+00> : vector<16x8xf32>
    %217 = tpu.matmul %216, %203, %cst_82 {dimension_numbers = #tpu.dot_dimension_numbers<[1], [0], [0], [1], [0, 0, 1, 1], [], []>} : vector<16x16xf32>, vector<16x8xf32>, vector<16x8xf32> -> vector<16x8xf32>
    %218 = vector.extract_strided_slice %176 {offsets = [8, 0], sizes = [8, 32], strides = [1, 1]} : vector<32x32xf32> to vector<8x32xf32>
    %cst_83 = arith.constant dense<0.000000e+00> : vector<16x32xf32>
    %219 = tpu.matmul %217, %218, %cst_83 {dimension_numbers = #tpu.dot_dimension_numbers<[1], [0], [0], [1], [0, 0, 1, 1], [], []>} : vector<16x8xf32>, vector<8x32xf32>, vector<16x32xf32> -> vector<16x32xf32>
    %220 = arith.addf %200, %219 : vector<16x32xf32>
    %221 = vector.extract_strided_slice %12 {offsets = [0, 16], sizes = [16, 8], strides = [1, 1]} : vector<16x192xf32> to vector<16x8xf32>
    %222 = vector.extract_strided_slice %12 {offsets = [0, 48], sizes = [16, 8], strides = [1, 1]} : vector<16x192xf32> to vector<16x8xf32>
    %223 = vector.extract_strided_slice %12 {offsets = [0, 80], sizes = [16, 8], strides = [1, 1]} : vector<16x192xf32> to vector<16x8xf32>
    %cst_84 = arith.constant dense<0.000000e+00> : vector<16x16xf32>
    %224 = tpu.matmul %221, %222, %cst_84 {dimension_numbers = #tpu.dot_dimension_numbers<[1], [1], [0], [0], [0, 0, 1, 0], [], []>} : vector<16x8xf32>, vector<16x8xf32>, vector<16x16xf32> -> vector<16x16xf32>
    %cst_85 = arith.constant 0.353553385 : f32
    %225 = vector.broadcast %cst_85 : f32 to vector<16x16xf32>
    %226 = arith.mulf %224, %225 : vector<16x16xf32>
    %227 = arith.addf %226, %57 : vector<16x16xf32>
    %cst_86 = arith.constant dense<0xFF800000> : vector<16xf32>
    %228 = vector.multi_reduction <maximumf>, %227, %cst_86 [1] : vector<16x16xf32> to vector<16xf32>
    %229 = vector.shape_cast %228 : vector<16xf32> to vector<16x1xf32>
    %230 = vector.broadcast %229 : vector<16x1xf32> to vector<16x16xf32>
    %231 = arith.subf %227, %230 : vector<16x16xf32>
    %232 = math.exp %231 : vector<16x16xf32>
    %cst_87 = arith.constant dense<0.000000e+00> : vector<16xf32>
    %233 = vector.multi_reduction <add>, %232, %cst_87 [1] : vector<16x16xf32> to vector<16xf32>
    %234 = vector.shape_cast %233 : vector<16xf32> to vector<16x1xf32>
    %235 = vector.broadcast %234 : vector<16x1xf32> to vector<16x16xf32>
    %236 = arith.divf %232, %235 : vector<16x16xf32>
    %cst_88 = arith.constant dense<0.000000e+00> : vector<16x8xf32>
    %237 = tpu.matmul %236, %223, %cst_88 {dimension_numbers = #tpu.dot_dimension_numbers<[1], [0], [0], [1], [0, 0, 1, 1], [], []>} : vector<16x16xf32>, vector<16x8xf32>, vector<16x8xf32> -> vector<16x8xf32>
    %238 = vector.extract_strided_slice %176 {offsets = [16, 0], sizes = [8, 32], strides = [1, 1]} : vector<32x32xf32> to vector<8x32xf32>
    %cst_89 = arith.constant dense<0.000000e+00> : vector<16x32xf32>
    %239 = tpu.matmul %237, %238, %cst_89 {dimension_numbers = #tpu.dot_dimension_numbers<[1], [0], [0], [1], [0, 0, 1, 1], [], []>} : vector<16x8xf32>, vector<8x32xf32>, vector<16x32xf32> -> vector<16x32xf32>
    %240 = arith.addf %220, %239 : vector<16x32xf32>
    %241 = vector.extract_strided_slice %12 {offsets = [0, 24], sizes = [16, 8], strides = [1, 1]} : vector<16x192xf32> to vector<16x8xf32>
    %242 = vector.extract_strided_slice %12 {offsets = [0, 56], sizes = [16, 8], strides = [1, 1]} : vector<16x192xf32> to vector<16x8xf32>
    %243 = vector.extract_strided_slice %12 {offsets = [0, 88], sizes = [16, 8], strides = [1, 1]} : vector<16x192xf32> to vector<16x8xf32>
    %cst_90 = arith.constant dense<0.000000e+00> : vector<16x16xf32>
    %244 = tpu.matmul %241, %242, %cst_90 {dimension_numbers = #tpu.dot_dimension_numbers<[1], [1], [0], [0], [0, 0, 1, 0], [], []>} : vector<16x8xf32>, vector<16x8xf32>, vector<16x16xf32> -> vector<16x16xf32>
    %cst_91 = arith.constant 0.353553385 : f32
    %245 = vector.broadcast %cst_91 : f32 to vector<16x16xf32>
    %246 = arith.mulf %244, %245 : vector<16x16xf32>
    %247 = arith.addf %246, %57 : vector<16x16xf32>
    %cst_92 = arith.constant dense<0xFF800000> : vector<16xf32>
    %248 = vector.multi_reduction <maximumf>, %247, %cst_92 [1] : vector<16x16xf32> to vector<16xf32>
    %249 = vector.shape_cast %248 : vector<16xf32> to vector<16x1xf32>
    %250 = vector.broadcast %249 : vector<16x1xf32> to vector<16x16xf32>
    %251 = arith.subf %247, %250 : vector<16x16xf32>
    %252 = math.exp %251 : vector<16x16xf32>
    %cst_93 = arith.constant dense<0.000000e+00> : vector<16xf32>
    %253 = vector.multi_reduction <add>, %252, %cst_93 [1] : vector<16x16xf32> to vector<16xf32>
    %254 = vector.shape_cast %253 : vector<16xf32> to vector<16x1xf32>
    %255 = vector.broadcast %254 : vector<16x1xf32> to vector<16x16xf32>
    %256 = arith.divf %252, %255 : vector<16x16xf32>
    %cst_94 = arith.constant dense<0.000000e+00> : vector<16x8xf32>
    %257 = tpu.matmul %256, %243, %cst_94 {dimension_numbers = #tpu.dot_dimension_numbers<[1], [0], [0], [1], [0, 0, 1, 1], [], []>} : vector<16x16xf32>, vector<16x8xf32>, vector<16x8xf32> -> vector<16x8xf32>
    %258 = vector.extract_strided_slice %176 {offsets = [24, 0], sizes = [8, 32], strides = [1, 1]} : vector<32x32xf32> to vector<8x32xf32>
    %cst_95 = arith.constant dense<0.000000e+00> : vector<16x32xf32>
    %259 = tpu.matmul %257, %258, %cst_95 {dimension_numbers = #tpu.dot_dimension_numbers<[1], [0], [0], [1], [0, 0, 1, 1], [], []>} : vector<16x8xf32>, vector<8x32xf32>, vector<16x32xf32> -> vector<16x32xf32>
    %260 = arith.addf %240, %259 : vector<16x32xf32>
    %261 = arith.addf %0, %260 : vector<16x32xf32>
    %262 = vector.broadcast %177 : vector<1x32xf32> to vector<16x32xf32>
    %263 = arith.addf %261, %262 : vector<16x32xf32>
    %cst_96 = arith.constant dense<0.000000e+00> : vector<16xf32>
    %264 = vector.multi_reduction <add>, %263, %cst_96 [1] : vector<16x32xf32> to vector<16xf32>
    %265 = vector.shape_cast %264 : vector<16xf32> to vector<16x1xf32>
    %cst_97 = arith.constant 3.200000e+01 : f32
    %266 = vector.broadcast %cst_97 : f32 to vector<16x1xf32>
    %267 = arith.divf %265, %266 : vector<16x1xf32>
    %268 = vector.broadcast %267 : vector<16x1xf32> to vector<16x32xf32>
    %269 = arith.subf %263, %268 : vector<16x32xf32>
    %270 = arith.mulf %269, %269 : vector<16x32xf32>
    %cst_98 = arith.constant dense<0.000000e+00> : vector<16xf32>
    %271 = vector.multi_reduction <add>, %270, %cst_98 [1] : vector<16x32xf32> to vector<16xf32>
    %272 = vector.shape_cast %271 : vector<16xf32> to vector<16x1xf32>
    %cst_99 = arith.constant 3.200000e+01 : f32
    %273 = vector.broadcast %cst_99 : f32 to vector<16x1xf32>
    %274 = arith.divf %272, %273 : vector<16x1xf32>
    %275 = vector.broadcast %267 : vector<16x1xf32> to vector<16x32xf32>
    %276 = arith.subf %263, %275 : vector<16x32xf32>
    %cst_100 = arith.constant 9.99999974E-6 : f32
    %277 = vector.broadcast %cst_100 : f32 to vector<16x1xf32>
    %278 = arith.addf %274, %277 : vector<16x1xf32>
    %279 = math.rsqrt %278 : vector<16x1xf32>
    %280 = vector.broadcast %279 : vector<16x1xf32> to vector<16x32xf32>
    %281 = arith.mulf %276, %280 : vector<16x32xf32>
    %282 = vector.broadcast %178 : vector<1x32xf32> to vector<16x32xf32>
    %283 = arith.mulf %281, %282 : vector<16x32xf32>
    %284 = vector.broadcast %179 : vector<1x32xf32> to vector<16x32xf32>
    %285 = arith.addf %283, %284 : vector<16x32xf32>
    %c1_101 = arith.constant 1 : index
    %c0_102 = arith.constant 0 : index
    %c0_103 = arith.constant 0 : index
    %286 = vector.load %arg6[%c1_101, %c0_102, %c0_103] : memref<8x32x32xf32, #tpu.memory_space<vmem>>, vector<1x32x32xf32>
    %287 = vector.shape_cast %286 : vector<1x32x32xf32> to vector<32x32xf32>
    %288 = vector.extract_strided_slice %5 {offsets = [1, 0], sizes = [1, 32], strides = [1, 1]} : vector<20x32xf32> to vector<1x32xf32>
    %289 = vector.extract_strided_slice %5 {offsets = [5, 0], sizes = [1, 32], strides = [1, 1]} : vector<20x32xf32> to vector<1x32xf32>
    %290 = vector.extract_strided_slice %5 {offsets = [9, 0], sizes = [1, 32], strides = [1, 1]} : vector<20x32xf32> to vector<1x32xf32>
    %cst_104 = arith.constant 0.000000e+00 : f32
    %291 = vector.broadcast %cst_104 : f32 to vector<32x32xf32>
    %292 = vector.extract_strided_slice %18 {offsets = [0, 0], sizes = [32, 8], strides = [1, 1]} : vector<32x192xf32> to vector<32x8xf32>
    %293 = vector.extract_strided_slice %18 {offsets = [0, 32], sizes = [32, 8], strides = [1, 1]} : vector<32x192xf32> to vector<32x8xf32>
    %294 = vector.extract_strided_slice %18 {offsets = [0, 64], sizes = [32, 8], strides = [1, 1]} : vector<32x192xf32> to vector<32x8xf32>
    %cst_105 = arith.constant dense<0.000000e+00> : vector<32x32xf32>
    %295 = tpu.matmul %292, %293, %cst_105 {dimension_numbers = #tpu.dot_dimension_numbers<[1], [1], [0], [0], [0, 0, 1, 0], [], []>} : vector<32x8xf32>, vector<32x8xf32>, vector<32x32xf32> -> vector<32x32xf32>
    %cst_106 = arith.constant 0.353553385 : f32
    %296 = vector.broadcast %cst_106 : f32 to vector<32x32xf32>
    %297 = arith.mulf %295, %296 : vector<32x32xf32>
    %298 = arith.addf %297, %96 : vector<32x32xf32>
    %cst_107 = arith.constant dense<0xFF800000> : vector<32xf32>
    %299 = vector.multi_reduction <maximumf>, %298, %cst_107 [1] : vector<32x32xf32> to vector<32xf32>
    %300 = vector.shape_cast %299 : vector<32xf32> to vector<32x1xf32>
    %301 = vector.broadcast %300 : vector<32x1xf32> to vector<32x32xf32>
    %302 = arith.subf %298, %301 : vector<32x32xf32>
    %303 = math.exp %302 : vector<32x32xf32>
    %cst_108 = arith.constant dense<0.000000e+00> : vector<32xf32>
    %304 = vector.multi_reduction <add>, %303, %cst_108 [1] : vector<32x32xf32> to vector<32xf32>
    %305 = vector.shape_cast %304 : vector<32xf32> to vector<32x1xf32>
    %306 = vector.broadcast %305 : vector<32x1xf32> to vector<32x32xf32>
    %307 = arith.divf %303, %306 : vector<32x32xf32>
    %cst_109 = arith.constant dense<0.000000e+00> : vector<32x8xf32>
    %308 = tpu.matmul %307, %294, %cst_109 {dimension_numbers = #tpu.dot_dimension_numbers<[1], [0], [0], [1], [0, 0, 1, 1], [], []>} : vector<32x32xf32>, vector<32x8xf32>, vector<32x8xf32> -> vector<32x8xf32>
    %309 = vector.extract_strided_slice %287 {offsets = [0, 0], sizes = [8, 32], strides = [1, 1]} : vector<32x32xf32> to vector<8x32xf32>
    %cst_110 = arith.constant dense<0.000000e+00> : vector<32x32xf32>
    %310 = tpu.matmul %308, %309, %cst_110 {dimension_numbers = #tpu.dot_dimension_numbers<[1], [0], [0], [1], [0, 0, 1, 1], [], []>} : vector<32x8xf32>, vector<8x32xf32>, vector<32x32xf32> -> vector<32x32xf32>
    %311 = arith.addf %291, %310 : vector<32x32xf32>
    %312 = vector.extract_strided_slice %18 {offsets = [0, 8], sizes = [32, 8], strides = [1, 1]} : vector<32x192xf32> to vector<32x8xf32>
    %313 = vector.extract_strided_slice %18 {offsets = [0, 40], sizes = [32, 8], strides = [1, 1]} : vector<32x192xf32> to vector<32x8xf32>
    %314 = vector.extract_strided_slice %18 {offsets = [0, 72], sizes = [32, 8], strides = [1, 1]} : vector<32x192xf32> to vector<32x8xf32>
    %cst_111 = arith.constant dense<0.000000e+00> : vector<32x32xf32>
    %315 = tpu.matmul %312, %313, %cst_111 {dimension_numbers = #tpu.dot_dimension_numbers<[1], [1], [0], [0], [0, 0, 1, 0], [], []>} : vector<32x8xf32>, vector<32x8xf32>, vector<32x32xf32> -> vector<32x32xf32>
    %cst_112 = arith.constant 0.353553385 : f32
    %316 = vector.broadcast %cst_112 : f32 to vector<32x32xf32>
    %317 = arith.mulf %315, %316 : vector<32x32xf32>
    %318 = arith.addf %317, %96 : vector<32x32xf32>
    %cst_113 = arith.constant dense<0xFF800000> : vector<32xf32>
    %319 = vector.multi_reduction <maximumf>, %318, %cst_113 [1] : vector<32x32xf32> to vector<32xf32>
    %320 = vector.shape_cast %319 : vector<32xf32> to vector<32x1xf32>
    %321 = vector.broadcast %320 : vector<32x1xf32> to vector<32x32xf32>
    %322 = arith.subf %318, %321 : vector<32x32xf32>
    %323 = math.exp %322 : vector<32x32xf32>
    %cst_114 = arith.constant dense<0.000000e+00> : vector<32xf32>
    %324 = vector.multi_reduction <add>, %323, %cst_114 [1] : vector<32x32xf32> to vector<32xf32>
    %325 = vector.shape_cast %324 : vector<32xf32> to vector<32x1xf32>
    %326 = vector.broadcast %325 : vector<32x1xf32> to vector<32x32xf32>
    %327 = arith.divf %323, %326 : vector<32x32xf32>
    %cst_115 = arith.constant dense<0.000000e+00> : vector<32x8xf32>
    %328 = tpu.matmul %327, %314, %cst_115 {dimension_numbers = #tpu.dot_dimension_numbers<[1], [0], [0], [1], [0, 0, 1, 1], [], []>} : vector<32x32xf32>, vector<32x8xf32>, vector<32x8xf32> -> vector<32x8xf32>
    %329 = vector.extract_strided_slice %287 {offsets = [8, 0], sizes = [8, 32], strides = [1, 1]} : vector<32x32xf32> to vector<8x32xf32>
    %cst_116 = arith.constant dense<0.000000e+00> : vector<32x32xf32>
    %330 = tpu.matmul %328, %329, %cst_116 {dimension_numbers = #tpu.dot_dimension_numbers<[1], [0], [0], [1], [0, 0, 1, 1], [], []>} : vector<32x8xf32>, vector<8x32xf32>, vector<32x32xf32> -> vector<32x32xf32>
    %331 = arith.addf %311, %330 : vector<32x32xf32>
    %332 = vector.extract_strided_slice %18 {offsets = [0, 16], sizes = [32, 8], strides = [1, 1]} : vector<32x192xf32> to vector<32x8xf32>
    %333 = vector.extract_strided_slice %18 {offsets = [0, 48], sizes = [32, 8], strides = [1, 1]} : vector<32x192xf32> to vector<32x8xf32>
    %334 = vector.extract_strided_slice %18 {offsets = [0, 80], sizes = [32, 8], strides = [1, 1]} : vector<32x192xf32> to vector<32x8xf32>
    %cst_117 = arith.constant dense<0.000000e+00> : vector<32x32xf32>
    %335 = tpu.matmul %332, %333, %cst_117 {dimension_numbers = #tpu.dot_dimension_numbers<[1], [1], [0], [0], [0, 0, 1, 0], [], []>} : vector<32x8xf32>, vector<32x8xf32>, vector<32x32xf32> -> vector<32x32xf32>
    %cst_118 = arith.constant 0.353553385 : f32
    %336 = vector.broadcast %cst_118 : f32 to vector<32x32xf32>
    %337 = arith.mulf %335, %336 : vector<32x32xf32>
    %338 = arith.addf %337, %96 : vector<32x32xf32>
    %cst_119 = arith.constant dense<0xFF800000> : vector<32xf32>
    %339 = vector.multi_reduction <maximumf>, %338, %cst_119 [1] : vector<32x32xf32> to vector<32xf32>
    %340 = vector.shape_cast %339 : vector<32xf32> to vector<32x1xf32>
    %341 = vector.broadcast %340 : vector<32x1xf32> to vector<32x32xf32>
    %342 = arith.subf %338, %341 : vector<32x32xf32>
    %343 = math.exp %342 : vector<32x32xf32>
    %cst_120 = arith.constant dense<0.000000e+00> : vector<32xf32>
    %344 = vector.multi_reduction <add>, %343, %cst_120 [1] : vector<32x32xf32> to vector<32xf32>
    %345 = vector.shape_cast %344 : vector<32xf32> to vector<32x1xf32>
    %346 = vector.broadcast %345 : vector<32x1xf32> to vector<32x32xf32>
    %347 = arith.divf %343, %346 : vector<32x32xf32>
    %cst_121 = arith.constant dense<0.000000e+00> : vector<32x8xf32>
    %348 = tpu.matmul %347, %334, %cst_121 {dimension_numbers = #tpu.dot_dimension_numbers<[1], [0], [0], [1], [0, 0, 1, 1], [], []>} : vector<32x32xf32>, vector<32x8xf32>, vector<32x8xf32> -> vector<32x8xf32>
    %349 = vector.extract_strided_slice %287 {offsets = [16, 0], sizes = [8, 32], strides = [1, 1]} : vector<32x32xf32> to vector<8x32xf32>
    %cst_122 = arith.constant dense<0.000000e+00> : vector<32x32xf32>
    %350 = tpu.matmul %348, %349, %cst_122 {dimension_numbers = #tpu.dot_dimension_numbers<[1], [0], [0], [1], [0, 0, 1, 1], [], []>} : vector<32x8xf32>, vector<8x32xf32>, vector<32x32xf32> -> vector<32x32xf32>
    %351 = arith.addf %331, %350 : vector<32x32xf32>
    %352 = vector.extract_strided_slice %18 {offsets = [0, 24], sizes = [32, 8], strides = [1, 1]} : vector<32x192xf32> to vector<32x8xf32>
    %353 = vector.extract_strided_slice %18 {offsets = [0, 56], sizes = [32, 8], strides = [1, 1]} : vector<32x192xf32> to vector<32x8xf32>
    %354 = vector.extract_strided_slice %18 {offsets = [0, 88], sizes = [32, 8], strides = [1, 1]} : vector<32x192xf32> to vector<32x8xf32>
    %cst_123 = arith.constant dense<0.000000e+00> : vector<32x32xf32>
    %355 = tpu.matmul %352, %353, %cst_123 {dimension_numbers = #tpu.dot_dimension_numbers<[1], [1], [0], [0], [0, 0, 1, 0], [], []>} : vector<32x8xf32>, vector<32x8xf32>, vector<32x32xf32> -> vector<32x32xf32>
    %cst_124 = arith.constant 0.353553385 : f32
    %356 = vector.broadcast %cst_124 : f32 to vector<32x32xf32>
    %357 = arith.mulf %355, %356 : vector<32x32xf32>
    %358 = arith.addf %357, %96 : vector<32x32xf32>
    %cst_125 = arith.constant dense<0xFF800000> : vector<32xf32>
    %359 = vector.multi_reduction <maximumf>, %358, %cst_125 [1] : vector<32x32xf32> to vector<32xf32>
    %360 = vector.shape_cast %359 : vector<32xf32> to vector<32x1xf32>
    %361 = vector.broadcast %360 : vector<32x1xf32> to vector<32x32xf32>
    %362 = arith.subf %358, %361 : vector<32x32xf32>
    %363 = math.exp %362 : vector<32x32xf32>
    %cst_126 = arith.constant dense<0.000000e+00> : vector<32xf32>
    %364 = vector.multi_reduction <add>, %363, %cst_126 [1] : vector<32x32xf32> to vector<32xf32>
    %365 = vector.shape_cast %364 : vector<32xf32> to vector<32x1xf32>
    %366 = vector.broadcast %365 : vector<32x1xf32> to vector<32x32xf32>
    %367 = arith.divf %363, %366 : vector<32x32xf32>
    %cst_127 = arith.constant dense<0.000000e+00> : vector<32x8xf32>
    %368 = tpu.matmul %367, %354, %cst_127 {dimension_numbers = #tpu.dot_dimension_numbers<[1], [0], [0], [1], [0, 0, 1, 1], [], []>} : vector<32x32xf32>, vector<32x8xf32>, vector<32x8xf32> -> vector<32x8xf32>
    %369 = vector.extract_strided_slice %287 {offsets = [24, 0], sizes = [8, 32], strides = [1, 1]} : vector<32x32xf32> to vector<8x32xf32>
    %cst_128 = arith.constant dense<0.000000e+00> : vector<32x32xf32>
    %370 = tpu.matmul %368, %369, %cst_128 {dimension_numbers = #tpu.dot_dimension_numbers<[1], [0], [0], [1], [0, 0, 1, 1], [], []>} : vector<32x8xf32>, vector<8x32xf32>, vector<32x32xf32> -> vector<32x32xf32>
    %371 = arith.addf %351, %370 : vector<32x32xf32>
    %372 = arith.addf %1, %371 : vector<32x32xf32>
    %373 = vector.broadcast %288 : vector<1x32xf32> to vector<32x32xf32>
    %374 = arith.addf %372, %373 : vector<32x32xf32>
    %cst_129 = arith.constant dense<0.000000e+00> : vector<32xf32>
    %375 = vector.multi_reduction <add>, %374, %cst_129 [1] : vector<32x32xf32> to vector<32xf32>
    %376 = vector.shape_cast %375 : vector<32xf32> to vector<32x1xf32>
    %cst_130 = arith.constant 3.200000e+01 : f32
    %377 = vector.broadcast %cst_130 : f32 to vector<32x1xf32>
    %378 = arith.divf %376, %377 : vector<32x1xf32>
    %379 = vector.broadcast %378 : vector<32x1xf32> to vector<32x32xf32>
    %380 = arith.subf %374, %379 : vector<32x32xf32>
    %381 = arith.mulf %380, %380 : vector<32x32xf32>
    %cst_131 = arith.constant dense<0.000000e+00> : vector<32xf32>
    %382 = vector.multi_reduction <add>, %381, %cst_131 [1] : vector<32x32xf32> to vector<32xf32>
    %383 = vector.shape_cast %382 : vector<32xf32> to vector<32x1xf32>
    %cst_132 = arith.constant 3.200000e+01 : f32
    %384 = vector.broadcast %cst_132 : f32 to vector<32x1xf32>
    %385 = arith.divf %383, %384 : vector<32x1xf32>
    %386 = vector.broadcast %378 : vector<32x1xf32> to vector<32x32xf32>
    %387 = arith.subf %374, %386 : vector<32x32xf32>
    %cst_133 = arith.constant 9.99999974E-6 : f32
    %388 = vector.broadcast %cst_133 : f32 to vector<32x1xf32>
    %389 = arith.addf %385, %388 : vector<32x1xf32>
    %390 = math.rsqrt %389 : vector<32x1xf32>
    %391 = vector.broadcast %390 : vector<32x1xf32> to vector<32x32xf32>
    %392 = arith.mulf %387, %391 : vector<32x32xf32>
    %393 = vector.broadcast %289 : vector<1x32xf32> to vector<32x32xf32>
    %394 = arith.mulf %392, %393 : vector<32x32xf32>
    %395 = vector.broadcast %290 : vector<1x32xf32> to vector<32x32xf32>
    %396 = arith.addf %394, %395 : vector<32x32xf32>
    %c2 = arith.constant 2 : index
    %c0_134 = arith.constant 0 : index
    %c0_135 = arith.constant 0 : index
    %397 = vector.load %arg6[%c2, %c0_134, %c0_135] : memref<8x32x32xf32, #tpu.memory_space<vmem>>, vector<1x32x32xf32>
    %398 = vector.shape_cast %397 : vector<1x32x32xf32> to vector<32x32xf32>
    %399 = vector.extract_strided_slice %5 {offsets = [2, 0], sizes = [1, 32], strides = [1, 1]} : vector<20x32xf32> to vector<1x32xf32>
    %400 = vector.extract_strided_slice %5 {offsets = [6, 0], sizes = [1, 32], strides = [1, 1]} : vector<20x32xf32> to vector<1x32xf32>
    %401 = vector.extract_strided_slice %5 {offsets = [10, 0], sizes = [1, 32], strides = [1, 1]} : vector<20x32xf32> to vector<1x32xf32>
    %cst_136 = arith.constant 0.000000e+00 : f32
    %402 = vector.broadcast %cst_136 : f32 to vector<16x32xf32>
    %403 = vector.extract_strided_slice %12 {offsets = [0, 96], sizes = [16, 8], strides = [1, 1]} : vector<16x192xf32> to vector<16x8xf32>
    %404 = vector.extract_strided_slice %18 {offsets = [0, 128], sizes = [32, 8], strides = [1, 1]} : vector<32x192xf32> to vector<32x8xf32>
    %405 = vector.extract_strided_slice %18 {offsets = [0, 160], sizes = [32, 8], strides = [1, 1]} : vector<32x192xf32> to vector<32x8xf32>
    %cst_137 = arith.constant dense<0.000000e+00> : vector<16x32xf32>
    %406 = tpu.matmul %403, %404, %cst_137 {dimension_numbers = #tpu.dot_dimension_numbers<[1], [1], [0], [0], [0, 0, 1, 0], [], []>} : vector<16x8xf32>, vector<32x8xf32>, vector<16x32xf32> -> vector<16x32xf32>
    %cst_138 = arith.constant 0.353553385 : f32
    %407 = vector.broadcast %cst_138 : f32 to vector<16x32xf32>
    %408 = arith.mulf %406, %407 : vector<16x32xf32>
    %409 = arith.addf %408, %135 : vector<16x32xf32>
    %cst_139 = arith.constant dense<0xFF800000> : vector<16xf32>
    %410 = vector.multi_reduction <maximumf>, %409, %cst_139 [1] : vector<16x32xf32> to vector<16xf32>
    %411 = vector.shape_cast %410 : vector<16xf32> to vector<16x1xf32>
    %412 = vector.broadcast %411 : vector<16x1xf32> to vector<16x32xf32>
    %413 = arith.subf %409, %412 : vector<16x32xf32>
    %414 = math.exp %413 : vector<16x32xf32>
    %cst_140 = arith.constant dense<0.000000e+00> : vector<16xf32>
    %415 = vector.multi_reduction <add>, %414, %cst_140 [1] : vector<16x32xf32> to vector<16xf32>
    %416 = vector.shape_cast %415 : vector<16xf32> to vector<16x1xf32>
    %417 = vector.broadcast %416 : vector<16x1xf32> to vector<16x32xf32>
    %418 = arith.divf %414, %417 : vector<16x32xf32>
    %cst_141 = arith.constant dense<0.000000e+00> : vector<16x8xf32>
    %419 = tpu.matmul %418, %405, %cst_141 {dimension_numbers = #tpu.dot_dimension_numbers<[1], [0], [0], [1], [0, 0, 1, 1], [], []>} : vector<16x32xf32>, vector<32x8xf32>, vector<16x8xf32> -> vector<16x8xf32>
    %420 = vector.extract_strided_slice %398 {offsets = [0, 0], sizes = [8, 32], strides = [1, 1]} : vector<32x32xf32> to vector<8x32xf32>
    %cst_142 = arith.constant dense<0.000000e+00> : vector<16x32xf32>
    %421 = tpu.matmul %419, %420, %cst_142 {dimension_numbers = #tpu.dot_dimension_numbers<[1], [0], [0], [1], [0, 0, 1, 1], [], []>} : vector<16x8xf32>, vector<8x32xf32>, vector<16x32xf32> -> vector<16x32xf32>
    %422 = arith.addf %402, %421 : vector<16x32xf32>
    %423 = vector.extract_strided_slice %12 {offsets = [0, 104], sizes = [16, 8], strides = [1, 1]} : vector<16x192xf32> to vector<16x8xf32>
    %424 = vector.extract_strided_slice %18 {offsets = [0, 136], sizes = [32, 8], strides = [1, 1]} : vector<32x192xf32> to vector<32x8xf32>
    %425 = vector.extract_strided_slice %18 {offsets = [0, 168], sizes = [32, 8], strides = [1, 1]} : vector<32x192xf32> to vector<32x8xf32>
    %cst_143 = arith.constant dense<0.000000e+00> : vector<16x32xf32>
    %426 = tpu.matmul %423, %424, %cst_143 {dimension_numbers = #tpu.dot_dimension_numbers<[1], [1], [0], [0], [0, 0, 1, 0], [], []>} : vector<16x8xf32>, vector<32x8xf32>, vector<16x32xf32> -> vector<16x32xf32>
    %cst_144 = arith.constant 0.353553385 : f32
    %427 = vector.broadcast %cst_144 : f32 to vector<16x32xf32>
    %428 = arith.mulf %426, %427 : vector<16x32xf32>
    %429 = arith.addf %428, %135 : vector<16x32xf32>
    %cst_145 = arith.constant dense<0xFF800000> : vector<16xf32>
    %430 = vector.multi_reduction <maximumf>, %429, %cst_145 [1] : vector<16x32xf32> to vector<16xf32>
    %431 = vector.shape_cast %430 : vector<16xf32> to vector<16x1xf32>
    %432 = vector.broadcast %431 : vector<16x1xf32> to vector<16x32xf32>
    %433 = arith.subf %429, %432 : vector<16x32xf32>
    %434 = math.exp %433 : vector<16x32xf32>
    %cst_146 = arith.constant dense<0.000000e+00> : vector<16xf32>
    %435 = vector.multi_reduction <add>, %434, %cst_146 [1] : vector<16x32xf32> to vector<16xf32>
    %436 = vector.shape_cast %435 : vector<16xf32> to vector<16x1xf32>
    %437 = vector.broadcast %436 : vector<16x1xf32> to vector<16x32xf32>
    %438 = arith.divf %434, %437 : vector<16x32xf32>
    %cst_147 = arith.constant dense<0.000000e+00> : vector<16x8xf32>
    %439 = tpu.matmul %438, %425, %cst_147 {dimension_numbers = #tpu.dot_dimension_numbers<[1], [0], [0], [1], [0, 0, 1, 1], [], []>} : vector<16x32xf32>, vector<32x8xf32>, vector<16x8xf32> -> vector<16x8xf32>
    %440 = vector.extract_strided_slice %398 {offsets = [8, 0], sizes = [8, 32], strides = [1, 1]} : vector<32x32xf32> to vector<8x32xf32>
    %cst_148 = arith.constant dense<0.000000e+00> : vector<16x32xf32>
    %441 = tpu.matmul %439, %440, %cst_148 {dimension_numbers = #tpu.dot_dimension_numbers<[1], [0], [0], [1], [0, 0, 1, 1], [], []>} : vector<16x8xf32>, vector<8x32xf32>, vector<16x32xf32> -> vector<16x32xf32>
    %442 = arith.addf %422, %441 : vector<16x32xf32>
    %443 = vector.extract_strided_slice %12 {offsets = [0, 112], sizes = [16, 8], strides = [1, 1]} : vector<16x192xf32> to vector<16x8xf32>
    %444 = vector.extract_strided_slice %18 {offsets = [0, 144], sizes = [32, 8], strides = [1, 1]} : vector<32x192xf32> to vector<32x8xf32>
    %445 = vector.extract_strided_slice %18 {offsets = [0, 176], sizes = [32, 8], strides = [1, 1]} : vector<32x192xf32> to vector<32x8xf32>
    %cst_149 = arith.constant dense<0.000000e+00> : vector<16x32xf32>
    %446 = tpu.matmul %443, %444, %cst_149 {dimension_numbers = #tpu.dot_dimension_numbers<[1], [1], [0], [0], [0, 0, 1, 0], [], []>} : vector<16x8xf32>, vector<32x8xf32>, vector<16x32xf32> -> vector<16x32xf32>
    %cst_150 = arith.constant 0.353553385 : f32
    %447 = vector.broadcast %cst_150 : f32 to vector<16x32xf32>
    %448 = arith.mulf %446, %447 : vector<16x32xf32>
    %449 = arith.addf %448, %135 : vector<16x32xf32>
    %cst_151 = arith.constant dense<0xFF800000> : vector<16xf32>
    %450 = vector.multi_reduction <maximumf>, %449, %cst_151 [1] : vector<16x32xf32> to vector<16xf32>
    %451 = vector.shape_cast %450 : vector<16xf32> to vector<16x1xf32>
    %452 = vector.broadcast %451 : vector<16x1xf32> to vector<16x32xf32>
    %453 = arith.subf %449, %452 : vector<16x32xf32>
    %454 = math.exp %453 : vector<16x32xf32>
    %cst_152 = arith.constant dense<0.000000e+00> : vector<16xf32>
    %455 = vector.multi_reduction <add>, %454, %cst_152 [1] : vector<16x32xf32> to vector<16xf32>
    %456 = vector.shape_cast %455 : vector<16xf32> to vector<16x1xf32>
    %457 = vector.broadcast %456 : vector<16x1xf32> to vector<16x32xf32>
    %458 = arith.divf %454, %457 : vector<16x32xf32>
    %cst_153 = arith.constant dense<0.000000e+00> : vector<16x8xf32>
    %459 = tpu.matmul %458, %445, %cst_153 {dimension_numbers = #tpu.dot_dimension_numbers<[1], [0], [0], [1], [0, 0, 1, 1], [], []>} : vector<16x32xf32>, vector<32x8xf32>, vector<16x8xf32> -> vector<16x8xf32>
    %460 = vector.extract_strided_slice %398 {offsets = [16, 0], sizes = [8, 32], strides = [1, 1]} : vector<32x32xf32> to vector<8x32xf32>
    %cst_154 = arith.constant dense<0.000000e+00> : vector<16x32xf32>
    %461 = tpu.matmul %459, %460, %cst_154 {dimension_numbers = #tpu.dot_dimension_numbers<[1], [0], [0], [1], [0, 0, 1, 1], [], []>} : vector<16x8xf32>, vector<8x32xf32>, vector<16x32xf32> -> vector<16x32xf32>
    %462 = arith.addf %442, %461 : vector<16x32xf32>
    %463 = vector.extract_strided_slice %12 {offsets = [0, 120], sizes = [16, 8], strides = [1, 1]} : vector<16x192xf32> to vector<16x8xf32>
    %464 = vector.extract_strided_slice %18 {offsets = [0, 152], sizes = [32, 8], strides = [1, 1]} : vector<32x192xf32> to vector<32x8xf32>
    %465 = vector.extract_strided_slice %18 {offsets = [0, 184], sizes = [32, 8], strides = [1, 1]} : vector<32x192xf32> to vector<32x8xf32>
    %cst_155 = arith.constant dense<0.000000e+00> : vector<16x32xf32>
    %466 = tpu.matmul %463, %464, %cst_155 {dimension_numbers = #tpu.dot_dimension_numbers<[1], [1], [0], [0], [0, 0, 1, 0], [], []>} : vector<16x8xf32>, vector<32x8xf32>, vector<16x32xf32> -> vector<16x32xf32>
    %cst_156 = arith.constant 0.353553385 : f32
    %467 = vector.broadcast %cst_156 : f32 to vector<16x32xf32>
    %468 = arith.mulf %466, %467 : vector<16x32xf32>
    %469 = arith.addf %468, %135 : vector<16x32xf32>
    %cst_157 = arith.constant dense<0xFF800000> : vector<16xf32>
    %470 = vector.multi_reduction <maximumf>, %469, %cst_157 [1] : vector<16x32xf32> to vector<16xf32>
    %471 = vector.shape_cast %470 : vector<16xf32> to vector<16x1xf32>
    %472 = vector.broadcast %471 : vector<16x1xf32> to vector<16x32xf32>
    %473 = arith.subf %469, %472 : vector<16x32xf32>
    %474 = math.exp %473 : vector<16x32xf32>
    %cst_158 = arith.constant dense<0.000000e+00> : vector<16xf32>
    %475 = vector.multi_reduction <add>, %474, %cst_158 [1] : vector<16x32xf32> to vector<16xf32>
    %476 = vector.shape_cast %475 : vector<16xf32> to vector<16x1xf32>
    %477 = vector.broadcast %476 : vector<16x1xf32> to vector<16x32xf32>
    %478 = arith.divf %474, %477 : vector<16x32xf32>
    %cst_159 = arith.constant dense<0.000000e+00> : vector<16x8xf32>
    %479 = tpu.matmul %478, %465, %cst_159 {dimension_numbers = #tpu.dot_dimension_numbers<[1], [0], [0], [1], [0, 0, 1, 1], [], []>} : vector<16x32xf32>, vector<32x8xf32>, vector<16x8xf32> -> vector<16x8xf32>
    %480 = vector.extract_strided_slice %398 {offsets = [24, 0], sizes = [8, 32], strides = [1, 1]} : vector<32x32xf32> to vector<8x32xf32>
    %cst_160 = arith.constant dense<0.000000e+00> : vector<16x32xf32>
    %481 = tpu.matmul %479, %480, %cst_160 {dimension_numbers = #tpu.dot_dimension_numbers<[1], [0], [0], [1], [0, 0, 1, 1], [], []>} : vector<16x8xf32>, vector<8x32xf32>, vector<16x32xf32> -> vector<16x32xf32>
    %482 = arith.addf %462, %481 : vector<16x32xf32>
    %483 = arith.addf %0, %482 : vector<16x32xf32>
    %484 = vector.broadcast %399 : vector<1x32xf32> to vector<16x32xf32>
    %485 = arith.addf %483, %484 : vector<16x32xf32>
    %cst_161 = arith.constant dense<0.000000e+00> : vector<16xf32>
    %486 = vector.multi_reduction <add>, %485, %cst_161 [1] : vector<16x32xf32> to vector<16xf32>
    %487 = vector.shape_cast %486 : vector<16xf32> to vector<16x1xf32>
    %cst_162 = arith.constant 3.200000e+01 : f32
    %488 = vector.broadcast %cst_162 : f32 to vector<16x1xf32>
    %489 = arith.divf %487, %488 : vector<16x1xf32>
    %490 = vector.broadcast %489 : vector<16x1xf32> to vector<16x32xf32>
    %491 = arith.subf %485, %490 : vector<16x32xf32>
    %492 = arith.mulf %491, %491 : vector<16x32xf32>
    %cst_163 = arith.constant dense<0.000000e+00> : vector<16xf32>
    %493 = vector.multi_reduction <add>, %492, %cst_163 [1] : vector<16x32xf32> to vector<16xf32>
    %494 = vector.shape_cast %493 : vector<16xf32> to vector<16x1xf32>
    %cst_164 = arith.constant 3.200000e+01 : f32
    %495 = vector.broadcast %cst_164 : f32 to vector<16x1xf32>
    %496 = arith.divf %494, %495 : vector<16x1xf32>
    %497 = vector.broadcast %489 : vector<16x1xf32> to vector<16x32xf32>
    %498 = arith.subf %485, %497 : vector<16x32xf32>
    %cst_165 = arith.constant 9.99999974E-6 : f32
    %499 = vector.broadcast %cst_165 : f32 to vector<16x1xf32>
    %500 = arith.addf %496, %499 : vector<16x1xf32>
    %501 = math.rsqrt %500 : vector<16x1xf32>
    %502 = vector.broadcast %501 : vector<16x1xf32> to vector<16x32xf32>
    %503 = arith.mulf %498, %502 : vector<16x32xf32>
    %504 = vector.broadcast %400 : vector<1x32xf32> to vector<16x32xf32>
    %505 = arith.mulf %503, %504 : vector<16x32xf32>
    %506 = vector.broadcast %401 : vector<1x32xf32> to vector<16x32xf32>
    %507 = arith.addf %505, %506 : vector<16x32xf32>
    %c3 = arith.constant 3 : index
    %c0_166 = arith.constant 0 : index
    %c0_167 = arith.constant 0 : index
    %508 = vector.load %arg6[%c3, %c0_166, %c0_167] : memref<8x32x32xf32, #tpu.memory_space<vmem>>, vector<1x32x32xf32>
    %509 = vector.shape_cast %508 : vector<1x32x32xf32> to vector<32x32xf32>
    %510 = vector.extract_strided_slice %5 {offsets = [3, 0], sizes = [1, 32], strides = [1, 1]} : vector<20x32xf32> to vector<1x32xf32>
    %511 = vector.extract_strided_slice %5 {offsets = [7, 0], sizes = [1, 32], strides = [1, 1]} : vector<20x32xf32> to vector<1x32xf32>
    %512 = vector.extract_strided_slice %5 {offsets = [11, 0], sizes = [1, 32], strides = [1, 1]} : vector<20x32xf32> to vector<1x32xf32>
    %cst_168 = arith.constant 0.000000e+00 : f32
    %513 = vector.broadcast %cst_168 : f32 to vector<32x32xf32>
    %514 = vector.extract_strided_slice %18 {offsets = [0, 96], sizes = [32, 8], strides = [1, 1]} : vector<32x192xf32> to vector<32x8xf32>
    %515 = vector.extract_strided_slice %12 {offsets = [0, 128], sizes = [16, 8], strides = [1, 1]} : vector<16x192xf32> to vector<16x8xf32>
    %516 = vector.extract_strided_slice %12 {offsets = [0, 160], sizes = [16, 8], strides = [1, 1]} : vector<16x192xf32> to vector<16x8xf32>
    %cst_169 = arith.constant dense<0.000000e+00> : vector<32x16xf32>
    %517 = tpu.matmul %514, %515, %cst_169 {dimension_numbers = #tpu.dot_dimension_numbers<[1], [1], [0], [0], [0, 0, 1, 0], [], []>} : vector<32x8xf32>, vector<16x8xf32>, vector<32x16xf32> -> vector<32x16xf32>
    %cst_170 = arith.constant 0.353553385 : f32
    %518 = vector.broadcast %cst_170 : f32 to vector<32x16xf32>
    %519 = arith.mulf %517, %518 : vector<32x16xf32>
    %520 = arith.addf %519, %174 : vector<32x16xf32>
    %cst_171 = arith.constant dense<0xFF800000> : vector<32xf32>
    %521 = vector.multi_reduction <maximumf>, %520, %cst_171 [1] : vector<32x16xf32> to vector<32xf32>
    %522 = vector.shape_cast %521 : vector<32xf32> to vector<32x1xf32>
    %523 = vector.broadcast %522 : vector<32x1xf32> to vector<32x16xf32>
    %524 = arith.subf %520, %523 : vector<32x16xf32>
    %525 = math.exp %524 : vector<32x16xf32>
    %cst_172 = arith.constant dense<0.000000e+00> : vector<32xf32>
    %526 = vector.multi_reduction <add>, %525, %cst_172 [1] : vector<32x16xf32> to vector<32xf32>
    %527 = vector.shape_cast %526 : vector<32xf32> to vector<32x1xf32>
    %528 = vector.broadcast %527 : vector<32x1xf32> to vector<32x16xf32>
    %529 = arith.divf %525, %528 : vector<32x16xf32>
    %cst_173 = arith.constant dense<0.000000e+00> : vector<32x8xf32>
    %530 = tpu.matmul %529, %516, %cst_173 {dimension_numbers = #tpu.dot_dimension_numbers<[1], [0], [0], [1], [0, 0, 1, 1], [], []>} : vector<32x16xf32>, vector<16x8xf32>, vector<32x8xf32> -> vector<32x8xf32>
    %531 = vector.extract_strided_slice %509 {offsets = [0, 0], sizes = [8, 32], strides = [1, 1]} : vector<32x32xf32> to vector<8x32xf32>
    %cst_174 = arith.constant dense<0.000000e+00> : vector<32x32xf32>
    %532 = tpu.matmul %530, %531, %cst_174 {dimension_numbers = #tpu.dot_dimension_numbers<[1], [0], [0], [1], [0, 0, 1, 1], [], []>} : vector<32x8xf32>, vector<8x32xf32>, vector<32x32xf32> -> vector<32x32xf32>
    %533 = arith.addf %513, %532 : vector<32x32xf32>
    %534 = vector.extract_strided_slice %18 {offsets = [0, 104], sizes = [32, 8], strides = [1, 1]} : vector<32x192xf32> to vector<32x8xf32>
    %535 = vector.extract_strided_slice %12 {offsets = [0, 136], sizes = [16, 8], strides = [1, 1]} : vector<16x192xf32> to vector<16x8xf32>
    %536 = vector.extract_strided_slice %12 {offsets = [0, 168], sizes = [16, 8], strides = [1, 1]} : vector<16x192xf32> to vector<16x8xf32>
    %cst_175 = arith.constant dense<0.000000e+00> : vector<32x16xf32>
    %537 = tpu.matmul %534, %535, %cst_175 {dimension_numbers = #tpu.dot_dimension_numbers<[1], [1], [0], [0], [0, 0, 1, 0], [], []>} : vector<32x8xf32>, vector<16x8xf32>, vector<32x16xf32> -> vector<32x16xf32>
    %cst_176 = arith.constant 0.353553385 : f32
    %538 = vector.broadcast %cst_176 : f32 to vector<32x16xf32>
    %539 = arith.mulf %537, %538 : vector<32x16xf32>
    %540 = arith.addf %539, %174 : vector<32x16xf32>
    %cst_177 = arith.constant dense<0xFF800000> : vector<32xf32>
    %541 = vector.multi_reduction <maximumf>, %540, %cst_177 [1] : vector<32x16xf32> to vector<32xf32>
    %542 = vector.shape_cast %541 : vector<32xf32> to vector<32x1xf32>
    %543 = vector.broadcast %542 : vector<32x1xf32> to vector<32x16xf32>
    %544 = arith.subf %540, %543 : vector<32x16xf32>
    %545 = math.exp %544 : vector<32x16xf32>
    %cst_178 = arith.constant dense<0.000000e+00> : vector<32xf32>
    %546 = vector.multi_reduction <add>, %545, %cst_178 [1] : vector<32x16xf32> to vector<32xf32>
    %547 = vector.shape_cast %546 : vector<32xf32> to vector<32x1xf32>
    %548 = vector.broadcast %547 : vector<32x1xf32> to vector<32x16xf32>
    %549 = arith.divf %545, %548 : vector<32x16xf32>
    %cst_179 = arith.constant dense<0.000000e+00> : vector<32x8xf32>
    %550 = tpu.matmul %549, %536, %cst_179 {dimension_numbers = #tpu.dot_dimension_numbers<[1], [0], [0], [1], [0, 0, 1, 1], [], []>} : vector<32x16xf32>, vector<16x8xf32>, vector<32x8xf32> -> vector<32x8xf32>
    %551 = vector.extract_strided_slice %509 {offsets = [8, 0], sizes = [8, 32], strides = [1, 1]} : vector<32x32xf32> to vector<8x32xf32>
    %cst_180 = arith.constant dense<0.000000e+00> : vector<32x32xf32>
    %552 = tpu.matmul %550, %551, %cst_180 {dimension_numbers = #tpu.dot_dimension_numbers<[1], [0], [0], [1], [0, 0, 1, 1], [], []>} : vector<32x8xf32>, vector<8x32xf32>, vector<32x32xf32> -> vector<32x32xf32>
    %553 = arith.addf %533, %552 : vector<32x32xf32>
    %554 = vector.extract_strided_slice %18 {offsets = [0, 112], sizes = [32, 8], strides = [1, 1]} : vector<32x192xf32> to vector<32x8xf32>
    %555 = vector.extract_strided_slice %12 {offsets = [0, 144], sizes = [16, 8], strides = [1, 1]} : vector<16x192xf32> to vector<16x8xf32>
    %556 = vector.extract_strided_slice %12 {offsets = [0, 176], sizes = [16, 8], strides = [1, 1]} : vector<16x192xf32> to vector<16x8xf32>
    %cst_181 = arith.constant dense<0.000000e+00> : vector<32x16xf32>
    %557 = tpu.matmul %554, %555, %cst_181 {dimension_numbers = #tpu.dot_dimension_numbers<[1], [1], [0], [0], [0, 0, 1, 0], [], []>} : vector<32x8xf32>, vector<16x8xf32>, vector<32x16xf32> -> vector<32x16xf32>
    %cst_182 = arith.constant 0.353553385 : f32
    %558 = vector.broadcast %cst_182 : f32 to vector<32x16xf32>
    %559 = arith.mulf %557, %558 : vector<32x16xf32>
    %560 = arith.addf %559, %174 : vector<32x16xf32>
    %cst_183 = arith.constant dense<0xFF800000> : vector<32xf32>
    %561 = vector.multi_reduction <maximumf>, %560, %cst_183 [1] : vector<32x16xf32> to vector<32xf32>
    %562 = vector.shape_cast %561 : vector<32xf32> to vector<32x1xf32>
    %563 = vector.broadcast %562 : vector<32x1xf32> to vector<32x16xf32>
    %564 = arith.subf %560, %563 : vector<32x16xf32>
    %565 = math.exp %564 : vector<32x16xf32>
    %cst_184 = arith.constant dense<0.000000e+00> : vector<32xf32>
    %566 = vector.multi_reduction <add>, %565, %cst_184 [1] : vector<32x16xf32> to vector<32xf32>
    %567 = vector.shape_cast %566 : vector<32xf32> to vector<32x1xf32>
    %568 = vector.broadcast %567 : vector<32x1xf32> to vector<32x16xf32>
    %569 = arith.divf %565, %568 : vector<32x16xf32>
    %cst_185 = arith.constant dense<0.000000e+00> : vector<32x8xf32>
    %570 = tpu.matmul %569, %556, %cst_185 {dimension_numbers = #tpu.dot_dimension_numbers<[1], [0], [0], [1], [0, 0, 1, 1], [], []>} : vector<32x16xf32>, vector<16x8xf32>, vector<32x8xf32> -> vector<32x8xf32>
    %571 = vector.extract_strided_slice %509 {offsets = [16, 0], sizes = [8, 32], strides = [1, 1]} : vector<32x32xf32> to vector<8x32xf32>
    %cst_186 = arith.constant dense<0.000000e+00> : vector<32x32xf32>
    %572 = tpu.matmul %570, %571, %cst_186 {dimension_numbers = #tpu.dot_dimension_numbers<[1], [0], [0], [1], [0, 0, 1, 1], [], []>} : vector<32x8xf32>, vector<8x32xf32>, vector<32x32xf32> -> vector<32x32xf32>
    %573 = arith.addf %553, %572 : vector<32x32xf32>
    %574 = vector.extract_strided_slice %18 {offsets = [0, 120], sizes = [32, 8], strides = [1, 1]} : vector<32x192xf32> to vector<32x8xf32>
    %575 = vector.extract_strided_slice %12 {offsets = [0, 152], sizes = [16, 8], strides = [1, 1]} : vector<16x192xf32> to vector<16x8xf32>
    %576 = vector.extract_strided_slice %12 {offsets = [0, 184], sizes = [16, 8], strides = [1, 1]} : vector<16x192xf32> to vector<16x8xf32>
    %cst_187 = arith.constant dense<0.000000e+00> : vector<32x16xf32>
    %577 = tpu.matmul %574, %575, %cst_187 {dimension_numbers = #tpu.dot_dimension_numbers<[1], [1], [0], [0], [0, 0, 1, 0], [], []>} : vector<32x8xf32>, vector<16x8xf32>, vector<32x16xf32> -> vector<32x16xf32>
    %cst_188 = arith.constant 0.353553385 : f32
    %578 = vector.broadcast %cst_188 : f32 to vector<32x16xf32>
    %579 = arith.mulf %577, %578 : vector<32x16xf32>
    %580 = arith.addf %579, %174 : vector<32x16xf32>
    %cst_189 = arith.constant dense<0xFF800000> : vector<32xf32>
    %581 = vector.multi_reduction <maximumf>, %580, %cst_189 [1] : vector<32x16xf32> to vector<32xf32>
    %582 = vector.shape_cast %581 : vector<32xf32> to vector<32x1xf32>
    %583 = vector.broadcast %582 : vector<32x1xf32> to vector<32x16xf32>
    %584 = arith.subf %580, %583 : vector<32x16xf32>
    %585 = math.exp %584 : vector<32x16xf32>
    %cst_190 = arith.constant dense<0.000000e+00> : vector<32xf32>
    %586 = vector.multi_reduction <add>, %585, %cst_190 [1] : vector<32x16xf32> to vector<32xf32>
    %587 = vector.shape_cast %586 : vector<32xf32> to vector<32x1xf32>
    %588 = vector.broadcast %587 : vector<32x1xf32> to vector<32x16xf32>
    %589 = arith.divf %585, %588 : vector<32x16xf32>
    %cst_191 = arith.constant dense<0.000000e+00> : vector<32x8xf32>
    %590 = tpu.matmul %589, %576, %cst_191 {dimension_numbers = #tpu.dot_dimension_numbers<[1], [0], [0], [1], [0, 0, 1, 1], [], []>} : vector<32x16xf32>, vector<16x8xf32>, vector<32x8xf32> -> vector<32x8xf32>
    %591 = vector.extract_strided_slice %509 {offsets = [24, 0], sizes = [8, 32], strides = [1, 1]} : vector<32x32xf32> to vector<8x32xf32>
    %cst_192 = arith.constant dense<0.000000e+00> : vector<32x32xf32>
    %592 = tpu.matmul %590, %591, %cst_192 {dimension_numbers = #tpu.dot_dimension_numbers<[1], [0], [0], [1], [0, 0, 1, 1], [], []>} : vector<32x8xf32>, vector<8x32xf32>, vector<32x32xf32> -> vector<32x32xf32>
    %593 = arith.addf %573, %592 : vector<32x32xf32>
    %594 = arith.addf %1, %593 : vector<32x32xf32>
    %595 = vector.broadcast %510 : vector<1x32xf32> to vector<32x32xf32>
    %596 = arith.addf %594, %595 : vector<32x32xf32>
    %cst_193 = arith.constant dense<0.000000e+00> : vector<32xf32>
    %597 = vector.multi_reduction <add>, %596, %cst_193 [1] : vector<32x32xf32> to vector<32xf32>
    %598 = vector.shape_cast %597 : vector<32xf32> to vector<32x1xf32>
    %cst_194 = arith.constant 3.200000e+01 : f32
    %599 = vector.broadcast %cst_194 : f32 to vector<32x1xf32>
    %600 = arith.divf %598, %599 : vector<32x1xf32>
    %601 = vector.broadcast %600 : vector<32x1xf32> to vector<32x32xf32>
    %602 = arith.subf %596, %601 : vector<32x32xf32>
    %603 = arith.mulf %602, %602 : vector<32x32xf32>
    %cst_195 = arith.constant dense<0.000000e+00> : vector<32xf32>
    %604 = vector.multi_reduction <add>, %603, %cst_195 [1] : vector<32x32xf32> to vector<32xf32>
    %605 = vector.shape_cast %604 : vector<32xf32> to vector<32x1xf32>
    %cst_196 = arith.constant 3.200000e+01 : f32
    %606 = vector.broadcast %cst_196 : f32 to vector<32x1xf32>
    %607 = arith.divf %605, %606 : vector<32x1xf32>
    %608 = vector.broadcast %600 : vector<32x1xf32> to vector<32x32xf32>
    %609 = arith.subf %596, %608 : vector<32x32xf32>
    %cst_197 = arith.constant 9.99999974E-6 : f32
    %610 = vector.broadcast %cst_197 : f32 to vector<32x1xf32>
    %611 = arith.addf %607, %610 : vector<32x1xf32>
    %612 = math.rsqrt %611 : vector<32x1xf32>
    %613 = vector.broadcast %612 : vector<32x1xf32> to vector<32x32xf32>
    %614 = arith.mulf %609, %613 : vector<32x32xf32>
    %615 = vector.broadcast %511 : vector<1x32xf32> to vector<32x32xf32>
    %616 = arith.mulf %614, %615 : vector<32x32xf32>
    %617 = vector.broadcast %512 : vector<1x32xf32> to vector<32x32xf32>
    %618 = arith.addf %616, %617 : vector<32x32xf32>
    %c4 = arith.constant 4 : index
    %c0_198 = arith.constant 0 : index
    %c0_199 = arith.constant 0 : index
    %619 = vector.load %arg6[%c4, %c0_198, %c0_199] : memref<8x32x32xf32, #tpu.memory_space<vmem>>, vector<1x32x32xf32>
    %620 = vector.shape_cast %619 : vector<1x32x32xf32> to vector<32x32xf32>
    %c5 = arith.constant 5 : index
    %c0_200 = arith.constant 0 : index
    %c0_201 = arith.constant 0 : index
    %621 = vector.load %arg6[%c5, %c0_200, %c0_201] : memref<8x32x32xf32, #tpu.memory_space<vmem>>, vector<1x32x32xf32>
    %622 = vector.shape_cast %621 : vector<1x32x32xf32> to vector<32x32xf32>
    %623 = vector.extract_strided_slice %5 {offsets = [12, 0], sizes = [1, 32], strides = [1, 1]} : vector<20x32xf32> to vector<1x32xf32>
    %c0_202 = arith.constant 0 : index
    %c0_203 = arith.constant 0 : index
    %c0_204 = arith.constant 0 : index
    %624 = vector.load %arg8[%c0_202, %c0_203, %c0_204] : memref<2x32x64xf32, #tpu.memory_space<vmem>>, vector<1x32x64xf32>
    %625 = vector.shape_cast %624 : vector<1x32x64xf32> to vector<32x64xf32>
    %626 = vector.extract_strided_slice %6 {offsets = [0, 0], sizes = [1, 64], strides = [1, 1]} : vector<2x64xf32> to vector<1x64xf32>
    %c0_205 = arith.constant 0 : index
    %c0_206 = arith.constant 0 : index
    %c0_207 = arith.constant 0 : index
    %627 = vector.load %arg10[%c0_205, %c0_206, %c0_207] : memref<2x64x32xf32, #tpu.memory_space<vmem>>, vector<1x64x32xf32>
    %628 = vector.shape_cast %627 : vector<1x64x32xf32> to vector<64x32xf32>
    %629 = vector.extract_strided_slice %5 {offsets = [14, 0], sizes = [1, 32], strides = [1, 1]} : vector<20x32xf32> to vector<1x32xf32>
    %630 = vector.extract_strided_slice %5 {offsets = [16, 0], sizes = [1, 32], strides = [1, 1]} : vector<20x32xf32> to vector<1x32xf32>
    %631 = vector.extract_strided_slice %5 {offsets = [18, 0], sizes = [1, 32], strides = [1, 1]} : vector<20x32xf32> to vector<1x32xf32>
    %cst_208 = arith.constant dense<0.000000e+00> : vector<16x32xf32>
    %632 = tpu.matmul %285, %620, %cst_208 {dimension_numbers = #tpu.dot_dimension_numbers<[1], [0], [0], [1], [0, 0, 1, 1], [], []>} : vector<16x32xf32>, vector<32x32xf32>, vector<16x32xf32> -> vector<16x32xf32>
    %cst_209 = arith.constant dense<0.000000e+00> : vector<16x32xf32>
    %633 = tpu.matmul %507, %622, %cst_209 {dimension_numbers = #tpu.dot_dimension_numbers<[1], [0], [0], [1], [0, 0, 1, 1], [], []>} : vector<16x32xf32>, vector<32x32xf32>, vector<16x32xf32> -> vector<16x32xf32>
    %634 = arith.addf %632, %633 : vector<16x32xf32>
    %635 = vector.broadcast %623 : vector<1x32xf32> to vector<16x32xf32>
    %636 = arith.addf %634, %635 : vector<16x32xf32>
    %637 = arith.negf %636 : vector<16x32xf32>
    %638 = math.exp %637 : vector<16x32xf32>
    %cst_210 = arith.constant 1.000000e+00 : f32
    %639 = vector.broadcast %cst_210 : f32 to vector<16x32xf32>
    %640 = arith.addf %639, %638 : vector<16x32xf32>
    %641 = arith.divf %639, %640 : vector<16x32xf32>
    %642 = arith.mulf %641, %285 : vector<16x32xf32>
    %cst_211 = arith.constant 1.000000e+00 : f32
    %643 = vector.broadcast %cst_211 : f32 to vector<16x32xf32>
    %644 = arith.subf %643, %641 : vector<16x32xf32>
    %645 = arith.mulf %644, %507 : vector<16x32xf32>
    %646 = arith.addf %642, %645 : vector<16x32xf32>
    %cst_212 = arith.constant dense<0.000000e+00> : vector<16x64xf32>
    %647 = tpu.matmul %646, %625, %cst_212 {dimension_numbers = #tpu.dot_dimension_numbers<[1], [0], [0], [1], [0, 0, 1, 1], [], []>} : vector<16x32xf32>, vector<32x64xf32>, vector<16x64xf32> -> vector<16x64xf32>
    %648 = vector.broadcast %626 : vector<1x64xf32> to vector<16x64xf32>
    %649 = arith.addf %647, %648 : vector<16x64xf32>
    %cst_213 = arith.constant 0.000000e+00 : f32
    %650 = vector.broadcast %cst_213 : f32 to vector<16x64xf32>
    %651 = arith.maximumf %649, %650 : vector<16x64xf32>
    %cst_214 = arith.constant dense<0.000000e+00> : vector<16x32xf32>
    %652 = tpu.matmul %651, %628, %cst_214 {dimension_numbers = #tpu.dot_dimension_numbers<[1], [0], [0], [1], [0, 0, 1, 1], [], []>} : vector<16x64xf32>, vector<64x32xf32>, vector<16x32xf32> -> vector<16x32xf32>
    %653 = vector.broadcast %629 : vector<1x32xf32> to vector<16x32xf32>
    %654 = arith.addf %652, %653 : vector<16x32xf32>
    %655 = arith.addf %646, %654 : vector<16x32xf32>
    %cst_215 = arith.constant dense<0.000000e+00> : vector<16xf32>
    %656 = vector.multi_reduction <add>, %655, %cst_215 [1] : vector<16x32xf32> to vector<16xf32>
    %657 = vector.shape_cast %656 : vector<16xf32> to vector<16x1xf32>
    %cst_216 = arith.constant 3.200000e+01 : f32
    %658 = vector.broadcast %cst_216 : f32 to vector<16x1xf32>
    %659 = arith.divf %657, %658 : vector<16x1xf32>
    %660 = vector.broadcast %659 : vector<16x1xf32> to vector<16x32xf32>
    %661 = arith.subf %655, %660 : vector<16x32xf32>
    %662 = arith.mulf %661, %661 : vector<16x32xf32>
    %cst_217 = arith.constant dense<0.000000e+00> : vector<16xf32>
    %663 = vector.multi_reduction <add>, %662, %cst_217 [1] : vector<16x32xf32> to vector<16xf32>
    %664 = vector.shape_cast %663 : vector<16xf32> to vector<16x1xf32>
    %cst_218 = arith.constant 3.200000e+01 : f32
    %665 = vector.broadcast %cst_218 : f32 to vector<16x1xf32>
    %666 = arith.divf %664, %665 : vector<16x1xf32>
    %667 = vector.broadcast %659 : vector<16x1xf32> to vector<16x32xf32>
    %668 = arith.subf %655, %667 : vector<16x32xf32>
    %cst_219 = arith.constant 9.99999974E-6 : f32
    %669 = vector.broadcast %cst_219 : f32 to vector<16x1xf32>
    %670 = arith.addf %666, %669 : vector<16x1xf32>
    %671 = math.rsqrt %670 : vector<16x1xf32>
    %672 = vector.broadcast %671 : vector<16x1xf32> to vector<16x32xf32>
    %673 = arith.mulf %668, %672 : vector<16x32xf32>
    %674 = vector.broadcast %630 : vector<1x32xf32> to vector<16x32xf32>
    %675 = arith.mulf %673, %674 : vector<16x32xf32>
    %676 = vector.broadcast %631 : vector<1x32xf32> to vector<16x32xf32>
    %677 = arith.addf %675, %676 : vector<16x32xf32>
    %c6 = arith.constant 6 : index
    %c0_220 = arith.constant 0 : index
    %c0_221 = arith.constant 0 : index
    %678 = vector.load %arg6[%c6, %c0_220, %c0_221] : memref<8x32x32xf32, #tpu.memory_space<vmem>>, vector<1x32x32xf32>
    %679 = vector.shape_cast %678 : vector<1x32x32xf32> to vector<32x32xf32>
    %c7 = arith.constant 7 : index
    %c0_222 = arith.constant 0 : index
    %c0_223 = arith.constant 0 : index
    %680 = vector.load %arg6[%c7, %c0_222, %c0_223] : memref<8x32x32xf32, #tpu.memory_space<vmem>>, vector<1x32x32xf32>
    %681 = vector.shape_cast %680 : vector<1x32x32xf32> to vector<32x32xf32>
    %682 = vector.extract_strided_slice %5 {offsets = [13, 0], sizes = [1, 32], strides = [1, 1]} : vector<20x32xf32> to vector<1x32xf32>
    %c1_224 = arith.constant 1 : index
    %c0_225 = arith.constant 0 : index
    %c0_226 = arith.constant 0 : index
    %683 = vector.load %arg8[%c1_224, %c0_225, %c0_226] : memref<2x32x64xf32, #tpu.memory_space<vmem>>, vector<1x32x64xf32>
    %684 = vector.shape_cast %683 : vector<1x32x64xf32> to vector<32x64xf32>
    %685 = vector.extract_strided_slice %6 {offsets = [1, 0], sizes = [1, 64], strides = [1, 1]} : vector<2x64xf32> to vector<1x64xf32>
    %c1_227 = arith.constant 1 : index
    %c0_228 = arith.constant 0 : index
    %c0_229 = arith.constant 0 : index
    %686 = vector.load %arg10[%c1_227, %c0_228, %c0_229] : memref<2x64x32xf32, #tpu.memory_space<vmem>>, vector<1x64x32xf32>
    %687 = vector.shape_cast %686 : vector<1x64x32xf32> to vector<64x32xf32>
    %688 = vector.extract_strided_slice %5 {offsets = [15, 0], sizes = [1, 32], strides = [1, 1]} : vector<20x32xf32> to vector<1x32xf32>
    %689 = vector.extract_strided_slice %5 {offsets = [17, 0], sizes = [1, 32], strides = [1, 1]} : vector<20x32xf32> to vector<1x32xf32>
    %690 = vector.extract_strided_slice %5 {offsets = [19, 0], sizes = [1, 32], strides = [1, 1]} : vector<20x32xf32> to vector<1x32xf32>
    %cst_230 = arith.constant dense<0.000000e+00> : vector<32x32xf32>
    %691 = tpu.matmul %396, %679, %cst_230 {dimension_numbers = #tpu.dot_dimension_numbers<[1], [0], [0], [1], [0, 0, 1, 1], [], []>} : vector<32x32xf32>, vector<32x32xf32>, vector<32x32xf32> -> vector<32x32xf32>
    %cst_231 = arith.constant dense<0.000000e+00> : vector<32x32xf32>
    %692 = tpu.matmul %618, %681, %cst_231 {dimension_numbers = #tpu.dot_dimension_numbers<[1], [0], [0], [1], [0, 0, 1, 1], [], []>} : vector<32x32xf32>, vector<32x32xf32>, vector<32x32xf32> -> vector<32x32xf32>
    %693 = arith.addf %691, %692 : vector<32x32xf32>
    %694 = vector.broadcast %682 : vector<1x32xf32> to vector<32x32xf32>
    %695 = arith.addf %693, %694 : vector<32x32xf32>
    %696 = arith.negf %695 : vector<32x32xf32>
    %697 = math.exp %696 : vector<32x32xf32>
    %cst_232 = arith.constant 1.000000e+00 : f32
    %698 = vector.broadcast %cst_232 : f32 to vector<32x32xf32>
    %699 = arith.addf %698, %697 : vector<32x32xf32>
    %700 = arith.divf %698, %699 : vector<32x32xf32>
    %701 = arith.mulf %700, %396 : vector<32x32xf32>
    %cst_233 = arith.constant 1.000000e+00 : f32
    %702 = vector.broadcast %cst_233 : f32 to vector<32x32xf32>
    %703 = arith.subf %702, %700 : vector<32x32xf32>
    %704 = arith.mulf %703, %618 : vector<32x32xf32>
    %705 = arith.addf %701, %704 : vector<32x32xf32>
    %cst_234 = arith.constant dense<0.000000e+00> : vector<32x64xf32>
    %706 = tpu.matmul %705, %684, %cst_234 {dimension_numbers = #tpu.dot_dimension_numbers<[1], [0], [0], [1], [0, 0, 1, 1], [], []>} : vector<32x32xf32>, vector<32x64xf32>, vector<32x64xf32> -> vector<32x64xf32>
    %707 = vector.broadcast %685 : vector<1x64xf32> to vector<32x64xf32>
    %708 = arith.addf %706, %707 : vector<32x64xf32>
    %cst_235 = arith.constant 0.000000e+00 : f32
    %709 = vector.broadcast %cst_235 : f32 to vector<32x64xf32>
    %710 = arith.maximumf %708, %709 : vector<32x64xf32>
    %cst_236 = arith.constant dense<0.000000e+00> : vector<32x32xf32>
    %711 = tpu.matmul %710, %687, %cst_236 {dimension_numbers = #tpu.dot_dimension_numbers<[1], [0], [0], [1], [0, 0, 1, 1], [], []>} : vector<32x64xf32>, vector<64x32xf32>, vector<32x32xf32> -> vector<32x32xf32>
    %712 = vector.broadcast %688 : vector<1x32xf32> to vector<32x32xf32>
    %713 = arith.addf %711, %712 : vector<32x32xf32>
    %714 = arith.addf %705, %713 : vector<32x32xf32>
    %cst_237 = arith.constant dense<0.000000e+00> : vector<32xf32>
    %715 = vector.multi_reduction <add>, %714, %cst_237 [1] : vector<32x32xf32> to vector<32xf32>
    %716 = vector.shape_cast %715 : vector<32xf32> to vector<32x1xf32>
    %cst_238 = arith.constant 3.200000e+01 : f32
    %717 = vector.broadcast %cst_238 : f32 to vector<32x1xf32>
    %718 = arith.divf %716, %717 : vector<32x1xf32>
    %719 = vector.broadcast %718 : vector<32x1xf32> to vector<32x32xf32>
    %720 = arith.subf %714, %719 : vector<32x32xf32>
    %721 = arith.mulf %720, %720 : vector<32x32xf32>
    %cst_239 = arith.constant dense<0.000000e+00> : vector<32xf32>
    %722 = vector.multi_reduction <add>, %721, %cst_239 [1] : vector<32x32xf32> to vector<32xf32>
    %723 = vector.shape_cast %722 : vector<32xf32> to vector<32x1xf32>
    %cst_240 = arith.constant 3.200000e+01 : f32
    %724 = vector.broadcast %cst_240 : f32 to vector<32x1xf32>
    %725 = arith.divf %723, %724 : vector<32x1xf32>
    %726 = vector.broadcast %718 : vector<32x1xf32> to vector<32x32xf32>
    %727 = arith.subf %714, %726 : vector<32x32xf32>
    %cst_241 = arith.constant 9.99999974E-6 : f32
    %728 = vector.broadcast %cst_241 : f32 to vector<32x1xf32>
    %729 = arith.addf %725, %728 : vector<32x1xf32>
    %730 = math.rsqrt %729 : vector<32x1xf32>
    %731 = vector.broadcast %730 : vector<32x1xf32> to vector<32x32xf32>
    %732 = arith.mulf %727, %731 : vector<32x32xf32>
    %733 = vector.broadcast %689 : vector<1x32xf32> to vector<32x32xf32>
    %734 = arith.mulf %732, %733 : vector<32x32xf32>
    %735 = vector.broadcast %690 : vector<1x32xf32> to vector<32x32xf32>
    %736 = arith.addf %734, %735 : vector<32x32xf32>
    %c0_242 = arith.constant 0 : index
    %c0_243 = arith.constant 0 : index
    %737 = vector.load %arg11[%c0_242, %c0_243] : memref<16x32xf32, #tpu.memory_space<vmem>>, vector<16x32xf32>
    tpu.vector_store %arg11[%c0_242, %c0_243], %677 {strides = array<i32>} : memref<16x32xf32, #tpu.memory_space<vmem>>, vector<16x32xf32>,
    %c0_244 = arith.constant 0 : index
    %c0_245 = arith.constant 0 : index
    %738 = vector.load %arg12[%c0_244, %c0_245] : memref<32x32xf32, #tpu.memory_space<vmem>>, vector<32x32xf32>
    tpu.vector_store %arg12[%c0_244, %c0_245], %736 {strides = array<i32>} : memref<32x32xf32, #tpu.memory_space<vmem>>, vector<32x32xf32>,
    return
  }
}

</mosaic_0001>

<bundles_post_ra>
// kernel: co_transformer_layer2.1
= control target key start
LH: loop header
LB: loop body
LE: loop exit
PB: predicated region body
PF: predicated region fallthrough
CT: control target
= control target key end

     0   :  { %18 = vsyncpa [#allocation3], 0  ;;  %s10680_s0 = inlined_call_operand.hbm [shape: f32[16,32], index: 0, kind: input, shape index: {}]   ;;  %s10681_s1 = inlined_call_operand.vmem [shape: f32[32,32], index: 1, kind: input, shape index: {}]   ;;  %s10682_s2 = inlined_call_operand.vmem [shape: f32[1,16], index: 2, kind: input, shape index: {}]   ;;  %s10683_s3 = inlined_call_operand.vmem [shape: f32[1,32], index: 3, kind: input, shape index: {}]   ;;  %s10684_s4 = inlined_call_operand.hbm [shape: f32[2,32,192], index: 4, kind: input, shape index: {}]   ;;  %s10685_s5 = inlined_call_operand.vmem [shape: f32[2,192], index: 5, kind: input, shape index: {}]   ;;  %s10686_s6 = inlined_call_operand.vmem [shape: f32[8,32,32], index: 6, kind: input, shape index: {}]   ;;  %s10687_s7 = inlined_call_operand.hbm [shape: f32[20,32], index: 7, kind: input, shape index: {}]   ;;  %s10688_s8 = inlined_call_operand.hbm [shape: f32[2,32,64], index: 8, kind: input, shape index: {}]   ;;  %s10689_s9 = inlined_call_operand.vmem [shape: f32[2,64], index: 9, kind: input, shape index: {}]   ;;  %s10690_s10 = inlined_call_operand.vmem [shape: f32[2,64,32], index: 10, kind: input, shape index: {}]   ;;  %s10691_s11 = inlined_call_operand.hbm [shape: f32[16,32], index: 11, kind: output, shape index: {0}]   ;;  %s10692_s12 = inlined_call_operand.hbm [shape: f32[32,32], index: 12, kind: output, shape index: {1}]  }
   0x1   :  { %19 = vsyncpa [#allocation6], 0 }
   0x2   :  { %20 = vsyncpa [#allocation9], 0 }
   0x3   :  { %21 = vsyncpa [#allocation4], 0 }
   0x4   :  { %22 = vsyncpa [#allocation12], 0  ;;  %s9187_s21 = smov [#allocation5]   ;;  %s9045_s25 = scalar_lea.hbm %s10684_s4, 2048 }
   0x5   :  { %s46_s22 = sshll.u32 %s9187_s21, 4  ;;  %p9046_p0 = scmp.ne.s32.totalorder %s10684_s4, %s9045_s25  ;;  %s47_s22 = int_to_ptr.vmem [resolvable:$true] %s46_s22 }
   0x6   :  { %p9049_p1 = scmp.lt.u32.totalorder %s9045_s25, %s10684_s4 }
   0x8   :  { %p9051_p2 = pnand %p9049_p1, %p9046_p0 }
   0xa   :  { %9054 = shalt.err (!%p9051_p2)
}
   0xb   :  { %s9055_s30 = scalar_lea.vmem %s47_s22, 2048  ;;  %p9060_p4 = scmp.lt.s32.totalorder %s47_s22, %s47_s22 }
   0xc   :  { %p9056_p3 = scmp.ne.s32.totalorder %s47_s22, %s9055_s30  ;;  %p9061_p5 = scmp.lt.s32.totalorder %s9055_s30, %s9055_s30 }
   0xe   :  { %p9062_p6 = por %p9061_p5, %p9060_p4 }
  0x10   :  { %p9063_p7 = pnand %p9062_p6, %p9056_p3 }
  0x12   :  { %9066 = shalt.err (!%p9063_p7)
}
  0x13   :  { %s9188_s13 = smov 256   ;;  %s9189_s14 = smov 16  }
  0x14   :  { %52 = dma.hbm_to_vmem [thread:$0]  %s10684_s4, 2048, %s47_s22, [#allocation6], %s9188_s13, %s9188_s13, %s9189_s14  }
  0x15   :  { %s9190_s17 = smov [#allocation2]   ;;  %s9067_s21 = scalar_lea.hbm %s10680_s0, 256 }
  0x16   :  { %s28_s18 = sshll.u32 %s9190_s17, 4  ;;  %p9068_p8 = scmp.ne.s32.totalorder %s10680_s0, %s9067_s21  ;;  %s29_s18 = int_to_ptr.vmem [resolvable:$true] %s28_s18 }
  0x17   :  { %p9071_p9 = scmp.lt.u32.totalorder %s9067_s21, %s10680_s0 }
  0x19   :  { %p9073_p10 = pnand %p9071_p9, %p9068_p8 }
  0x1b   :  { %9076 = shalt.err (!%p9073_p10)
}
  0x1c   :  { %s9077_s27 = scalar_lea.vmem %s29_s18, 256  ;;  %p9082_p12 = scmp.lt.s32.totalorder %s29_s18, %s29_s18 }
  0x1d   :  { %p9078_p11 = scmp.ne.s32.totalorder %s29_s18, %s9077_s27  ;;  %p9083_p13 = scmp.lt.s32.totalorder %s9077_s27, %s9077_s27 }
  0x1f   :  { %p9084_p0 = por %p9083_p13, %p9082_p12 }
  0x21   :  { %p9085_p1 = pnand %p9084_p0, %p9078_p11 }
  0x23   :  { %9088 = shalt.err (!%p9085_p1)
}
  0x24   :  { %s9191_s4 = smov 128   ;;  %s9192_s22 = smov 8  }
  0x25   :  { %34 = dma.hbm_to_vmem [thread:$0]  %s10680_s0, 256, %s29_s18, [#allocation3], %s9191_s4, %s9191_s4, %s9192_s22  }
  0x26   :  { %s9193_s30 = smov [#allocation7]   ;;  %s9194_s15 = smov [#allocation8]  }
  0x27   :  { %s62_s13 = sshll.u32 %s9193_s30, 4  ;;  %s74_s16 = sshll.u32 %s9194_s15, 4  ;;  %s63_s13 = int_to_ptr.vmem [resolvable:$true] %s62_s13  ;;  %s9304_s16 = int_to_ptr.vmem [resolvable:$true] %s74_s16 }
  0x28   :  { %s9089_s20 = scalar_lea.hbm %s10687_s7, 384 }
  0x29   :  { %p9090_p2 = scmp.ne.s32.totalorder %s10687_s7, %s9089_s20  ;;  %p9093_p3 = scmp.lt.u32.totalorder %s9089_s20, %s10687_s7 }
  0x2b   :  { %p9095_p4 = pnand %p9093_p3, %p9090_p2 }
  0x2d   :  { %9098 = shalt.err (!%p9095_p4)
}
  0x2e   :  { %s9099_s0 = scalar_lea.vmem %s63_s13, 384  ;;  %p9104_p6 = scmp.lt.s32.totalorder %s63_s13, %s63_s13 }
  0x2f   :  { %p9100_p5 = scmp.ne.s32.totalorder %s63_s13, %s9099_s0  ;;  %p9105_p7 = scmp.lt.s32.totalorder %s9099_s0, %s9099_s0 }
  0x31   :  { %p9106_p8 = por %p9105_p7, %p9104_p6 }
  0x33   :  { %p9107_p9 = pnand %p9106_p8, %p9100_p5 }
  0x35   :  { %9110 = shalt.err (!%p9107_p9)
}
  0x36   :  { %68 = dma.hbm_to_vmem [thread:$0]  %s10687_s7, 384, %s63_s13, [#allocation6], %s9191_s4, %s9191_s4, %s9192_s22  }
  0x37   :  { %s9111_s29 = scalar_lea.hbm %s10688_s8, 1024 }
  0x38   :  { %p9112_p10 = scmp.ne.s32.totalorder %s10688_s8, %s9111_s29  ;;  %p9115_p11 = scmp.lt.u32.totalorder %s9111_s29, %s10688_s8 }
  0x3a   :  { %p9117_p12 = pnand %p9115_p11, %p9112_p10 }
  0x3c   :  { %9120 = shalt.err (!%p9117_p12)
}
  0x3d   :  { %s9121_s20 = scalar_lea.vmem %s9304_s16, 1024  ;;  %p9126_p0 = scmp.lt.s32.totalorder %s9304_s16, %s9304_s16 }
  0x3e   :  { %p9122_p13 = scmp.ne.s32.totalorder %s9304_s16, %s9121_s20  ;;  %p9127_p1 = scmp.lt.s32.totalorder %s9121_s20, %s9121_s20 }
  0x40   :  { %p9128_p2 = por %p9127_p1, %p9126_p0 }
  0x42   :  { %p9129_p3 = pnand %p9128_p2, %p9122_p13 }
  0x44   :  { %9132 = shalt.err (!%p9129_p3)
}
  0x45   :  { %80 = dma.hbm_to_vmem [thread:$0]  %s10688_s8, 1024, %s9304_s16, [#allocation9], %s9191_s4, %s9191_s4, %s9192_s22  }
  0x46   :  { %9177 = dma.done.wait [#allocation3], 256  }
  0x47   :  { %9178 = vsyncadd [#allocation3], 4294967040 }
  0x48   :  { %9179 = dma.done.wait [#allocation6], 2432  }
  0x49   :  { %9180 = vsyncadd [#allocation6], 4294964864 }
  0x4a   :  { %9181 = dma.done.wait [#allocation9], 1024  }
  0x4b   :  { %9182 = vsyncadd [#allocation9], 4294966272  ;;  %v9195_v0 = vmov 0.0   ;;  %v111_v1 = vld [vmem:[#allocation5 + $0x8] sm:$0xff]  ;;  %v113_v2 = vld [vmem:[#allocation5 + $0x18] sm:$0xff]  ;;  %vm137_vm0 = vcmask 261120   ;;  %v119_v31 = vlaneseq }
  0x4c   :  { %208 = vmatprep.mubr.f32.mxu1 %v9195_v0  ;;  %v110_v3 = vld [vmem:[#allocation5] sm:$0xff]  ;;  %v8156_v4 = vpack.c.bf16 %v113_v2, %v111_v1  ;;  %v112_v5 = vld [vmem:[#allocation5 + $0x10] sm:$0xff]  ;;  %v115_v6 = vld [vmem:[#allocation5 + $0x28] sm:$0xff]  ;;  %vm450_vm1 = vcmask 64512   ;;  %s9197_s28 = smov 96   ;;  %s9198_s29 = smov 112  }
  0x4d   :  { %v117_v7 = vld [vmem:[#allocation5 + $0x38] sm:$0xff]  ;;  %v8158_v8 = vpack.c.bf16 %v112_v5, %v110_v3  ;;  %v114_v10 = vld [vmem:[#allocation5 + $0x20] sm:$0xff]  ;;  %v116_v11 = vld [vmem:[#allocation5 + $0x30] sm:$0xff]  ;;  %v9360_v32 = vshrl.u32 %v119_v31, 7  ;;  %s9199_s30 = smov 88   ;;  %s9200_s15 = smov 80  }
  0x4e   :  { %v8160_v9 = vpack.c.bf16 %v117_v7, %v115_v6  ;;  %8157 = vmatprep.subr.bf16.mxu1 %v8156_v4  ;;  %v8162_v12 = vpack.c.bf16 %v116_v11, %v114_v10  ;;  %v97_v13 = vld [vmem:[#allocation2] sm:$0xff]  ;;  %v98_v14 = vld [vmem:[#allocation2 + $0x8] sm:$0xff]  ;;  %v223_v15 = vld [vmem:[#allocation5 + $0x48] sm:$0xff]  ;;  %vm538_vm5 = vcmask 130048   ;;  %s9201_s20 = smov 56   ;;  %s9202_s7 = smov 72  }
  0x4f   :  { %8159 = vmatpush1.bf16.msra.mxu1 %v8158_v8  ;;  %v225_v16 = vld [vmem:[#allocation5 + $0x58] sm:$0xff]  ;;  %v222_v17 = vld [vmem:[#allocation5 + $0x40] sm:$0xff]  ;;  %v224_v19 = vld [vmem:[#allocation5 + $0x50] sm:$0xff]  ;;  %v9363_v33 = vsub.s32 0, %v9360_v32  ;;  %v9373_v36 = vsub.s32 2, %v9360_v32  ;;  %v9408_v51 = vsub.s32 1, %v9360_v32 }
  0x50   :  { %8161 = vmatprep.subr.bf16.mxu1 %v8160_v9  ;;  %v8164_v18 = vpack.c.bf16 %v225_v16, %v223_v15  ;;  %v227_v20 = vld [vmem:[#allocation5 + $0x68] sm:$0xff]  ;;  %v229_v21 = vld [vmem:[#allocation5 + $0x78] sm:$0xff]  ;;  %v8166_v22 = vpack.c.bf16 %v224_v19, %v222_v17  ;;  %v226_v24 = vld [vmem:[#allocation5 + $0x60] sm:$0xff]  ;;  %v9450_v17 = vsub.s32 3, %v9360_v32  ;;  %s9203_s13 = smov 64   ;;  %s9204_s8 = smov 104  }
  0x51   :  { %v8168_v23 = vpack.c.bf16 %v229_v21, %v227_v20  ;;  %v228_v25 = vld [vmem:[#allocation5 + $0x70] sm:$0xff]  ;;  %v100_v28 = vld [vmem:[%s10681_s1 + $0x8] sm:$0xff]  ;;  %v101_v29 = vld [vmem:[%s10681_s1 + $0x10] sm:$0xff]  ;;  %s9205_s16 = smov 48   ;;  %s9206_s26 = smov 40   ;;  %vm6307_vm8 = vcmask 523264  }
  0x52   :  { %v8170_v26 = vpack.c.bf16 %v228_v25, %v226_v24  ;;  %v99_v27 = vld [vmem:[%s10681_s1] sm:$0xff]  ;;  %v102_v30 = vld [vmem:[%s10681_s1 + $0x18] sm:$0xff]  ;;  %vm9426_vm2 = vmpackc.low %vm450_vm1, %vm450_vm1  ;;  %s9207_s24 = smov 32   ;;  %s9208_s25 = smov 24  }
  0x53   :  { %8163 = vmatpush1.bf16.msra.mxu1 %v8162_v12  ;;  %v9368_v34 = vld [vmem:[%s10685_s5] sm:$0xf]  ;;  %s9196_s5 = smov 120  }
  0x54   :  { %8165 = vmatprep.subr.bf16.mxu1 %v8164_v18  ;;  %v122_v35 = vrot.slane %v9368_v34, %v9363_v33  ;;  %v126_v38 = vrot.slane %v9368_v34, %v9373_v36  ;;  %v233_v52 = vrot.slane %v9368_v34, %v9408_v51  ;;  %v237_v18 = vrot.slane %v9368_v34, %v9450_v17 }
  0x56   :  { %7014 = vmatmul.mubr.msk.f32.vlgmr.msra.gmra.mrb[0].mxu1 %vm137_vm0, %v97_v13  ;;  %v132_v37 = vrot.slane %v122_v35, %v9363_v33  ;;  %v136_v42 = vrot.slane %v126_v38, %v9363_v33  ;;  %v9413_v53 = vrot.slane %v233_v52, %v9408_v51  ;;  %v247_v19 = vrot.slane %v237_v18, %v9408_v51 }
  0x57   :  { %214 = vmatprep.mubr.f32.mxu1 %v9195_v0  ;;  %8167 = vmatpush1.bf16.msra.mxu1 %v8166_v22  ;;  %v356_v35 = vand.u32 1, %v9360_v32 }
  0x58   :  { %8169 = vmatprep.subr.bf16.mxu1 %v8168_v23 }
  0x5a   :  { %7015 = vmatmul.mubr.msk.f32.gmra.mrb[2].mxu1 %vm137_vm0, %v98_v14 }
  0x5b   :  { %324 = vmatprep.mubr.f32.mxu1 %v9195_v0  ;;  %8171 = vmatpush1.bf16.msra.mxu1 %v8170_v26 }
  0x5e   :  { %7016 = vmatmul.mubr.msk.f32.vlgmr.msra.gmra.mrb[4].mxu1 %vm137_vm0, %v99_v27 }
  0x5f   :  { %330 = vmatprep.mubr.f32.mxu1 %v9195_v0 }
  0x62   :  { %7017 = vmatmul.mubr.msk.f32.gmra.mrb[6].mxu1 %vm137_vm0, %v100_v28  ;;  %v351_v28 = vadd.s32 8, %v9360_v32 }
  0x63   :  { %336 = vmatprep.mubr.f32.mxu1 %v9195_v0 }
  0x66   :  { %7018 = vmatmul.mubr.msk.f32.gmra.mrb[8].mxu1 %vm137_vm0, %v101_v29  ;;  %v377_v29 = vand.u32 127, %v119_v31 }
  0x67   :  { %342 = vmatprep.mubr.f32.mxu1 %v9195_v0 }
  0x68   :  { %v9465_v34 = vand.u32 1, %v377_v29 }
  0x6a   :  { %7019 = vmatmul.mubr.msk.f32.gmra.mrb[10].mxu1 %vm137_vm0, %v102_v30  ;;  %v363_v30 = vand.u32 1, %v351_v28  ;;  %vm9477_vm4 = vcmp.eq.s32.totalorder %v356_v35, %v9465_v34 }
  0x6c   :  { %vm9472_vm3 = vcmp.eq.s32.totalorder %v363_v30, %v9465_v34 }
 0x129   :  { %v210_v39 = vpop.f32.mrb[0].mxu1 }
 0x12a   :  { %v9378_v40 = vadd.f32 %v210_v39, %v132_v37  ;;  %v212_v41 = vpop.f32.mrb[1].mxu1 }
 0x12b   :  { %v213_v47 = vadd.f32 %v212_v41, %v136_v42 }
 0x12c   :  { %648 = vrot.lane.b32.xlu1 %v9378_v40, %s9196_s5  ;;  %7604 = vmatprep.mubr.msk.f32.mxu0 %vm450_vm1, %v9378_v40 }
 0x12d   :  { %v216_v43 = vpop.f32.mrb[2].mxu1 }
 0x12e   :  { %v9385_v44 = vadd.f32 %v216_v43, %v132_v37  ;;  %v218_v45 = vpop.f32.mrb[3].mxu1  ;;  %v7020_v37 = vld [vmem:[%s10682_s2] ss:$0 sm:$0xff] }
 0x12f   :  { %v219_v46 = vadd.f32 %v218_v45, %v136_v42  ;;  %v9483_v41 = vsel %vm9472_vm3, %v7020_v37, -1e+30  ;;  %v9487_v45 = vsel %vm9477_vm4, %v7020_v37, -1e+30 }
 0x130   :  { %650 = vrot.lane.b32.xlu1 %v9385_v44, %s9196_s5  ;;  %v9391_v48 = vpack.i.bf16 %v9385_v44, %v9378_v40 }
 0x131   :  { %v9395_v49 = vpack.i.bf16 %v219_v46, %v213_v47  ;;  %v9397_v50 = vpack.c.bf16 %v219_v46, %v213_v47  ;;  %v326_v54 = vpop.f32.mrb[4].mxu1 }
 0x132   :  { %8559 = vrot.lane.b32.xlu0 %v9391_v48, %s9197_s28  ;;  %v9416_v55 = vadd.f32 %v326_v54, %v9413_v53  ;;  %v328_v56 = vpop.f32.mrb[5].mxu1 }
 0x133   :  { %v329_v20 = vadd.f32 %v328_v56, %v247_v19 }
 0x134   :  { %1014 = vrot.lane.b32.xlu1 %v9378_v40, %s9198_s29 }
 0x135   :  { %v332_v58 = vpop.f32.mrb[6].mxu1 }
 0x136   :  { %8564 = vrot.lane.b32.xlu0 %v9391_v48, %s9199_s30  ;;  %v9420_v59 = vadd.f32 %v332_v58, %v9413_v53  ;;  %v334_v60 = vpop.f32.mrb[7].mxu1 }
 0x137   :  { %v335_v21 = vadd.f32 %v334_v60, %v247_v19 }
 0x139   :  { %v9422_v62 = vpop.f32.mrb[8].mxu1  ;;  %v9455_v22 = vpack.c.bf16 %v335_v21, %v329_v20  ;;  %v9457_v23 = vpack.i.bf16 %v335_v21, %v329_v20 }
 0x13a   :  { %8569 = vrot.lane.b32.xlu0 %v9391_v48, %s9200_s15  ;;  %v340_v1 = vpop.f32.mrb[9].mxu1 }
 0x13b   :  { %v341_v24 = vadd.f32 %v340_v1, %v247_v19 }
 0x13d   :  { %v9430_v5 = vpop.f32.mrb[10].mxu1 }
 0x13e   :  { %1016 = vrot.lane.b32.xlu0 %v9385_v44, %s9198_s29  ;;  %v346_v8 = vpop.f32.mrb[11].mxu1 }
 0x13f   :  { %v347_v25 = vadd.f32 %v346_v8, %v247_v19 }
 0x141   :  { %v9459_v26 = vpack.c.bf16 %v347_v25, %v341_v24  ;;  %v9461_v27 = vpack.i.bf16 %v347_v25, %v341_v24 }
 0x19e   :  { %v649_v57 = vpop.permute.xlu1 %648 }
 0x19f   :  { %7618 = vmatprep.mubr.msk.f32.mxu1 %vm450_vm1, %v649_v57 }
 0x1a2   :  { %v651_v13 = vpop.permute.xlu1 %650 }
 0x1a4   :  { %v8560_v61 = vpop.permute.xlu0 %8559 }
 0x1a5   :  { %v8562_v63 = vunpack.i.h.bf16 %v8560_v61  ;;  %v8561_v0 = vunpack.i.l.bf16 %v8560_v61 }
 0x1a6   :  { %v1015_v15 = vpop.permute.xlu1 %1014 }
 0x1a7   :  { %v8172_v3 = vpack.c.bf16 %v8562_v63, %v8561_v0 }
 0x1a8   :  { %v8565_v4 = vpop.permute.xlu0 %8564 }
 0x1a9   :  { %v8567_v6 = vunpack.i.h.bf16 %v8565_v4  ;;  %v8566_v7 = vunpack.i.l.bf16 %v8565_v4  ;;  %8174 = vmatprep.subr.msk.bf16.mxu0 %vm9426_vm2, %v8172_v3 }
 0x1aa   :  { %8177 = vmatpush3.bf16.xpose.msk.msra.mxu0 %vm9426_vm2, %v8172_v3 }
 0x1ab   :  { %v8182_v9 = vpack.c.bf16 %v8567_v6, %v8566_v7 }
 0x1ac   :  { %v8570_v10 = vpop.permute.xlu0 %8569 }
 0x1ad   :  { %v8572_v11 = vunpack.i.h.bf16 %v8570_v10  ;;  %v8571_v12 = vunpack.i.l.bf16 %v8570_v10  ;;  %8184 = vmatprep.subr.msk.bf16.mxu1 %vm9426_vm2, %v8182_v9 }
 0x1ae   :  { %8187 = vmatpush3.bf16.xpose.msk.msra.mxu1 %vm9426_vm2, %v8182_v9 }
 0x1af   :  { %v8192_v14 = vpack.c.bf16 %v8572_v11, %v8571_v12 }
 0x1b0   :  { %v1017_v16 = vpop.permute.xlu0 %1016 }
 0x1b1   :  { %7605 = vmatmul.mubr.msk.f32.vlgmr.msra.gmra.mrb[0].mxu0 %vm450_vm1, %v9385_v44  ;;  %8194 = vmatprep.subr.msk.bf16.mxu1 %vm9426_vm2, %v8192_v14 }
 0x1b5   :  { %7619 = vmatmul.mubr.msk.f32.vlgmr.msra.gmra.mrb[12].mxu1 %vm450_vm1, %v651_v13 }
 0x1b6   :  { %8197 = vmatpush3.bf16.xpose.msk.msra.mxu1 %vm9426_vm2, %v8192_v14  ;;  %7642 = vmatprep.mubr.msk.f32.mxu1 %vm450_vm1, %v1015_v15 }
 0x1bd   :  { %7643 = vmatmul.mubr.msk.f32.vlgmr.msra.gmra.mrb[14].mxu1 %vm450_vm1, %v1017_v16 }
 0x284   :  { %v7606_v31 = vpop.f32.mrb[0].mxu0 }
 0x285   :  { %v535_v42 = vmul.f32 0.35355338, %v7606_v31  ;;  %v525_v43 = vpop.f32.mrb[1].mxu0 }
 0x286   :  { %v534_v46 = vmul.f32 0.35355338, %v525_v43 }
 0x287   :  { %v537_v47 = vadd.f32 %v535_v42, %v9483_v41 }
 0x288   :  { %v7620_v52 = vpop.f32.mrb[12].mxu1  ;;  %v536_v54 = vadd.f32 %v534_v46, %v9487_v45 }
 0x289   :  { %v740_v56 = vmul.f32 0.35355338, %v7620_v52  ;;  %v730_v57 = vpop.f32.mrb[13].mxu1  ;;  %v542_v58 = vsel %vm538_vm5, %v537_v47, -inf  ;;  %v9523_v52 = vadd.f32 %v9422_v62, %v9413_v53 }
 0x28a   :  { %v739_v60 = vmul.f32 0.35355338, %v730_v57  ;;  %543 = vmax.xlane.f32.xlu0 %v542_v58  ;;  %v539_v61 = vsel %vm538_vm5, %v536_v54, -inf }
 0x28b   :  { %540 = vmax.xlane.f32.xlu1 %v539_v61  ;;  %v742_v63 = vadd.f32 %v740_v56, %v9483_v41 }
 0x28c   :  { %v741_v0 = vadd.f32 %v739_v60, %v9487_v45 }
 0x28d   :  { %v746_v1 = vsel %vm538_vm5, %v742_v63, -inf }
 0x28e   :  { %v743_v3 = vsel %vm538_vm5, %v741_v0, -inf }
 0x28f   :  { %744 = vmax.xlane.f32.xlu0 %v743_v3  ;;  %747 = vmax.xlane.f32.xlu1 %v746_v1 }
 0x290   :  { %v7644_v4 = vpop.f32.mrb[14].mxu1 }
 0x291   :  { %v1096_v6 = vpop.f32.mrb[15].mxu1  ;;  %v1106_v42 = vmul.f32 0.35355338, %v7644_v4 }
 0x292   :  { %v1105_v37 = vmul.f32 0.35355338, %v1096_v6 }
 0x293   :  { %v1108_v46 = vadd.f32 %v1106_v42, %v9483_v41 }
 0x294   :  { %v1107_v31 = vadd.f32 %v1105_v37, %v9487_v45 }
 0x296   :  { %v1109_v43 = vsel %vm538_vm5, %v1107_v31, -inf }
 0x317   :  { %v544_v7 = vpop.xlane.xlu0 %543 }
 0x318   :  { %v546_v8 = vsub.f32 %v537_v47, %v544_v7  ;;  %v541_v9 = vpop.xlane.xlu1 %540  ;;  %v1112_v47 = vsel %vm538_vm5, %v1108_v46, -inf }
 0x319   :  { %v545_v10 = vsub.f32 %v536_v54, %v541_v9  ;;  %v9527_v54 = vadd.f32 %v9430_v5, %v9413_v53 }
 0x31a   :  { %v549_v11 = vmul.f32 1.442695, %v546_v8 }
 0x31b   :  { %v547_v12 = vmul.f32 1.442695, %v545_v10  ;;  %v9533_v56 = vpack.i.bf16 %v9527_v54, %v9523_v52 }
 0x31c   :  { %8783 = vpow2.f32 %v549_v11  ;;  %v745_v13 = vpop.xlane.xlu0 %744  ;;  %v748_v14 = vpop.xlane.xlu1 %747 }
 0x31d   :  { %8785 = vpow2.f32 %v547_v12  ;;  %v749_v15 = vsub.f32 %v741_v0, %v745_v13  ;;  %v750_v16 = vsub.f32 %v742_v63, %v748_v14 }
 0x31f   :  { %v751_v18 = vmul.f32 1.442695, %v749_v15  ;;  %v753_v19 = vmul.f32 1.442695, %v750_v16 }
 0x321   :  { %8787 = vpow2.f32 %v751_v18 }
 0x322   :  { %8789 = vpow2.f32 %v753_v19 }
 0x326   :  { %v9497_v20 = vpop.eup %8783 }
 0x327   :  { %v8786_v21 = vpop.eup %8785  ;;  %v554_v24 = vsel %vm538_vm5, %v9497_v20, 0.0 }
 0x328   :  { %555 = vadd.xlane.f32.xlu1 %v554_v24  ;;  %v551_v25 = vsel %vm538_vm5, %v8786_v21, 0.0 }
 0x329   :  { %552 = vadd.xlane.f32.xlu0 %v551_v25 }
 0x32b   :  { %v8788_v28 = vpop.eup %8787 }
 0x32c   :  { %v9502_v29 = vpop.eup %8789  ;;  %v755_v30 = vsel %vm538_vm5, %v8788_v28, 0.0 }
 0x32d   :  { %756 = vadd.xlane.f32.xlu0 %v755_v30  ;;  %v758_v35 = vsel %vm538_vm5, %v9502_v29, 0.0 }
 0x32e   :  { %759 = vadd.xlane.f32.xlu1 %v758_v35 }
 0x33f   :  { %8579 = vrot.lane.b32.xlu1 %v9391_v48, %s9201_s20 }
 0x343   :  { %8584 = vrot.lane.b32.xlu1 %v9391_v48, %s9202_s7  ;;  %8574 = vrot.lane.b32.xlu0 %v9391_v48, %s9203_s13 }
 0x347   :  { %1303 = vrot.lane.b32.xlu1 %v9385_v44, %s9204_s8  ;;  %1301 = vrot.lane.b32.xlu0 %v9378_v40, %s9204_s8 }
 0x366   :  { %1110 = vmax.xlane.f32.xlu0 %v1109_v43 }
 0x36b   :  { %1113 = vmax.xlane.f32.xlu1 %v1112_v47  ;;  %v9555_v47 = vpack.i.bf16 %v9420_v59, %v9416_v55 }
 0x37c   :  { %8589 = vrot.lane.b32.xlu1 %v9391_v48, %s9205_s16 }
 0x380   :  { %8599 = vrot.lane.b32.xlu1 %v9533_v56, %s9197_s28 }
 0x3b5   :  { %v556_v57 = vpop.xlane.xlu1 %555 }
 0x3b6   :  { %v553_v58 = vpop.xlane.xlu0 %552 }
 0x3b7   :  { %8791 = vrcp.f32 %v553_v58 }
 0x3b8   :  { %8793 = vrcp.f32 %v556_v57 }
 0x3ba   :  { %v757_v62 = vpop.xlane.xlu0 %756 }
 0x3bb   :  { %8795 = vrcp.f32 %v757_v62  ;;  %v760_v60 = vpop.xlane.xlu1 %759 }
 0x3bc   :  { %8797 = vrcp.f32 %v760_v60 }
 0x3be   :  { %v8575_v53 = vpop.permute.xlu0 %8574 }
 0x3bf   :  { %v8577_v5 = vunpack.i.h.bf16 %v8575_v53  ;;  %v8576_v61 = vunpack.i.l.bf16 %v8575_v53  ;;  %v8580_v63 = vpop.permute.xlu1 %8579 }
 0x3c0   :  { %v8582_v0 = vunpack.i.h.bf16 %v8580_v63  ;;  %v8581_v1 = vunpack.i.l.bf16 %v8580_v63 }
 0x3c1   :  { %v8792_v3 = vpop.eup %8791  ;;  %v8178_v4 = vpack.c.bf16 %v8577_v5, %v8576_v61 }
 0x3c2   :  { %v8794_v6 = vpop.eup %8793  ;;  %v1302_v7 = vpop.permute.xlu0 %1301  ;;  %v558_v8 = vmul.f32 %v8792_v3, %v8786_v21  ;;  %v8188_v10 = vpack.c.bf16 %v8582_v0, %v8581_v1 }
 0x3c3   :  { %v8585_v9 = vpop.permute.xlu1 %8584  ;;  %8179 = vmatprep.subr.bf16.mxu0 %v8178_v4  ;;  %7661 = vmatprep.mubr.msk.f32.mxu1 %vm450_vm1, %v1302_v7  ;;  %v560_v14 = vmul.f32 %v8794_v6, %v9497_v20 }
 0x3c4   :  { %v8587_v11 = vunpack.i.h.bf16 %v8585_v9  ;;  %v8586_v12 = vunpack.i.l.bf16 %v8585_v9  ;;  %8181 = vmatpush3.bf16.msra.mxu0 %v8178_v4  ;;  %7611 = vmatprep.mubr.msk.f32.mxu0 %vm538_vm5, %v558_v8 }
 0x3c5   :  { %v8796_v13 = vpop.eup %8795  ;;  %8189 = vmatprep.subr.bf16.mxu0 %v8188_v10 }
 0x3c6   :  { %v8798_v15 = vpop.eup %8797  ;;  %v8202_v16 = vpack.c.bf16 %v8587_v11, %v8586_v12  ;;  %v762_v18 = vmul.f32 %v8796_v13, %v8788_v28 }
 0x3c7   :  { %7612 = vmatmul.mubr.msk.f32.vlgmr.msra.gmra.mrb[2].mxu0 %vm538_vm5, %v560_v14  ;;  %v764_v19 = vmul.f32 %v8798_v15, %v9502_v29  ;;  %v1304_v21 = vpop.permute.xlu1 %1303 }
 0x3c8   :  { %8204 = vmatprep.subr.msk.bf16.mxu1 %vm9426_vm2, %v8202_v16  ;;  %8191 = vmatpush3.bf16.msra.mxu0 %v8188_v10 }
 0x3c9   :  { %7625 = vmatprep.mubr.msk.f32.mxu0 %vm538_vm5, %v762_v18  ;;  %8207 = vmatpush3.bf16.xpose.msk.msra.mxu1 %vm9426_vm2, %v8202_v16 }
 0x3cb   :  { %7626 = vmatmul.mubr.msk.f32.vlgmr.msra.gmra.mrb[4].mxu0 %vm538_vm5, %v764_v19 }
 0x3d0   :  { %7662 = vmatmul.mubr.msk.f32.vlgmr.msra.gmra.mrb[16].mxu1 %vm450_vm1, %v1304_v21 }
 0x3d1   :  { %7684 = vmatprep.mubr.msk.f32.mxu1 %vm450_vm1, %v9416_v55 }
 0x3f3   :  { %v1111_v20 = vpop.xlane.xlu0 %1110 }
 0x3f4   :  { %v1115_v24 = vsub.f32 %v1107_v31, %v1111_v20  ;;  %v441_v31 = vld [vmem:[%s10686_s6 + $0x8] sm:$0xff] }
 0x3f5   :  { %7628 = vmatprep.subr.mxu0 %v441_v31 }
 0x3f6   :  { %v1117_v25 = vmul.f32 1.442695, %v1115_v24  ;;  %7629 = vmatpush3.msra.mxu0 %v441_v31 }
 0x3f8   :  { %8799 = vpow2.f32 %v1117_v25  ;;  %v1114_v28 = vpop.xlane.xlu1 %1113 }
 0x3f9   :  { %v1116_v30 = vsub.f32 %v1108_v46, %v1114_v28  ;;  %v440_v46 = vld [vmem:[%s10686_s6] sm:$0xff] }
 0x3fa   :  { %7633 = vmatprep.subr.mxu0 %v440_v46 }
 0x3fb   :  { %v1119_v35 = vmul.f32 1.442695, %v1116_v30  ;;  %v442_v30 = vld [vmem:[%s10686_s6 + $0x10] sm:$0xff] }
 0x3fc   :  { %v8590_v58 = vpop.permute.xlu1 %8589 }
 0x3fd   :  { %8801 = vpow2.f32 %v1119_v35  ;;  %v8592_v4 = vunpack.i.h.bf16 %v8590_v58  ;;  %v8591_v6 = vunpack.i.l.bf16 %v8590_v58 }
 0x3ff   :  { %v8198_v11 = vpack.c.bf16 %v8592_v4, %v8591_v6 }
 0x400   :  { %v8600_v60 = vpop.permute.xlu1 %8599 }
 0x401   :  { %v8602_v61 = vunpack.i.h.bf16 %v8600_v60  ;;  %v8601_v63 = vunpack.i.l.bf16 %v8600_v60  ;;  %v400_v60 = vadd.s32 16, %v9360_v32 }
 0x402   :  { %v8800_v37 = vpop.eup %8799 }
 0x403   :  { %v1121_v42 = vsel %vm538_vm5, %v8800_v37, 0.0  ;;  %v8218_v9 = vpack.c.bf16 %v8602_v61, %v8601_v63 }
 0x404   :  { %1122 = vadd.xlane.f32.xlu0 %v1121_v42 }
 0x407   :  { %v8802_v29 = vpop.eup %8801 }
 0x408   :  { %v1124_v43 = vsel %vm538_vm5, %v8802_v29, 0.0 }
 0x409   :  { %1125 = vadd.xlane.f32.xlu0 %v1124_v43 }
 0x41f   :  { %8594 = vrot.lane.b32.xlu0 %v9555_v47, %s9197_s28 }
 0x491   :  { %v1123_v57 = vpop.xlane.xlu0 %1122 }
 0x492   :  { %8803 = vrcp.f32 %v1123_v57 }
 0x496   :  { %v1126_v62 = vpop.xlane.xlu0 %1125 }
 0x497   :  { %8805 = vrcp.f32 %v1126_v62 }
 0x49a   :  { %v8595_v53 = vpop.permute.xlu0 %8594  ;;  %v7613_v5 = vpop.f32.mrb[2].mxu0 }
 0x49b   :  { %v8597_v0 = vunpack.i.h.bf16 %v8595_v53  ;;  %v8596_v1 = vunpack.i.l.bf16 %v8595_v53  ;;  %v639_v3 = vpop.f32.mrb[3].mxu0 }
 0x49c   :  { %v8804_v16 = vpop.eup %8803 }
 0x49d   :  { %v8212_v7 = vpack.c.bf16 %v8597_v0, %v8596_v1  ;;  %v1128_v25 = vmul.f32 %v8804_v16, %v8800_v37  ;;  %v406_v0 = vand.u32 1, %v400_v60  ;;  %v401_v1 = vadd.s32 24, %v9360_v32 }
 0x49e   :  { %v7627_v8 = vpop.f32.mrb[4].mxu0 }
 0x49f   :  { %8214 = vmatprep.subr.msk.bf16.mxu1 %vm9426_vm2, %v8212_v7  ;;  %v843_v10 = vpop.f32.mrb[5].mxu0  ;;  %vm9613_vm6 = vcmp.eq.s32.totalorder %v406_v0, %v9465_v34 }
 0x4a0   :  { %8217 = vmatpush3.bf16.xpose.msk.msra.mxu1 %vm9426_vm2, %v8212_v7  ;;  %7630 = vmatprep.mubr.msk.f32.mxu0 %vm450_vm1, %v843_v10 }
 0x4a1   :  { %8220 = vmatprep.subr.msk.bf16.mxu1 %vm9426_vm2, %v8218_v9  ;;  %7631 = vmatmul.mubr.msk.f32.vlgmr.msra.gmra.mrb[6].mxu0 %vm450_vm1, %v7627_v8  ;;  %v8806_v21 = vpop.eup %8805 }
 0x4a2   :  { %7634 = vmatpush3.msra.mxu0 %v440_v46  ;;  %7635 = vmatprep.mubr.msk.f32.mxu0 %vm450_vm1, %v639_v3  ;;  %v1130_v28 = vmul.f32 %v8806_v21, %v8802_v29 }
 0x4a3   :  { %8199 = vmatprep.subr.bf16.mxu0 %v8198_v11  ;;  %v7663_v12 = vpop.f32.mrb[16].mxu1 }
 0x4a4   :  { %v1393_v13 = vmul.f32 0.35355338, %v7663_v12  ;;  %v1383_v14 = vpop.f32.mrb[17].mxu1 }
 0x4a5   :  { %v1392_v15 = vmul.f32 0.35355338, %v1383_v14 }
 0x4a6   :  { %v1395_v18 = vadd.f32 %v1393_v13, %v9483_v41 }
 0x4a7   :  { %v1394_v19 = vadd.f32 %v1392_v15, %v9487_v45 }
 0x4a8   :  { %8223 = vmatpush3.bf16.xpose.msk.msra.mxu1 %vm9426_vm2, %v8218_v9  ;;  %v1399_v20 = vsel %vm538_vm5, %v1395_v18, -inf }
 0x4a9   :  { %1400 = vmax.xlane.f32.xlu0 %v1399_v20  ;;  %v1396_v24 = vsel %vm538_vm5, %v1394_v19, -inf  ;;  %7636 = vmatmul.mubr.msk.f32.vlgmr.msra.gmra.mrb[6].mxu0 %vm450_vm1, %v7613_v5  ;;  %v7021_v5 = vld [vmem:[%s10683_s3] ss:$0 sm:$0xff] }
 0x4aa   :  { %1397 = vmax.xlane.f32.xlu1 %v1396_v24  ;;  %8201 = vmatpush3.bf16.msra.mxu0 %v8198_v11  ;;  %v9609_v7 = vsel %vm9472_vm3, %v7021_v5, -1e+30  ;;  %v413_v11 = vand.u32 1, %v401_v1  ;;  %v9621_v38 = vsel %vm9613_vm6, %v7021_v5, -1e+30 }
 0x4ab   :  { %7649 = vmatprep.mubr.msk.f32.mxu0 %vm538_vm5, %v1128_v25  ;;  %7652 = vmatprep.subr.mxu0 %v442_v30 }
 0x4ac   :  { %vm9624_vm7 = vcmp.eq.s32.totalorder %v413_v11, %v9465_v34 }
 0x4ad   :  { %7650 = vmatmul.mubr.msk.f32.vlgmr.msra.gmra.mrb[8].mxu0 %vm538_vm5, %v1130_v28  ;;  %v9632_v21 = vsel %vm9624_vm7, %v7021_v5, -1e+30 }
 0x4ae   :  { %7653 = vmatpush3.msra.mxu0 %v442_v30 }
 0x4af   :  { %7685 = vmatmul.mubr.msk.f32.vlgmr.msra.gmra.mrb[18].mxu1 %vm450_vm1, %v9420_v59 }
 0x4b0   :  { %7687 = vmatprep.mubr.msk.f32.mxu1 %vm450_vm1, %v9523_v52 }
 0x4b3   :  { %7688 = vmatmul.mubr.msk.f32.gmra.mrb[20].mxu1 %vm450_vm1, %v9527_v54 }
 0x536   :  { %v1401_v35 = vpop.xlane.xlu0 %1400 }
 0x537   :  { %v1403_v37 = vsub.f32 %v1395_v18, %v1401_v35  ;;  %v1398_v42 = vpop.xlane.xlu1 %1397 }
 0x538   :  { %v1402_v29 = vsub.f32 %v1394_v19, %v1398_v42 }
 0x539   :  { %v1406_v43 = vmul.f32 1.442695, %v1403_v37 }
 0x53a   :  { %v1404_v31 = vmul.f32 1.442695, %v1402_v29  ;;  %v443_v29 = vld [vmem:[%s10686_s6 + $0x18] sm:$0xff] }
 0x53b   :  { %8807 = vpow2.f32 %v1406_v43 }
 0x53c   :  { %8809 = vpow2.f32 %v1404_v31 }
 0x545   :  { %v8808_v46 = vpop.eup %8807 }
 0x546   :  { %v8810_v57 = vpop.eup %8809  ;;  %v1411_v58 = vsel %vm538_vm5, %v8808_v46, 0.0 }
 0x547   :  { %1412 = vadd.xlane.f32.xlu1 %v1411_v58  ;;  %v1408_v62 = vsel %vm538_vm5, %v8810_v57, 0.0 }
 0x548   :  { %1409 = vadd.xlane.f32.xlu0 %v1408_v62 }
 0x55e   :  { %8604 = vrot.lane.b32.xlu0 %v9391_v48, %s9206_s26  ;;  %v9605_v48 = vsel %vm9477_vm4, %v7021_v5, -1e+30 }
 0x580   :  { %v7651_v53 = vpop.f32.mrb[8].mxu0 }
 0x581   :  { %v1209_v61 = vpop.f32.mrb[9].mxu0 }
 0x582   :  { %v7686_v63 = vpop.f32.mrb[18].mxu1  ;;  %7654 = vmatprep.mubr.msk.f32.mxu0 %vm450_vm1, %v1209_v61 }
 0x583   :  { %v1734_v3 = vpop.f32.mrb[19].mxu1  ;;  %7655 = vmatmul.mubr.msk.f32.vlgmr.msra.gmra.mrb[6].mxu0 %vm450_vm1, %v7651_v53  ;;  %v1754_v4 = vmul.f32 0.35355338, %v7686_v63 }
 0x584   :  { %v1753_v6 = vmul.f32 0.35355338, %v1734_v3 }
 0x585   :  { %v1758_v14 = vadd.f32 %v1754_v4, %v9609_v7 }
 0x586   :  { %v7689_v8 = vpop.f32.mrb[20].mxu1  ;;  %v1757_v9 = vadd.f32 %v1753_v6, %v9605_v48 }
 0x587   :  { %v1744_v12 = vpop.f32.mrb[21].mxu1  ;;  %v1756_v16 = vmul.f32 0.35355338, %v7689_v8  ;;  %v1764_v18 = vsel %vm137_vm0, %v1758_v14, -inf }
 0x588   :  { %v1755_v13 = vmul.f32 0.35355338, %v1744_v12  ;;  %v1761_v39 = vsel %vm137_vm0, %v1757_v9, -inf }
 0x589   :  { %1762 = vmax.xlane.f32.xlu1 %v1761_v39  ;;  %v1760_v24 = vadd.f32 %v1756_v16, %v9632_v21 }
 0x58a   :  { %v1759_v19 = vadd.f32 %v1755_v13, %v9621_v38 }
 0x58b   :  { %v1770_v34 = vsel %vm137_vm0, %v1760_v24, -inf }
 0x58c   :  { %v1767_v20 = vsel %vm137_vm0, %v1759_v19, -inf }
 0x58d   :  { %1765 = vmax.xlane.f32.xlu1 %v1764_v18 }
 0x591   :  { %1768 = vmax.xlane.f32.xlu1 %v1767_v20 }
 0x595   :  { %1771 = vmax.xlane.f32.xlu1 %v1770_v34 }
 0x5a6   :  { %8609 = vrot.lane.b32.xlu1 %v9555_v47, %s9203_s13 }
 0x5aa   :  { %8614 = vrot.lane.b32.xlu1 %v9533_v56, %s9203_s13 }
 0x5ae   :  { %8619 = vrot.lane.b32.xlu1 %v9555_v47, %s9199_s30 }
 0x5d4   :  { %v1413_v25 = vpop.xlane.xlu1 %1412 }
 0x5d5   :  { %8811 = vrcp.f32 %v1413_v25  ;;  %v1410_v28 = vpop.xlane.xlu0 %1409 }
 0x5d6   :  { %8813 = vrcp.f32 %v1410_v28 }
 0x5d9   :  { %v8605_v30 = vpop.permute.xlu0 %8604 }
 0x5da   :  { %v8607_v35 = vunpack.i.h.bf16 %v8605_v30  ;;  %v8606_v37 = vunpack.i.l.bf16 %v8605_v30 }
 0x5dc   :  { %v8208_v42 = vpack.c.bf16 %v8607_v35, %v8606_v37 }
 0x5de   :  { %8209 = vmatprep.subr.bf16.mxu0 %v8208_v42 }
 0x5df   :  { %v8812_v43 = vpop.eup %8811  ;;  %8211 = vmatpush3.bf16.msra.mxu0 %v8208_v42 }
 0x5e0   :  { %v8814_v31 = vpop.eup %8813  ;;  %7671 = vmatprep.subr.mxu0 %v443_v29  ;;  %v1417_v62 = vmul.f32 %v8812_v43, %v8808_v46 }
 0x5e1   :  { %v1415_v58 = vmul.f32 %v8814_v31, %v8810_v57 }
 0x5e3   :  { %7668 = vmatprep.mubr.msk.f32.mxu0 %vm538_vm5, %v1415_v58 }
 0x5e4   :  { %7669 = vmatmul.mubr.msk.f32.vlgmr.msra.gmra.mrb[10].mxu0 %vm538_vm5, %v1417_v62 }
 0x5e5   :  { %7672 = vmatpush3.msra.mxu0 %v443_v29 }
 0x616   :  { %v1763_v60 = vpop.xlane.xlu1 %1762 }
 0x617   :  { %v1773_v53 = vsub.f32 %v1757_v9, %v1763_v60 }
 0x619   :  { %v1777_v63 = vmul.f32 1.442695, %v1773_v53 }
 0x61a   :  { %v1766_v5 = vpop.xlane.xlu1 %1765 }
 0x61b   :  { %v1774_v61 = vsub.f32 %v1758_v14, %v1766_v5 }
 0x61d   :  { %v1779_v0 = vmul.f32 1.442695, %v1774_v61 }
 0x61e   :  { %v1769_v1 = vpop.xlane.xlu1 %1768 }
 0x61f   :  { %8815 = vpow2.f32 %v1779_v0  ;;  %v1775_v3 = vsub.f32 %v1759_v19, %v1769_v1 }
 0x620   :  { %8817 = vpow2.f32 %v1777_v63 }
 0x621   :  { %v1781_v4 = vmul.f32 1.442695, %v1775_v3 }
 0x622   :  { %v1772_v6 = vpop.xlane.xlu1 %1771 }
 0x623   :  { %8819 = vpow2.f32 %v1781_v4  ;;  %v1776_v57 = vsub.f32 %v1760_v24, %v1772_v6 }
 0x625   :  { %v1783_v46 = vmul.f32 1.442695, %v1776_v57 }
 0x626   :  { %v8610_v8 = vpop.permute.xlu1 %8609 }
 0x627   :  { %8821 = vpow2.f32 %v1783_v46  ;;  %v8612_v11 = vunpack.i.h.bf16 %v8610_v8  ;;  %v8611_v12 = vunpack.i.l.bf16 %v8610_v8 }
 0x629   :  { %v8816_v13 = vpop.eup %8815  ;;  %v8224_v39 = vpack.c.bf16 %v8612_v11, %v8611_v12 }
 0x62a   :  { %v1788_v9 = vsel %vm137_vm0, %v8816_v13, 0.0  ;;  %v8818_v14 = vpop.eup %8817  ;;  %v8615_v34 = vpop.permute.xlu1 %8614 }
 0x62b   :  { %1789 = vadd.xlane.f32.xlu1 %v1788_v9  ;;  %8225 = vmatprep.subr.bf16.mxu0 %v8224_v39  ;;  %v1785_v18 = vsel %vm137_vm0, %v8818_v14, 0.0  ;;  %v8617_v28 = vunpack.i.h.bf16 %v8615_v34  ;;  %v8616_v30 = vunpack.i.l.bf16 %v8615_v34 }
 0x62d   :  { %v8820_v16 = vpop.eup %8819  ;;  %v8228_v31 = vpack.c.bf16 %v8617_v28, %v8616_v30 }
 0x62e   :  { %v1791_v19 = vsel %vm137_vm0, %v8820_v16, 0.0  ;;  %v8620_v25 = vpop.permute.xlu1 %8619 }
 0x62f   :  { %1786 = vadd.xlane.f32.xlu1 %v1785_v18  ;;  %1792 = vadd.xlane.f32.xlu0 %v1791_v19  ;;  %v8622_v29 = vunpack.i.h.bf16 %v8620_v25  ;;  %v8621_v43 = vunpack.i.l.bf16 %v8620_v25 }
 0x631   :  { %v8822_v20 = vpop.eup %8821  ;;  %v8232_v60 = vpack.c.bf16 %v8622_v29, %v8621_v43 }
 0x632   :  { %v1794_v24 = vsel %vm137_vm0, %v8822_v20, 0.0 }
 0x633   :  { %1795 = vadd.xlane.f32.xlu1 %v1794_v24 }
 0x644   :  { %1914 = vrot.lane.b32.xlu1 %v9416_v55, %s9196_s5 }
 0x645   :  { %8624 = vrot.lane.b32.xlu0 %v9533_v56, %s9199_s30 }
 0x648   :  { %1916 = vrot.lane.b32.xlu1 %v9420_v59, %s9196_s5 }
 0x649   :  { %2386 = vrot.lane.b32.xlu0 %v9416_v55, %s9198_s29 }
 0x64c   :  { %1918 = vrot.lane.b32.xlu1 %v9523_v52, %s9196_s5 }
 0x64d   :  { %2390 = vrot.lane.b32.xlu0 %v9523_v52, %s9198_s29 }
 0x650   :  { %1920 = vrot.lane.b32.xlu1 %v9527_v54, %s9196_s5 }
 0x654   :  { %8629 = vrot.lane.b32.xlu1 %v9555_v47, %s9200_s15 }
 0x658   :  { %8634 = vrot.lane.b32.xlu1 %v9533_v56, %s9200_s15 }
 0x65c   :  { %2388 = vrot.lane.b32.xlu1 %v9420_v59, %s9198_s29 }
 0x660   :  { %2392 = vrot.lane.b32.xlu1 %v9527_v54, %s9198_s29 }
 0x6b7   :  { %v7670_v35 = vpop.f32.mrb[10].mxu0 }
 0x6b8   :  { %v1790_v37 = vpop.xlane.xlu1 %1789  ;;  %v1496_v42 = vpop.f32.mrb[11].mxu0 }
 0x6b9   :  { %7673 = vmatprep.mubr.msk.f32.mxu0 %vm450_vm1, %v1496_v42  ;;  %8823 = vrcp.f32 %v1790_v37 }
 0x6ba   :  { %7674 = vmatmul.mubr.msk.f32.vlgmr.msra.gmra.mrb[6].mxu0 %vm450_vm1, %v7670_v35 }
 0x6bb   :  { %8227 = vmatpush3.bf16.msra.mxu0 %v8224_v39 }
 0x6bc   :  { %8229 = vmatprep.subr.bf16.mxu0 %v8228_v31  ;;  %v1793_v58 = vpop.xlane.xlu0 %1792  ;;  %v1787_v62 = vpop.xlane.xlu1 %1786 }
 0x6bd   :  { %8825 = vrcp.f32 %v1793_v58 }
 0x6be   :  { %8827 = vrcp.f32 %v1787_v62 }
 0x6bf   :  { %8231 = vmatpush3.bf16.msra.mxu0 %v8228_v31 }
 0x6c0   :  { %8234 = vmatprep.subr.msk.bf16.mxu0 %vm9426_vm2, %v8232_v60  ;;  %v1796_v53 = vpop.xlane.xlu1 %1795  ;;  %v8625_v61 = vpop.permute.xlu0 %8624 }
 0x6c1   :  { %8829 = vrcp.f32 %v1796_v53  ;;  %v8627_v3 = vunpack.i.h.bf16 %v8625_v61  ;;  %v8626_v4 = vunpack.i.l.bf16 %v8625_v61 }
 0x6c3   :  { %v8824_v63 = vpop.eup %8823  ;;  %v8238_v12 = vpack.c.bf16 %v8627_v3, %v8626_v4 }
 0x6c4   :  { %v1915_v5 = vpop.permute.xlu1 %1914  ;;  %v1800_v46 = vmul.f32 %v8824_v63, %v8816_v13  ;;  %v2387_v28 = vpop.permute.xlu0 %2386 }
 0x6c7   :  { %v8826_v0 = vpop.eup %8825 }
 0x6c8   :  { %v8828_v1 = vpop.eup %8827  ;;  %v1917_v6 = vpop.permute.xlu1 %1916  ;;  %v1802_v11 = vmul.f32 %v8826_v0, %v8820_v16 }
 0x6c9   :  { %v1798_v57 = vmul.f32 %v8828_v1, %v8818_v14  ;;  %v2391_v35 = vpop.permute.xlu0 %2390 }
 0x6cb   :  { %v8830_v8 = vpop.eup %8829  ;;  %7698 = vmatprep.mubr.msk.f32.mxu0 %vm137_vm0, %v1798_v57 }
 0x6cc   :  { %7699 = vmatmul.mubr.msk.f32.vlgmr.msra.gmra.mrb[12].mxu0 %vm137_vm0, %v1800_v46  ;;  %v1919_v39 = vpop.permute.xlu1 %1918  ;;  %v1804_v9 = vmul.f32 %v8830_v8, %v8822_v20 }
 0x6cd   :  { %8237 = vmatpush3.bf16.xpose.msk.msra.mxu0 %vm9426_vm2, %v8232_v60  ;;  %7701 = vmatprep.mubr.msk.f32.mxu0 %vm137_vm0, %v1802_v11 }
 0x6ce   :  { %8240 = vmatprep.subr.msk.bf16.mxu0 %vm9426_vm2, %v8238_v12 }
 0x6d0   :  { %7702 = vmatmul.mubr.msk.f32.gmra.mrb[14].mxu0 %vm137_vm0, %v1804_v9  ;;  %v1921_v13 = vpop.permute.xlu1 %1920 }
 0x6d1   :  { %7712 = vmatprep.mubr.msk.f32.mxu0 %vm450_vm1, %v1915_v5 }
 0x6d4   :  { %v8630_v14 = vpop.permute.xlu1 %8629 }
 0x6d5   :  { %8243 = vmatpush3.bf16.xpose.msk.msra.mxu0 %vm9426_vm2, %v8238_v12  ;;  %v8632_v16 = vunpack.i.h.bf16 %v8630_v14  ;;  %v8631_v18 = vunpack.i.l.bf16 %v8630_v14 }
 0x6d7   :  { %v8252_v19 = vpack.c.bf16 %v8632_v16, %v8631_v18 }
 0x6d8   :  { %v8635_v20 = vpop.permute.xlu1 %8634 }
 0x6d9   :  { %v8637_v24 = vunpack.i.h.bf16 %v8635_v20  ;;  %v8636_v34 = vunpack.i.l.bf16 %v8635_v20  ;;  %8254 = vmatprep.subr.msk.bf16.mxu0 %vm9426_vm2, %v8252_v19 }
 0x6db   :  { %v8258_v25 = vpack.c.bf16 %v8637_v24, %v8636_v34 }
 0x6dc   :  { %7713 = vmatmul.mubr.msk.f32.vlgmr.msra.gmra.mrb[16].mxu0 %vm450_vm1, %v1917_v6  ;;  %v2389_v30 = vpop.permute.xlu1 %2388 }
 0x6dd   :  { %7715 = vmatprep.mubr.msk.f32.mxu0 %vm450_vm1, %v1919_v39  ;;  %8257 = vmatpush3.bf16.xpose.msk.msra.mxu0 %vm9426_vm2, %v8252_v19 }
 0x6de   :  { %8260 = vmatprep.subr.msk.bf16.mxu0 %vm9426_vm2, %v8258_v25 }
 0x6e0   :  { %7716 = vmatmul.mubr.msk.f32.gmra.mrb[18].mxu0 %vm450_vm1, %v1921_v13  ;;  %v2393_v37 = vpop.permute.xlu1 %2392 }
 0x6e1   :  { %7756 = vmatprep.mubr.msk.f32.mxu0 %vm450_vm1, %v2387_v28 }
 0x6e5   :  { %8263 = vmatpush3.bf16.xpose.msk.msra.mxu0 %vm9426_vm2, %v8258_v25 }
 0x6ec   :  { %7757 = vmatmul.mubr.msk.f32.vlgmr.msra.gmra.mrb[20].mxu0 %vm450_vm1, %v2389_v30 }
 0x6ed   :  { %7759 = vmatprep.mubr.msk.f32.mxu0 %vm450_vm1, %v2391_v35 }
 0x6f0   :  { %7760 = vmatmul.mubr.msk.f32.gmra.mrb[22].mxu0 %vm450_vm1, %v2393_v37 }
 0x78d   :  { %v9704_v42 = vpop.f32.mrb[6].mxu0 }
 0x78e   :  { %v9706_v29 = vpop.f32.mrb[7].mxu0 }
 0x79f   :  { %v9708_v43 = vpop.f32.mrb[12].mxu0 }
 0x7a0   :  { %v9710_v31 = vpop.f32.mrb[13].mxu0 }
 0x7a3   :  { %v9712_v58 = vpop.f32.mrb[14].mxu0 }
 0x7a4   :  { %v9714_v62 = vpop.f32.mrb[15].mxu0 }
 0x7af   :  { %v7714_v60 = vpop.f32.mrb[16].mxu0 }
 0x7b0   :  { %v2032_v53 = vmul.f32 0.35355338, %v7714_v60  ;;  %v2012_v5 = vpop.f32.mrb[17].mxu0 }
 0x7b1   :  { %v2031_v61 = vmul.f32 0.35355338, %v2012_v5 }
 0x7b2   :  { %v2036_v63 = vadd.f32 %v2032_v53, %v9609_v7 }
 0x7b3   :  { %v7717_v0 = vpop.f32.mrb[18].mxu0  ;;  %v2035_v1 = vadd.f32 %v2031_v61, %v9605_v48 }
 0x7b4   :  { %v2022_v3 = vpop.f32.mrb[19].mxu0  ;;  %v2042_v4 = vsel %vm137_vm0, %v2036_v63, -inf  ;;  %v2034_v6 = vmul.f32 0.35355338, %v7717_v0 }
 0x7b5   :  { %v2033_v57 = vmul.f32 0.35355338, %v2022_v3  ;;  %2043 = vmax.xlane.f32.xlu1 %v2042_v4  ;;  %v2039_v46 = vsel %vm137_vm0, %v2035_v1, -inf }
 0x7b6   :  { %2040 = vmax.xlane.f32.xlu0 %v2039_v46  ;;  %v2038_v12 = vadd.f32 %v2034_v6, %v9632_v21 }
 0x7b7   :  { %v2037_v8 = vadd.f32 %v2033_v57, %v9621_v38 }
 0x7b8   :  { %v2048_v39 = vsel %vm137_vm0, %v2038_v12, -inf }
 0x7b9   :  { %v2045_v11 = vsel %vm137_vm0, %v2037_v8, -inf }
 0x7ba   :  { %2046 = vmax.xlane.f32.xlu0 %v2045_v11 }
 0x7be   :  { %2049 = vmax.xlane.f32.xlu0 %v2048_v39 }
 0x7bf   :  { %v7758_v9 = vpop.f32.mrb[20].mxu0 }
 0x7c0   :  { %v2484_v13 = vpop.f32.mrb[21].mxu0 }
 0x7c1   :  { %v2503_v57 = vmul.f32 0.35355338, %v2484_v13 }
 0x7c3   :  { %v7761_v14 = vpop.f32.mrb[22].mxu0 }
 0x7c4   :  { %v2494_v16 = vpop.f32.mrb[23].mxu0  ;;  %v2506_v11 = vmul.f32 0.35355338, %v7761_v14 }
 0x7c5   :  { %v2505_v46 = vmul.f32 0.35355338, %v2494_v16 }
 0x7c7   :  { %v9759_v39 = vadd.f32 %v2505_v46, %v9621_v38 }
 0x842   :  { %v2044_v18 = vpop.xlane.xlu1 %2043 }
 0x843   :  { %v2052_v19 = vsub.f32 %v2036_v63, %v2044_v18  ;;  %v2041_v20 = vpop.xlane.xlu0 %2040  ;;  %v2504_v18 = vmul.f32 0.35355338, %v7758_v9 }
 0x844   :  { %v2051_v24 = vsub.f32 %v2035_v1, %v2041_v20  ;;  %v9764_v20 = vadd.f32 %v2506_v11, %v9632_v21 }
 0x845   :  { %v2057_v34 = vmul.f32 1.442695, %v2052_v19  ;;  %v2517_v19 = vsel %vm137_vm0, %v9759_v39, -inf  ;;  %v9769_v14 = vadd.f32 %v2504_v18, %v9609_v7 }
 0x846   :  { %v2055_v25 = vmul.f32 1.442695, %v2051_v24  ;;  %v2520_v13 = vsel %vm137_vm0, %v9764_v20, -inf }
 0x847   :  { %8831 = vpow2.f32 %v2057_v34  ;;  %v2047_v28 = vpop.xlane.xlu0 %2046  ;;  %v2514_v16 = vsel %vm137_vm0, %v9769_v14, -inf }
 0x848   :  { %8833 = vpow2.f32 %v2055_v25  ;;  %v2053_v30 = vsub.f32 %v2037_v8, %v2047_v28  ;;  %v9754_v8 = vadd.f32 %v2503_v57, %v9605_v48 }
 0x84a   :  { %v2059_v35 = vmul.f32 1.442695, %v2053_v30 }
 0x84b   :  { %v2050_v37 = vpop.xlane.xlu0 %2049 }
 0x84c   :  { %8835 = vpow2.f32 %v2059_v35  ;;  %v2054_v60 = vsub.f32 %v2038_v12, %v2050_v37  ;;  %v2511_v12 = vsel %vm137_vm0, %v9754_v8, -inf }
 0x84e   :  { %v2061_v53 = vmul.f32 1.442695, %v2054_v60 }
 0x850   :  { %8837 = vpow2.f32 %v2061_v53 }
 0x851   :  { %v9724_v5 = vpop.eup %8831 }
 0x852   :  { %v8834_v61 = vpop.eup %8833  ;;  %v2066_v63 = vsel %vm137_vm0, %v9724_v5, 0.0 }
 0x853   :  { %2067 = vadd.xlane.f32.xlu1 %v2066_v63  ;;  %v2063_v0 = vsel %vm137_vm0, %v8834_v61, 0.0 }
 0x854   :  { %2064 = vadd.xlane.f32.xlu0 %v2063_v0 }
 0x856   :  { %v9729_v1 = vpop.eup %8835 }
 0x857   :  { %v2069_v3 = vsel %vm137_vm0, %v9729_v1, 0.0 }
 0x858   :  { %2070 = vadd.xlane.f32.xlu0 %v2069_v3 }
 0x85a   :  { %v9733_v4 = vpop.eup %8837 }
 0x85b   :  { %v2072_v6 = vsel %vm137_vm0, %v9733_v4, 0.0 }
 0x85c   :  { %2073 = vadd.xlane.f32.xlu1 %v2072_v6 }
 0x86d   :  { %8644 = vrot.lane.b32.xlu1 %v9533_v56, %s9201_s20 }
 0x86e   :  { %8639 = vrot.lane.b32.xlu0 %v9555_v47, %s9201_s20 }
 0x871   :  { %8649 = vrot.lane.b32.xlu1 %v9555_v47, %s9202_s7 }
 0x872   :  { %2765 = vrot.lane.b32.xlu0 %v9416_v55, %s9204_s8 }
 0x875   :  { %8654 = vrot.lane.b32.xlu1 %v9533_v56, %s9202_s7 }
 0x876   :  { %2769 = vrot.lane.b32.xlu0 %v9523_v52, %s9204_s8 }
 0x879   :  { %2767 = vrot.lane.b32.xlu1 %v9420_v59, %s9204_s8 }
 0x87d   :  { %2771 = vrot.lane.b32.xlu1 %v9527_v54, %s9204_s8 }
 0x895   :  { %2512 = vmax.xlane.f32.xlu0 %v2511_v12 }
 0x899   :  { %2518 = vmax.xlane.f32.xlu0 %v2517_v19 }
 0x89d   :  { %2521 = vmax.xlane.f32.xlu0 %v2520_v13 }
 0x8a1   :  { %2515 = vmax.xlane.f32.xlu1 %v2514_v16 }
 0x8e0   :  { %v2068_v9 = vpop.xlane.xlu1 %2067 }
 0x8e1   :  { %v2065_v24 = vpop.xlane.xlu0 %2064 }
 0x8e2   :  { %8839 = vrcp.f32 %v2065_v24 }
 0x8e3   :  { %8841 = vrcp.f32 %v2068_v9 }
 0x8e5   :  { %v2071_v34 = vpop.xlane.xlu0 %2070 }
 0x8e6   :  { %8843 = vrcp.f32 %v2071_v34 }
 0x8e9   :  { %v2074_v25 = vpop.xlane.xlu1 %2073  ;;  %v8640_v28 = vpop.permute.xlu0 %8639 }
 0x8ea   :  { %v8642_v30 = vunpack.i.h.bf16 %v8640_v28  ;;  %v8641_v35 = vunpack.i.l.bf16 %v8640_v28  ;;  %8845 = vrcp.f32 %v2074_v25 }
 0x8ec   :  { %v8840_v37 = vpop.eup %8839  ;;  %v8244_v60 = vpack.c.bf16 %v8642_v30, %v8641_v35 }
 0x8ed   :  { %v8645_v53 = vpop.permute.xlu1 %8644  ;;  %v2766_v63 = vpop.permute.xlu0 %2765  ;;  %v2076_v0 = vmul.f32 %v8840_v37, %v8834_v61 }
 0x8ee   :  { %v8647_v3 = vunpack.i.h.bf16 %v8645_v53  ;;  %v8646_v6 = vunpack.i.l.bf16 %v8645_v53  ;;  %8245 = vmatprep.subr.bf16.mxu1 %v8244_v60  ;;  %7792 = vmatprep.mubr.msk.f32.mxu0 %vm450_vm1, %v2766_v63  ;;  %v8842_v46 = vpop.eup %8841 }
 0x8ef   :  { %8247 = vmatpush3.bf16.msra.mxu1 %v8244_v60  ;;  %7726 = vmatprep.mubr.msk.f32.mxu1 %vm137_vm0, %v2076_v0  ;;  %v2078_v13 = vmul.f32 %v8842_v46, %v9724_v5 }
 0x8f0   :  { %v8248_v57 = vpack.c.bf16 %v8647_v3, %v8646_v6  ;;  %v8844_v12 = vpop.eup %8843 }
 0x8f1   :  { %v8650_v11 = vpop.permute.xlu1 %8649  ;;  %v2080_v9 = vmul.f32 %v8844_v12, %v9729_v1  ;;  %v2770_v30 = vpop.permute.xlu0 %2769 }
 0x8f2   :  { %v8652_v18 = vunpack.i.h.bf16 %v8650_v11  ;;  %v8651_v19 = vunpack.i.l.bf16 %v8650_v11  ;;  %8249 = vmatprep.subr.bf16.mxu1 %v8248_v57 }
 0x8f3   :  { %8251 = vmatpush3.bf16.msra.mxu1 %v8248_v57 }
 0x8f4   :  { %v8272_v16 = vpack.c.bf16 %v8652_v18, %v8651_v19  ;;  %v8846_v61 = vpop.eup %8845 }
 0x8f5   :  { %v8655_v24 = vpop.permute.xlu1 %8654  ;;  %v2082_v5 = vmul.f32 %v8846_v61, %v9733_v4 }
 0x8f6   :  { %v8657_v34 = vunpack.i.h.bf16 %v8655_v24  ;;  %v8656_v25 = vunpack.i.l.bf16 %v8655_v24  ;;  %7727 = vmatmul.mubr.msk.f32.vlgmr.msra.gmra.mrb[22].mxu1 %vm137_vm0, %v2078_v13  ;;  %8274 = vmatprep.subr.msk.bf16.mxu0 %vm9426_vm2, %v8272_v16  ;;  %v7055_v13 = vld [vmem:[%s10686_s6 + $0x28] sm:$0xff] }
 0x8f7   :  { %7729 = vmatprep.mubr.msk.f32.mxu1 %vm137_vm0, %v2080_v9  ;;  %8277 = vmatpush3.bf16.xpose.msk.msra.mxu0 %vm9426_vm2, %v8272_v16  ;;  %v7054_v16 = vld [vmem:[%s10686_s6 + $0x20] sm:$0xff] }
 0x8f8   :  { %v8278_v28 = vpack.c.bf16 %v8657_v34, %v8656_v25  ;;  %7732 = vmatprep.subr.mxu1 %v7055_v13 }
 0x8f9   :  { %v2768_v1 = vpop.permute.xlu1 %2767  ;;  %7733 = vmatpush3.msra.mxu1 %v7055_v13 }
 0x8fa   :  { %7730 = vmatmul.mubr.msk.f32.gmra.mrb[24].mxu1 %vm137_vm0, %v2082_v5  ;;  %8280 = vmatprep.subr.msk.bf16.mxu0 %vm9426_vm2, %v8278_v28 }
 0x8fb   :  { %7740 = vmatprep.subr.mxu1 %v7054_v16 }
 0x8fd   :  { %v2772_v4 = vpop.permute.xlu1 %2771 }
 0x8ff   :  { %8283 = vmatpush3.bf16.xpose.msk.msra.mxu0 %vm9426_vm2, %v8278_v28 }
 0x900   :  { %8294 = vmatprep.subr.msk.bf16.mxu0 %vm9426_vm2, %v9455_v22 }
 0x906   :  { %7793 = vmatmul.mubr.msk.f32.vlgmr.msra.gmra.mrb[24].mxu0 %vm450_vm1, %v2768_v1 }
 0x907   :  { %7795 = vmatprep.mubr.msk.f32.mxu0 %vm450_vm1, %v2770_v30  ;;  %8297 = vmatpush3.bf16.xpose.msk.msra.mxu0 %vm9426_vm2, %v9455_v22 }
 0x908   :  { %8300 = vmatprep.subr.msk.bf16.mxu0 %vm9426_vm2, %v9459_v26 }
 0x90a   :  { %7796 = vmatmul.mubr.msk.f32.gmra.mrb[26].mxu0 %vm450_vm1, %v2772_v4 }
 0x90f   :  { %8303 = vmatpush3.bf16.xpose.msk.msra.mxu0 %vm9426_vm2, %v9459_v26 }
 0x922   :  { %v2513_v35 = vpop.xlane.xlu0 %2512 }
 0x923   :  { %v2523_v37 = vsub.f32 %v9754_v8, %v2513_v35 }
 0x925   :  { %v2527_v60 = vmul.f32 1.442695, %v2523_v37 }
 0x926   :  { %v2519_v53 = vpop.xlane.xlu0 %2518 }
 0x927   :  { %8847 = vpow2.f32 %v2527_v60  ;;  %v2525_v63 = vsub.f32 %v9759_v39, %v2519_v53 }
 0x929   :  { %v2531_v22 = vmul.f32 1.442695, %v2525_v63 }
 0x92a   :  { %v2522_v0 = vpop.xlane.xlu0 %2521 }
 0x92b   :  { %8849 = vpow2.f32 %v2531_v22  ;;  %v2526_v3 = vsub.f32 %v9764_v20, %v2522_v0 }
 0x92d   :  { %v2533_v11 = vmul.f32 1.442695, %v2526_v3 }
 0x92e   :  { %v2516_v6 = vpop.xlane.xlu1 %2515 }
 0x92f   :  { %v2524_v57 = vsub.f32 %v9769_v14, %v2516_v6 }
 0x931   :  { %v8848_v46 = vpop.eup %8847  ;;  %v2529_v12 = vmul.f32 1.442695, %v2524_v57 }
 0x932   :  { %v2535_v26 = vsel %vm137_vm0, %v8848_v46, 0.0 }
 0x933   :  { %8851 = vpow2.f32 %v2529_v12  ;;  %2536 = vadd.xlane.f32.xlu0 %v2535_v26 }
 0x934   :  { %8853 = vpow2.f32 %v2533_v11 }
 0x935   :  { %v9809_v8 = vpop.eup %8849 }
 0x936   :  { %v2541_v39 = vsel %vm137_vm0, %v9809_v8, 0.0 }
 0x937   :  { %2542 = vadd.xlane.f32.xlu0 %v2541_v39 }
 0x93d   :  { %v9813_v18 = vpop.eup %8851 }
 0x93e   :  { %v2538_v20 = vsel %vm137_vm0, %v9813_v18, 0.0  ;;  %v9817_v14 = vpop.eup %8853 }
 0x93f   :  { %2539 = vadd.xlane.f32.xlu1 %v2538_v20  ;;  %v2544_v19 = vsel %vm137_vm0, %v9817_v14, 0.0 }
 0x943   :  { %2545 = vadd.xlane.f32.xlu1 %v2544_v19 }
 0x94d   :  { %8659 = vrot.lane.b32.xlu0 %v9555_v47, %s9205_s16 }
 0x951   :  { %3231 = vrot.lane.b32.xlu0 %v9385_v44, %s9207_s24 }
 0x954   :  { %8664 = vrot.lane.b32.xlu1 %v9533_v56, %s9205_s16 }
 0x955   :  { %3443 = vrot.lane.b32.xlu0 %v9378_v40, %s9208_s25 }
 0x958   :  { %8669 = vrot.lane.b32.xlu1 %v9457_v23, %s9196_s5 }
 0x95c   :  { %3229 = vrot.lane.b32.xlu1 %v9378_v40, %s9207_s24 }
 0x960   :  { %8674 = vrot.lane.b32.xlu1 %v9461_v27, %s9196_s5 }
 0x964   :  { %3445 = vrot.lane.b32.xlu1 %v9385_v44, %s9208_s25 }
 0x9c0   :  { %v2537_v61 = vpop.xlane.xlu0 %2536 }
 0x9c1   :  { %8855 = vrcp.f32 %v2537_v61 }
 0x9c4   :  { %v2543_v24 = vpop.xlane.xlu0 %2542 }
 0x9c8   :  { %v8660_v9 = vpop.permute.xlu0 %8659 }
 0x9c9   :  { %v8662_v34 = vunpack.i.h.bf16 %v8660_v9  ;;  %v8661_v25 = vunpack.i.l.bf16 %v8660_v9  ;;  %v7728_v28 = vpop.f32.mrb[22].mxu1 }
 0x9ca   :  { %v2173_v5 = vpop.f32.mrb[23].mxu1 }
 0x9cb   :  { %7734 = vmatprep.mubr.msk.f32.mxu1 %vm450_vm1, %v2173_v5  ;;  %v8264_v1 = vpack.c.bf16 %v8662_v34, %v8661_v25  ;;  %v8856_v60 = vpop.eup %8855 }
 0x9cc   :  { %v2540_v30 = vpop.xlane.xlu1 %2539  ;;  %7735 = vmatmul.mubr.msk.f32.vlgmr.msra.gmra.mrb[26].mxu1 %vm450_vm1, %v7728_v28  ;;  %v2548_v3 = vmul.f32 %v8856_v60, %v8848_v46  ;;  %v3232_v11 = vpop.permute.xlu0 %3231 }
 0x9cd   :  { %7741 = vmatpush3.msra.mxu1 %v7054_v16  ;;  %v7731_v4 = vpop.f32.mrb[24].mxu1  ;;  %8857 = vrcp.f32 %v2540_v30 }
 0x9ce   :  { %8265 = vmatprep.subr.bf16.mxu1 %v8264_v1  ;;  %v2183_v35 = vpop.f32.mrb[25].mxu1  ;;  %8859 = vrcp.f32 %v2543_v24 }
 0x9cf   :  { %7737 = vmatprep.mubr.msk.f32.mxu1 %vm450_vm1, %v2183_v35 }
 0x9d0   :  { %v2546_v37 = vpop.xlane.xlu1 %2545  ;;  %7738 = vmatmul.mubr.msk.f32.gmra.mrb[28].mxu1 %vm450_vm1, %v7731_v4  ;;  %v3444_v25 = vpop.permute.xlu0 %3443 }
 0x9d1   :  { %7742 = vmatprep.mubr.msk.f32.mxu1 %vm450_vm1, %v9710_v31  ;;  %8861 = vrcp.f32 %v2546_v37 }
 0x9d4   :  { %v8665_v53 = vpop.permute.xlu1 %8664  ;;  %7743 = vmatmul.mubr.msk.f32.vlgmr.msra.gmra.mrb[26].mxu1 %vm450_vm1, %v9708_v43 }
 0x9d5   :  { %v8667_v63 = vunpack.i.h.bf16 %v8665_v53  ;;  %v8666_v22 = vunpack.i.l.bf16 %v8665_v53  ;;  %8267 = vmatpush3.bf16.msra.mxu1 %v8264_v1  ;;  %7745 = vmatprep.mubr.msk.f32.mxu1 %vm450_vm1, %v9714_v62 }
 0x9d7   :  { %v8268_v0 = vpack.c.bf16 %v8667_v63, %v8666_v22  ;;  %v8858_v6 = vpop.eup %8857 }
 0x9d8   :  { %v8670_v57 = vpop.permute.xlu1 %8669  ;;  %7746 = vmatmul.mubr.msk.f32.gmra.mrb[28].mxu1 %vm450_vm1, %v9712_v58  ;;  %v8860_v31 = vpop.eup %8859  ;;  %v2550_v62 = vmul.f32 %v8858_v6, %v9813_v18 }
 0x9d9   :  { %v8672_v12 = vunpack.i.h.bf16 %v8670_v57  ;;  %v8671_v26 = vunpack.i.l.bf16 %v8670_v57  ;;  %8269 = vmatprep.subr.bf16.mxu1 %v8268_v0  ;;  %7770 = vmatprep.mubr.msk.f32.mxu1 %vm137_vm0, %v2548_v3  ;;  %v7794_v43 = vpop.f32.mrb[24].mxu0  ;;  %v2552_v58 = vmul.f32 %v8860_v31, %v9809_v8 }
 0x9da   :  { %v2883_v39 = vmul.f32 0.35355338, %v7794_v43  ;;  %8271 = vmatpush3.bf16.msra.mxu1 %v8268_v0  ;;  %v2863_v20 = vpop.f32.mrb[25].mxu0 }
 0x9db   :  { %v8312_v19 = vpack.c.bf16 %v8672_v12, %v8671_v26  ;;  %v2882_v46 = vmul.f32 0.35355338, %v2863_v20  ;;  %v8862_v13 = vpop.eup %8861 }
 0x9dc   :  { %v2887_v16 = vadd.f32 %v2883_v39, %v9609_v7  ;;  %v3230_v61 = vpop.permute.xlu1 %3229  ;;  %v2554_v5 = vmul.f32 %v8862_v13, %v9817_v14 }
 0x9dd   :  { %7771 = vmatmul.mubr.msk.f32.vlgmr.msra.gmra.mrb[30].mxu1 %vm137_vm0, %v2550_v62  ;;  %v7797_v24 = vpop.f32.mrb[26].mxu0  ;;  %7828 = vmatprep.mubr.msk.f32.mxu0 %vm450_vm1, %v3230_v61  ;;  %v2886_v9 = vadd.f32 %v2882_v46, %v9605_v48 }
 0x9de   :  { %8314 = vmatprep.subr.msk.bf16.mxu0 %vm9426_vm2, %v8312_v19  ;;  %7773 = vmatprep.mubr.msk.f32.mxu1 %vm137_vm0, %v2552_v58  ;;  %v2873_v18 = vpop.f32.mrb[27].mxu0  ;;  %v2893_v34 = vsel %vm137_vm0, %v2887_v16, -inf  ;;  %v2885_v1 = vmul.f32 0.35355338, %v7797_v24 }
 0x9df   :  { %v2884_v28 = vmul.f32 0.35355338, %v2873_v18  ;;  %7829 = vmatmul.mubr.msk.f32.vlgmr.msra.gmra.mrb[28].mxu0 %vm450_vm1, %v3232_v11  ;;  %2894 = vmax.xlane.f32.xlu1 %v2893_v34  ;;  %v2890_v8 = vsel %vm137_vm0, %v2886_v9, -inf }
 0x9e0   :  { %8317 = vmatpush3.bf16.xpose.msk.msra.mxu0 %vm9426_vm2, %v8312_v19  ;;  %7850 = vmatprep.mubr.msk.f32.mxu0 %vm450_vm1, %v3444_v25  ;;  %v8675_v30 = vpop.permute.xlu1 %8674  ;;  %v2889_v63 = vadd.f32 %v2885_v1, %v9632_v21 }
 0x9e1   :  { %2891 = vmax.xlane.f32.xlu0 %v2890_v8  ;;  %v8677_v4 = vunpack.i.h.bf16 %v8675_v30  ;;  %v8676_v35 = vunpack.i.l.bf16 %v8675_v30  ;;  %7774 = vmatmul.mubr.msk.f32.gmra.mrb[32].mxu1 %vm137_vm0, %v2554_v5  ;;  %v2888_v37 = vadd.f32 %v2884_v28, %v9621_v38  ;;  %v7056_v38 = vld [vmem:[%s10686_s6 + $0x30] sm:$0xff] }
 0x9e2   :  { %v2899_v14 = vsel %vm137_vm0, %v2889_v63, -inf  ;;  %7776 = vmatprep.subr.mxu1 %v7056_v38 }
 0x9e3   :  { %v8318_v60 = vpack.c.bf16 %v8677_v4, %v8676_v35  ;;  %v2896_v53 = vsel %vm137_vm0, %v2888_v37, -inf  ;;  %7777 = vmatpush3.msra.mxu1 %v7056_v38 }
 0x9e4   :  { %v3446_v22 = vpop.permute.xlu1 %3445 }
 0x9e5   :  { %2897 = vmax.xlane.f32.xlu0 %v2896_v53  ;;  %8320 = vmatprep.subr.msk.bf16.mxu0 %vm9426_vm2, %v8318_v60 }
 0x9e8   :  { %8323 = vmatpush3.bf16.xpose.msk.msra.mxu0 %vm9426_vm2, %v8318_v60 }
 0x9e9   :  { %2900 = vmax.xlane.f32.xlu0 %v2899_v14 }
 0x9ef   :  { %7851 = vmatmul.mubr.msk.f32.vlgmr.msra.gmra.mrb[30].mxu0 %vm450_vm1, %v3446_v22 }
 0xa6c   :  { %v2895_v21 = vpop.xlane.xlu1 %2894 }
 0xa6d   :  { %v2903_v0 = vsub.f32 %v2887_v16, %v2895_v21 }
 0xa6e   :  { %v2892_v3 = vpop.xlane.xlu0 %2891 }
 0xa6f   :  { %v2908_v6 = vmul.f32 1.442695, %v2903_v0  ;;  %v2902_v57 = vsub.f32 %v2886_v9, %v2892_v3 }
 0xa71   :  { %8863 = vpow2.f32 %v2908_v6  ;;  %v2906_v31 = vmul.f32 1.442695, %v2902_v57 }
 0xa72   :  { %v2898_v11 = vpop.xlane.xlu0 %2897 }
 0xa73   :  { %8865 = vpow2.f32 %v2906_v31  ;;  %v2904_v12 = vsub.f32 %v2888_v37, %v2898_v11 }
 0xa75   :  { %v2910_v26 = vmul.f32 1.442695, %v2904_v12 }
 0xa76   :  { %v2901_v43 = vpop.xlane.xlu0 %2900 }
 0xa77   :  { %8867 = vpow2.f32 %v2910_v26  ;;  %v2905_v39 = vsub.f32 %v2889_v63, %v2901_v43 }
 0xa79   :  { %v2912_v20 = vmul.f32 1.442695, %v2905_v39 }
 0xa7b   :  { %v9885_v62 = vpop.eup %8863  ;;  %8869 = vpow2.f32 %v2912_v20 }
 0xa7c   :  { %v2917_v19 = vsel %vm137_vm0, %v9885_v62, 0.0 }
 0xa7d   :  { %v8866_v46 = vpop.eup %8865  ;;  %2918 = vadd.xlane.f32.xlu1 %v2917_v19 }
 0xa7e   :  { %v2914_v13 = vsel %vm137_vm0, %v8866_v46, 0.0 }
 0xa7f   :  { %2915 = vadd.xlane.f32.xlu0 %v2914_v13 }
 0xa81   :  { %v9890_v16 = vpop.eup %8867 }
 0xa82   :  { %v2920_v61 = vsel %vm137_vm0, %v9890_v16, 0.0 }
 0xa83   :  { %2921 = vadd.xlane.f32.xlu0 %v2920_v61 }
 0xa85   :  { %v9894_v58 = vpop.eup %8869 }
 0xa86   :  { %v2923_v24 = vsel %vm137_vm0, %v9894_v58, 0.0 }
 0xa87   :  { %2924 = vadd.xlane.f32.xlu1 %v2923_v24 }
 0xa98   :  { %8684 = vrot.lane.b32.xlu1 %v9533_v56, %s9206_s26 }
 0xa99   :  { %8679 = vrot.lane.b32.xlu0 %v9555_v47, %s9206_s26 }
 0xa9c   :  { %8689 = vrot.lane.b32.xlu1 %v9457_v23, %s9198_s29 }
 0xa9d   :  { %3823 = vrot.lane.b32.xlu0 %v9378_v40, %s9189_s14 }
 0xaa0   :  { %8694 = vrot.lane.b32.xlu1 %v9461_v27, %s9198_s29 }
 0xaa4   :  { %3825 = vrot.lane.b32.xlu1 %v9385_v44, %s9189_s14 }
 0xab0   :  { %v7772_v9 = vpop.f32.mrb[30].mxu1 }
 0xab1   :  { %v2645_v18 = vpop.f32.mrb[31].mxu1 }
 0xab2   :  { %v7830_v34 = vpop.f32.mrb[28].mxu0  ;;  %7778 = vmatprep.mubr.msk.f32.mxu1 %vm450_vm1, %v2645_v18 }
 0xab3   :  { %v3315_v56 = vpop.f32.mrb[29].mxu0  ;;  %7779 = vmatmul.mubr.msk.f32.vlgmr.msra.gmra.mrb[26].mxu1 %vm450_vm1, %v7772_v9  ;;  %v3325_v1 = vmul.f32 0.35355338, %v7830_v34 }
 0xab4   :  { %v3324_v47 = vmul.f32 0.35355338, %v3315_v56  ;;  %v7775_v25 = vpop.f32.mrb[32].mxu1 }
 0xab5   :  { %v2655_v28 = vpop.f32.mrb[33].mxu1  ;;  %v9920_v4 = vadd.f32 %v3325_v1, %v9609_v7 }
 0xab6   :  { %7781 = vmatprep.mubr.msk.f32.mxu1 %vm450_vm1, %v2655_v28  ;;  %v9915_v8 = vadd.f32 %v3324_v47, %v9605_v48 }
 0xab7   :  { %7782 = vmatmul.mubr.msk.f32.gmra.mrb[28].mxu1 %vm450_vm1, %v7775_v25  ;;  %v3331_v63 = vsel %vm137_vm0, %v9920_v4, -inf }
 0xab8   :  { %v3328_v5 = vsel %vm137_vm0, %v9915_v8, -inf }
 0xabc   :  { %3329 = vmax.xlane.f32.xlu0 %v3328_v5 }
 0xac2   :  { %v7852_v30 = vpop.f32.mrb[30].mxu0 }
 0xac3   :  { %v3533_v35 = vpop.f32.mrb[31].mxu0  ;;  %v3543_v37 = vmul.f32 0.35355338, %v7852_v30 }
 0xac4   :  { %v3542_v60 = vmul.f32 0.35355338, %v3533_v35 }
 0xac5   :  { %v9930_v22 = vadd.f32 %v3543_v37, %v9609_v7 }
 0xac6   :  { %v9923_v53 = vadd.f32 %v3542_v60, %v9605_v48 }
 0xac7   :  { %v3549_v38 = vsel %vm137_vm0, %v9930_v22, -inf }
 0xac8   :  { %v3546_v14 = vsel %vm137_vm0, %v9923_v53, -inf  ;;  %3332 = vmax.xlane.f32.xlu1 %v3331_v63 }
 0xac9   :  { %3547 = vmax.xlane.f32.xlu0 %v3546_v14 }
 0xacd   :  { %3550 = vmax.xlane.f32.xlu0 %v3549_v38 }
 0xb0a   :  { %v2919_v0 = vpop.xlane.xlu1 %2918 }
 0xb0c   :  { %v2916_v21 = vpop.xlane.xlu0 %2915 }
 0xb0d   :  { %8871 = vrcp.f32 %v2916_v21 }
 0xb0e   :  { %8873 = vrcp.f32 %v2919_v0 }
 0xb10   :  { %v2922_v3 = vpop.xlane.xlu0 %2921 }
 0xb11   :  { %8875 = vrcp.f32 %v2922_v3 }
 0xb14   :  { %v2925_v6 = vpop.xlane.xlu1 %2924  ;;  %v8680_v57 = vpop.permute.xlu0 %8679 }
 0xb15   :  { %v8682_v31 = vunpack.i.h.bf16 %v8680_v57  ;;  %v8681_v11 = vunpack.i.l.bf16 %v8680_v57  ;;  %8877 = vrcp.f32 %v2925_v6 }
 0xb17   :  { %v8872_v12 = vpop.eup %8871  ;;  %v8284_v26 = vpack.c.bf16 %v8682_v31, %v8681_v11 }
 0xb18   :  { %v8685_v43 = vpop.permute.xlu1 %8684  ;;  %v3824_v39 = vpop.permute.xlu0 %3823  ;;  %v2927_v20 = vmul.f32 %v8872_v12, %v8866_v46 }
 0xb19   :  { %v8687_v19 = vunpack.i.h.bf16 %v8685_v43  ;;  %v8686_v13 = vunpack.i.l.bf16 %v8685_v43  ;;  %8285 = vmatprep.subr.bf16.mxu1 %v8284_v26  ;;  %7882 = vmatprep.mubr.msk.f32.mxu0 %vm450_vm1, %v3824_v39  ;;  %v8874_v24 = vpop.eup %8873 }
 0xb1a   :  { %8287 = vmatpush3.bf16.msra.mxu1 %v8284_v26  ;;  %7806 = vmatprep.mubr.msk.f32.mxu1 %vm137_vm0, %v2927_v20  ;;  %v2929_v47 = vmul.f32 %v8874_v24, %v9885_v62 }
 0xb1b   :  { %v8288_v61 = vpack.c.bf16 %v8687_v19, %v8686_v13  ;;  %v8876_v18 = vpop.eup %8875 }
 0xb1c   :  { %v8690_v9 = vpop.permute.xlu1 %8689  ;;  %v2931_v5 = vmul.f32 %v8876_v18, %v9890_v16 }
 0xb1d   :  { %v8692_v34 = vunpack.i.h.bf16 %v8690_v9  ;;  %v8691_v56 = vunpack.i.l.bf16 %v8690_v9  ;;  %8289 = vmatprep.subr.bf16.mxu1 %v8288_v61 }
 0xb1e   :  { %8291 = vmatpush3.bf16.msra.mxu1 %v8288_v61 }
 0xb1f   :  { %v8332_v25 = vpack.c.bf16 %v8692_v34, %v8691_v56  ;;  %v8878_v46 = vpop.eup %8877 }
 0xb20   :  { %v8695_v28 = vpop.permute.xlu1 %8694  ;;  %v2933_v62 = vmul.f32 %v8878_v46, %v9894_v58 }
 0xb21   :  { %v8697_v1 = vunpack.i.h.bf16 %v8695_v28  ;;  %v8696_v30 = vunpack.i.l.bf16 %v8695_v28  ;;  %7807 = vmatmul.mubr.msk.f32.vlgmr.msra.gmra.mrb[34].mxu1 %vm137_vm0, %v2929_v47  ;;  %8334 = vmatprep.subr.msk.bf16.mxu0 %vm9426_vm2, %v8332_v25 }
 0xb22   :  { %7809 = vmatprep.mubr.msk.f32.mxu1 %vm137_vm0, %v2931_v5  ;;  %8337 = vmatpush3.bf16.xpose.msk.msra.mxu0 %vm9426_vm2, %v8332_v25 }
 0xb23   :  { %v8338_v35 = vpack.c.bf16 %v8697_v1, %v8696_v30 }
 0xb24   :  { %v3826_v16 = vpop.permute.xlu1 %3825 }
 0xb25   :  { %7810 = vmatmul.mubr.msk.f32.gmra.mrb[36].mxu1 %vm137_vm0, %v2933_v62  ;;  %8340 = vmatprep.subr.msk.bf16.mxu0 %vm9426_vm2, %v8338_v35 }
 0xb2a   :  { %8343 = vmatpush3.bf16.xpose.msk.msra.mxu0 %vm9426_vm2, %v8338_v35 }
 0xb31   :  { %7883 = vmatmul.mubr.msk.f32.vlgmr.msra.gmra.mrb[32].mxu0 %vm450_vm1, %v3826_v16 }
 0xb49   :  { %v3330_v37 = vpop.xlane.xlu0 %3329 }
 0xb4a   :  { %v3334_v60 = vsub.f32 %v9915_v8, %v3330_v37 }
 0xb4c   :  { %v3336_v63 = vmul.f32 1.442695, %v3334_v60 }
 0xb4e   :  { %8879 = vpow2.f32 %v3336_v63 }
 0xb55   :  { %v3333_v14 = vpop.xlane.xlu1 %3332 }
 0xb56   :  { %v3335_v38 = vsub.f32 %v9920_v4, %v3333_v14  ;;  %v3548_v58 = vpop.xlane.xlu0 %3547 }
 0xb57   :  { %v3552_v21 = vsub.f32 %v9923_v53, %v3548_v58 }
 0xb58   :  { %v8880_v0 = vpop.eup %8879  ;;  %v3338_v3 = vmul.f32 1.442695, %v3335_v38 }
 0xb59   :  { %v3554_v6 = vmul.f32 1.442695, %v3552_v21  ;;  %v3340_v57 = vsel %vm137_vm0, %v8880_v0, 0.0 }
 0xb5a   :  { %8881 = vpow2.f32 %v3338_v3  ;;  %v3551_v31 = vpop.xlane.xlu0 %3550  ;;  %3341 = vadd.xlane.f32.xlu0 %v3340_v57 }
 0xb5b   :  { %8883 = vpow2.f32 %v3554_v6  ;;  %v3553_v11 = vsub.f32 %v9930_v22, %v3551_v31  ;;  %v7057_v22 = vld [vmem:[%s10686_s6 + $0x38] sm:$0xff] }
 0xb5c   :  { %7812 = vmatprep.subr.mxu1 %v7057_v22 }
 0xb5d   :  { %v3556_v8 = vmul.f32 1.442695, %v3553_v11  ;;  %7813 = vmatpush3.msra.mxu1 %v7057_v22 }
 0xb5f   :  { %8885 = vpow2.f32 %v3556_v8 }
 0xb64   :  { %v8882_v12 = vpop.eup %8881 }
 0xb65   :  { %v8884_v26 = vpop.eup %8883  ;;  %v3343_v4 = vsel %vm137_vm0, %v8882_v12, 0.0 }
 0xb66   :  { %3344 = vadd.xlane.f32.xlu1 %v3343_v4  ;;  %v3558_v53 = vsel %vm137_vm0, %v8884_v26, 0.0 }
 0xb67   :  { %3559 = vadd.xlane.f32.xlu0 %v3558_v53 }
 0xb69   :  { %v9958_v43 = vpop.eup %8885 }
 0xb6a   :  { %v3561_v39 = vsel %vm137_vm0, %v9958_v43, 0.0 }
 0xb6b   :  { %3562 = vadd.xlane.f32.xlu1 %v3561_v39 }
 0xb7c   :  { %8704 = vrot.lane.b32.xlu1 %v9461_v27, %s9197_s28 }
 0xb7d   :  { %8699 = vrot.lane.b32.xlu0 %v9457_v23, %s9197_s28 }
 0xb80   :  { %8709 = vrot.lane.b32.xlu1 %v9457_v23, %s9199_s30 }
 0xb84   :  { %8714 = vrot.lane.b32.xlu1 %v9461_v27, %s9199_s30 }
 0xbe7   :  { %v3342_v20 = vpop.xlane.xlu0 %3341 }
 0xbe8   :  { %8887 = vrcp.f32 %v3342_v20 }
 0xbf2   :  { %v8888_v9 = vpop.eup %8887 }
 0xbf3   :  { %v3345_v19 = vpop.xlane.xlu1 %3344  ;;  %v3347_v5 = vmul.f32 %v8888_v9, %v8880_v0 }
 0xbf4   :  { %v3560_v13 = vpop.xlane.xlu0 %3559  ;;  %v7808_v61 = vpop.f32.mrb[34].mxu1  ;;  %8889 = vrcp.f32 %v3345_v19  ;;  %v7123_v19 = vld [vmem:[%s10686_s6 + $0x48] sm:$0xff] }
 0xbf5   :  { %v3024_v24 = vpop.f32.mrb[35].mxu1  ;;  %8891 = vrcp.f32 %v3560_v13 }
 0xbf6   :  { %7814 = vmatprep.mubr.msk.f32.mxu1 %vm450_vm1, %v3024_v24 }
 0xbf7   :  { %7815 = vmatmul.mubr.msk.f32.vlgmr.msra.gmra.mrb[26].mxu1 %vm450_vm1, %v7808_v61 }
 0xbf8   :  { %v3563_v18 = vpop.xlane.xlu1 %3562  ;;  %v8700_v34 = vpop.permute.xlu0 %8699 }
 0xbf9   :  { %v8702_v56 = vunpack.i.h.bf16 %v8700_v34  ;;  %v8701_v47 = vunpack.i.l.bf16 %v8700_v34  ;;  %v7811_v25 = vpop.f32.mrb[36].mxu1  ;;  %8893 = vrcp.f32 %v3563_v18 }
 0xbfa   :  { %v3034_v46 = vpop.f32.mrb[37].mxu1 }
 0xbfb   :  { %7817 = vmatprep.mubr.msk.f32.mxu1 %vm450_vm1, %v3034_v46  ;;  %v8304_v28 = vpack.c.bf16 %v8702_v56, %v8701_v47  ;;  %v10006_v46 = vld [vmem:[#allocation7] sm:$0xff] }
 0xbfc   :  { %v8705_v1 = vpop.permute.xlu1 %8704  ;;  %7818 = vmatmul.mubr.msk.f32.gmra.mrb[28].mxu1 %vm450_vm1, %v7811_v25 }
 0xbfd   :  { %v8707_v30 = vunpack.i.h.bf16 %v8705_v1  ;;  %v8706_v35 = vunpack.i.l.bf16 %v8705_v1  ;;  %8305 = vmatprep.subr.bf16.mxu1 %v8304_v28  ;;  %7839 = vmatprep.mubr.msk.f32.mxu1 %vm137_vm0, %v3347_v5  ;;  %v9035_v1 = vld [vmem:[%s10681_s1 + $0x8] sm:$0xff] }
 0xbfe   :  { %8307 = vmatpush3.bf16.msra.mxu1 %v8304_v28  ;;  %v8890_v16 = vpop.eup %8889  ;;  %v10010_v28 = vrot.slane %v10006_v46, %v9408_v51 }
 0xbff   :  { %v8308_v62 = vpack.c.bf16 %v8707_v30, %v8706_v35  ;;  %v8892_v60 = vpop.eup %8891  ;;  %v3349_v38 = vmul.f32 %v8890_v16, %v8882_v12 }
 0xc00   :  { %v8710_v37 = vpop.permute.xlu1 %8709  ;;  %v3565_v3 = vmul.f32 %v8892_v60, %v8884_v26 }
 0xc01   :  { %v8712_v63 = vunpack.i.h.bf16 %v8710_v37  ;;  %v8711_v14 = vunpack.i.l.bf16 %v8710_v37  ;;  %8309 = vmatprep.subr.bf16.mxu1 %v8308_v62  ;;  %v9036_v37 = vld [vmem:[%s10681_s1 + $0x10] sm:$0xff] }
 0xc02   :  { %8311 = vmatpush3.bf16.msra.mxu1 %v8308_v62 }
 0xc03   :  { %v8324_v58 = vpack.c.bf16 %v8712_v63, %v8711_v14  ;;  %v8894_v39 = vpop.eup %8893 }
 0xc04   :  { %v8715_v21 = vpop.permute.xlu1 %8714  ;;  %v7884_v0 = vpop.f32.mrb[32].mxu0  ;;  %v3567_v20 = vmul.f32 %v8894_v39, %v9958_v43  ;;  %v7122_v43 = vld [vmem:[%s10686_s6 + $0x40] sm:$0xff] }
 0xc05   :  { %v8717_v6 = vunpack.i.h.bf16 %v8715_v21  ;;  %v8716_v57 = vunpack.i.l.bf16 %v8715_v21  ;;  %7840 = vmatmul.mubr.msk.f32.vlgmr.msra.gmra.mrb[38].mxu1 %vm137_vm0, %v3349_v38  ;;  %8325 = vmatprep.subr.bf16.mxu1 %v8324_v58  ;;  %v3923_v31 = vmul.f32 0.35355338, %v7884_v0  ;;  %v3913_v11 = vpop.f32.mrb[33].mxu0 }
 0xc06   :  { %8327 = vmatpush3.bf16.msra.mxu1 %v8324_v58  ;;  %7861 = vmatprep.mubr.msk.f32.mxu1 %vm137_vm0, %v3565_v3  ;;  %v3922_v8 = vmul.f32 0.35355338, %v3913_v11 }
 0xc07   :  { %v3925_v4 = vadd.f32 %v3923_v31, %v9609_v7  ;;  %v8328_v53 = vpack.c.bf16 %v8717_v6, %v8716_v57 }
 0xc08   :  { %v3924_v12 = vadd.f32 %v3922_v8, %v9605_v48 }
 0xc09   :  { %8329 = vmatprep.subr.bf16.mxu1 %v8328_v53  ;;  %v3929_v26 = vsel %vm137_vm0, %v3925_v4, -inf }
 0xc0a   :  { %8331 = vmatpush3.bf16.msra.mxu1 %v8328_v53  ;;  %3930 = vmax.xlane.f32.xlu1 %v3929_v26  ;;  %v3926_v22 = vsel %vm137_vm0, %v3924_v12, -inf }
 0xc0b   :  { %3927 = vmax.xlane.f32.xlu0 %v3926_v22  ;;  %7864 = vmatprep.subr.mxu1 %v7123_v19 }
 0xc0d   :  { %7862 = vmatmul.mubr.msk.f32.vlgmr.msra.gmra.mrb[40].mxu1 %vm137_vm0, %v3567_v20 }
 0xc0e   :  { %7865 = vmatpush3.msra.mxu1 %v7123_v19  ;;  %v7124_v19 = vld [vmem:[%s10686_s6 + $0x50] sm:$0xff] }
 0xc0f   :  { %7869 = vmatprep.subr.mxu1 %v7122_v43 }
 0xc1b   :  { %8724 = vrot.lane.b32.xlu1 %v9461_v27, %s9200_s15 }
 0xc1f   :  { %8729 = vrot.lane.b32.xlu1 %v9457_v23, %s9204_s8 }
 0xc23   :  { %8734 = vrot.lane.b32.xlu1 %v9461_v27, %s9204_s8 }
 0xc27   :  { %4126 = vrot.lane.b32.xlu1 %v9385_v44, %s9192_s22 }
 0xc97   :  { %v3931_v13 = vpop.xlane.xlu1 %3930 }
 0xc98   :  { %v3933_v61 = vsub.f32 %v3925_v4, %v3931_v13  ;;  %v3928_v24 = vpop.xlane.xlu0 %3927 }
 0xc99   :  { %v3932_v9 = vsub.f32 %v3924_v12, %v3928_v24 }
 0xc9a   :  { %v3936_v18 = vmul.f32 1.442695, %v3933_v61 }
 0xc9b   :  { %v3934_v34 = vmul.f32 1.442695, %v3932_v9  ;;  %v8725_v6 = vpop.permute.xlu1 %8724 }
 0xc9c   :  { %8895 = vpow2.f32 %v3936_v18  ;;  %v8727_v31 = vunpack.i.h.bf16 %v8725_v6  ;;  %v8726_v11 = vunpack.i.l.bf16 %v8725_v6 }
 0xc9d   :  { %8897 = vpow2.f32 %v3934_v34 }
 0xc9e   :  { %v8348_v39 = vpack.c.bf16 %v8727_v31, %v8726_v11 }
 0xc9f   :  { %v8730_v12 = vpop.permute.xlu1 %8729 }
 0xca0   :  { %v8731_v13 = vunpack.i.l.bf16 %v8730_v12 }
 0xca3   :  { %v8735_v9 = vpop.permute.xlu1 %8734 }
 0xca4   :  { %v8737_v18 = vunpack.i.h.bf16 %v8735_v9  ;;  %v8736_v34 = vunpack.i.l.bf16 %v8735_v9 }
 0xca6   :  { %v8896_v44 = vpop.eup %8895 }
 0xca7   :  { %v3941_v56 = vsel %vm137_vm0, %v8896_v44, 0.0  ;;  %v8898_v47 = vpop.eup %8897 }
 0xca8   :  { %3942 = vadd.xlane.f32.xlu0 %v3941_v56  ;;  %v3938_v25 = vsel %vm137_vm0, %v8898_v47, 0.0 }
 0xcac   :  { %3939 = vadd.xlane.f32.xlu0 %v3938_v25  ;;  %v8358_v25 = vpack.c.bf16 %v8737_v18, %v8736_v34 }
 0xcc2   :  { %8719 = vrot.lane.b32.xlu0 %v9457_v23, %s9200_s15 }
 0xcc6   :  { %4124 = vrot.lane.b32.xlu0 %v9378_v40, %s9192_s22 }
 0xcca   :  { %v7816_v5 = vpop.f32.mrb[26].mxu1 }
 0xccb   :  { %v3145_v30 = vadd.f32 %v9035_v1, %v7816_v5  ;;  %v10015_v35 = vpop.f32.mrb[27].mxu1 }
 0xccd   :  { %v10018_v62 = vadd.f32 %v10010_v28, %v3145_v30 }
 0xccf   :  { %v10020_v16 = vpop.f32.mrb[28].mxu1 }
 0xcd0   :  { %v3131_v40 = vpop.f32.mrb[29].mxu1 }
 0xcd1   :  { %v3146_v60 = vadd.f32 %v9036_v37, %v3131_v40 }
 0xcd3   :  { %v10026_v63 = vadd.f32 %v10010_v28, %v3146_v60 }
 0xcd8   :  { %v7841_v14 = vpop.f32.mrb[38].mxu1 }
 0xcd9   :  { %v3434_v38 = vpop.f32.mrb[39].mxu1 }
 0xce0   :  { %v7863_v58 = vpop.f32.mrb[40].mxu1 }
 0xce1   :  { %v3652_v21 = vpop.f32.mrb[41].mxu1 }
 0xce2   :  { %7866 = vmatprep.mubr.msk.f32.mxu1 %vm450_vm1, %v3652_v21 }
 0xce3   :  { %7867 = vmatmul.mubr.msk.f32.vlgmr.msra.gmra.mrb[42].mxu1 %vm450_vm1, %v7863_v58 }
 0xce4   :  { %7871 = vmatprep.mubr.msk.f32.mxu1 %vm450_vm1, %v3434_v38  ;;  %7870 = vmatpush3.msra.mxu1 %v7122_v43  ;;  %v8732_v43 = vunpack.i.h.bf16 %v8730_v12 }
 0xce6   :  { %v8352_v24 = vpack.c.bf16 %v8732_v43, %v8731_v13 }
 0xceb   :  { %7872 = vmatmul.mubr.msk.f32.vlgmr.msra.gmra.mrb[42].mxu1 %vm450_vm1, %v7841_v14 }
 0xd35   :  { %v3943_v0 = vpop.xlane.xlu0 %3942 }
 0xd39   :  { %v3940_v3 = vpop.xlane.xlu0 %3939 }
 0xd3a   :  { %8899 = vrcp.f32 %v3940_v3 }
 0xd3b   :  { %8901 = vrcp.f32 %v3943_v0 }
 0xd3d   :  { %v8720_v57 = vpop.permute.xlu0 %8719 }
 0xd3e   :  { %v8722_v8 = vunpack.i.h.bf16 %v8720_v57  ;;  %v8721_v4 = vunpack.i.l.bf16 %v8720_v57 }
 0xd40   :  { %v8344_v53 = vpack.c.bf16 %v8722_v8, %v8721_v4 }
 0xd41   :  { %v4125_v5 = vpop.permute.xlu0 %4124 }
 0xd42   :  { %8345 = vmatprep.subr.bf16.mxu1 %v8344_v53 }
 0xd43   :  { %8347 = vmatpush3.bf16.msra.mxu1 %v8344_v53 }
 0xd44   :  { %v8900_v26 = vpop.eup %8899  ;;  %8349 = vmatprep.subr.bf16.mxu1 %v8348_v39 }
 0xd45   :  { %v8902_v22 = vpop.eup %8901  ;;  %v3945_v20 = vmul.f32 %v8900_v26, %v8898_v47 }
 0xd46   :  { %v3947_v61 = vmul.f32 %v8902_v22, %v8896_v44  ;;  %v4127_v44 = vpop.permute.xlu1 %4126 }
 0xd47   :  { %8351 = vmatpush3.bf16.msra.mxu1 %v8348_v39  ;;  %7893 = vmatprep.mubr.msk.f32.mxu1 %vm137_vm0, %v3945_v20 }
 0xd48   :  { %7896 = vmatprep.subr.mxu1 %v7124_v19 }
 0xd4a   :  { %7894 = vmatmul.mubr.msk.f32.vlgmr.msra.gmra.mrb[44].mxu1 %vm137_vm0, %v3947_v61 }
 0xd4b   :  { %7897 = vmatpush3.msra.mxu1 %v7124_v19 }
 0xd4c   :  { %8354 = vmatprep.subr.msk.bf16.mxu1 %vm9426_vm2, %v8352_v24 }
 0xe1d   :  { %v7895_v56 = vpop.f32.mrb[44].mxu1 }
 0xe1e   :  { %v4032_v47 = vpop.f32.mrb[45].mxu1 }
 0xe1f   :  { %7898 = vmatprep.mubr.msk.f32.mxu1 %vm450_vm1, %v4032_v47 }
 0xe20   :  { %7899 = vmatmul.mubr.msk.f32.vlgmr.msra.gmra.mrb[42].mxu1 %vm450_vm1, %v7895_v56 }
 0xe21   :  { %8357 = vmatpush3.bf16.xpose.msk.msra.mxu1 %vm9426_vm2, %v8352_v24  ;;  %7909 = vmatprep.mubr.msk.f32.mxu1 %vm450_vm1, %v4125_v5 }
 0xe22   :  { %8360 = vmatprep.subr.msk.bf16.mxu1 %vm9426_vm2, %v8358_v25 }
 0xe29   :  { %8363 = vmatpush3.bf16.xpose.msk.msra.mxu1 %vm9426_vm2, %v8358_v25 }
 0xe30   :  { %7910 = vmatmul.mubr.msk.f32.vlgmr.msra.gmra.mrb[46].mxu1 %vm450_vm1, %v4127_v44 }
 0xf03   :  { %v7911_v1 = vpop.f32.mrb[46].mxu1 }
 0xf04   :  { %v4224_v30 = vmul.f32 0.35355338, %v7911_v1  ;;  %v4214_v40 = vpop.f32.mrb[47].mxu1 }
 0xf05   :  { %v4223_v37 = vmul.f32 0.35355338, %v4214_v40 }
 0xf06   :  { %v4226_v60 = vadd.f32 %v4224_v30, %v9609_v7 }
 0xf07   :  { %v4225_v14 = vadd.f32 %v4223_v37, %v9605_v48  ;;  %v7125_v37 = vld [vmem:[%s10686_s6 + $0x58] sm:$0xff] }
 0xf08   :  { %v4230_v38 = vsel %vm137_vm0, %v4226_v60, -inf  ;;  %7923 = vmatprep.subr.mxu1 %v7125_v37 }
 0xf09   :  { %4231 = vmax.xlane.f32.xlu1 %v4230_v38  ;;  %v4227_v58 = vsel %vm137_vm0, %v4225_v14, -inf  ;;  %7924 = vmatpush3.msra.mxu1 %v7125_v37 }
 0xf0a   :  { %4228 = vmax.xlane.f32.xlu0 %v4227_v58 }
 0xf1a   :  { %8744 = vrot.lane.b32.xlu1 %v9461_v27, %s9202_s7 }
 0xf1e   :  { %8749 = vrot.lane.b32.xlu1 %v9395_v49, %s9196_s5 }
 0xf22   :  { %4476 = vrot.lane.b32.xlu1 %v9416_v55, %s9207_s24 }
 0xf26   :  { %4480 = vrot.lane.b32.xlu1 %v9523_v52, %s9207_s24 }
 0xf2a   :  { %4738 = vrot.lane.b32.xlu1 %v9416_v55, %s9208_s25 }
 0xf2e   :  { %4742 = vrot.lane.b32.xlu1 %v9523_v52, %s9208_s25 }
 0xf96   :  { %v4232_v48 = vpop.xlane.xlu1 %4231 }
 0xf97   :  { %v4234_v7 = vsub.f32 %v4226_v60, %v4232_v48  ;;  %v4229_v21 = vpop.xlane.xlu0 %4228 }
 0xf98   :  { %v4233_v0 = vsub.f32 %v4225_v14, %v4229_v21 }
 0xf99   :  { %v4237_v27 = vmul.f32 1.442695, %v4234_v7 }
 0xf9a   :  { %v4235_v3 = vmul.f32 1.442695, %v4233_v0  ;;  %v8745_v53 = vpop.permute.xlu1 %8744 }
 0xf9b   :  { %8903 = vpow2.f32 %v4237_v27  ;;  %v8747_v12 = vunpack.i.h.bf16 %v8745_v53 }
 0xf9c   :  { %8905 = vpow2.f32 %v4235_v3 }
 0xf9e   :  { %v8750_v13 = vpop.permute.xlu1 %8749 }
 0xf9f   :  { %v8752_v34 = vunpack.i.h.bf16 %v8750_v13  ;;  %v8751_v56 = vunpack.i.l.bf16 %v8750_v13 }
 0xfa1   :  { %v8382_v47 = vpack.c.bf16 %v8752_v34, %v8751_v56 }
 0xfa2   :  { %v4477_v18 = vpop.permute.xlu1 %4476 }
 0xfa5   :  { %v8904_v6 = vpop.eup %8903 }
 0xfa6   :  { %v4242_v57 = vsel %vm137_vm0, %v8904_v6, 0.0  ;;  %v8906_v31 = vpop.eup %8905  ;;  %v4481_v5 = vpop.permute.xlu1 %4480 }
 0xfa7   :  { %4243 = vadd.xlane.f32.xlu0 %v4242_v57  ;;  %v4239_v11 = vsel %vm137_vm0, %v8906_v31, 0.0 }
 0xfaa   :  { %v4739_v1 = vpop.permute.xlu1 %4738 }
 0xfab   :  { %4240 = vadd.xlane.f32.xlu0 %v4239_v11 }
 0xfae   :  { %v4743_v40 = vpop.permute.xlu1 %4742 }
 0xfc1   :  { %8739 = vrot.lane.b32.xlu0 %v9457_v23, %s9202_s7  ;;  %v8746_v23 = vunpack.i.l.bf16 %v8745_v53 }
 0xfc3   :  { %v8368_v19 = vpack.c.bf16 %v8747_v12, %v8746_v23 }
 0xfc5   :  { %4478 = vrot.lane.b32.xlu0 %v9420_v59, %s9207_s24 }
 0xfc9   :  { %4482 = vrot.lane.b32.xlu0 %v9527_v54, %s9207_s24 }
 0xfcd   :  { %4740 = vrot.lane.b32.xlu0 %v9420_v59, %s9208_s25 }
 0xfd1   :  { %4744 = vrot.lane.b32.xlu0 %v9527_v54, %s9208_s25 }
0x1034   :  { %v4244_v8 = vpop.xlane.xlu0 %4243 }
0x1038   :  { %v4241_v4 = vpop.xlane.xlu0 %4240 }
0x1039   :  { %8907 = vrcp.f32 %v4241_v4 }
0x103a   :  { %8909 = vrcp.f32 %v4244_v8 }
0x103c   :  { %v8740_v39 = vpop.permute.xlu0 %8739 }
0x103d   :  { %v8742_v26 = vunpack.i.h.bf16 %v8740_v39  ;;  %v8741_v22 = vunpack.i.l.bf16 %v8740_v39 }
0x103f   :  { %v8364_v20 = vpack.c.bf16 %v8742_v26, %v8741_v22 }
0x1040   :  { %v4479_v25 = vpop.permute.xlu0 %4478 }
0x1041   :  { %8365 = vmatprep.subr.bf16.mxu0 %v8364_v20 }
0x1042   :  { %8367 = vmatpush3.bf16.msra.mxu0 %v8364_v20 }
0x1043   :  { %v8908_v43 = vpop.eup %8907  ;;  %8369 = vmatprep.subr.bf16.mxu0 %v8368_v19 }
0x1044   :  { %v8910_v61 = vpop.eup %8909  ;;  %v4246_v24 = vmul.f32 %v8908_v43, %v8906_v31  ;;  %v4483_v44 = vpop.permute.xlu0 %4482 }
0x1045   :  { %v4248_v9 = vmul.f32 %v8910_v61, %v8904_v6  ;;  %v9037_v6 = vld [vmem:[%s10682_s2] ss:$0 sm:$0xff] }
0x1046   :  { %8371 = vmatpush3.bf16.msra.mxu0 %v8368_v19  ;;  %7920 = vmatprep.mubr.msk.f32.mxu0 %vm137_vm0, %v4246_v24  ;;  %v10109_v57 = vsel %vm9613_vm6, %v9037_v6, -1e+30  ;;  %v10114_v8 = vsel %vm9624_vm7, %v9037_v6, -1e+30 }
0x1047   :  { %8374 = vmatprep.subr.msk.bf16.mxu0 %vm9426_vm2, %v9397_v50 }
0x1048   :  { %v4741_v30 = vpop.permute.xlu0 %4740 }
0x1049   :  { %7921 = vmatmul.mubr.msk.f32.vlgmr.msra.gmra.mrb[34].mxu0 %vm137_vm0, %v4248_v9 }
0x104a   :  { %7932 = vmatprep.mubr.msk.f32.mxu0 %vm450_vm1, %v4477_v18 }
0x104f   :  { %8377 = vmatpush3.bf16.xpose.msk.msra.mxu0 %vm9426_vm2, %v9397_v50  ;;  %v4745_v50 = vpop.permute.xlu0 %4744 }
0x1050   :  { %8384 = vmatprep.subr.msk.bf16.mxu0 %vm9426_vm2, %v8382_v47 }
0x1056   :  { %7933 = vmatmul.mubr.msk.f32.vlgmr.msra.gmra.mrb[36].mxu0 %vm450_vm1, %v4479_v25 }
0x1057   :  { %7935 = vmatprep.mubr.msk.f32.mxu0 %vm450_vm1, %v4481_v5  ;;  %8387 = vmatpush3.bf16.xpose.msk.msra.mxu0 %vm9426_vm2, %v8382_v47 }
0x105a   :  { %7936 = vmatmul.mubr.msk.f32.gmra.mrb[38].mxu0 %vm450_vm1, %v4483_v44 }
0x105b   :  { %7952 = vmatprep.mubr.msk.f32.mxu0 %vm450_vm1, %v4739_v1 }
0x105e   :  { %7953 = vmatmul.mubr.msk.f32.vlgmr.msra.gmra.mrb[40].mxu0 %vm450_vm1, %v4741_v30 }
0x105f   :  { %7955 = vmatprep.mubr.msk.f32.mxu0 %vm450_vm1, %v4743_v40 }
0x1062   :  { %7956 = vmatmul.mubr.msk.f32.gmra.mrb[42].mxu0 %vm450_vm1, %v4745_v50 }
0x111c   :  { %v7922_v60 = vpop.f32.mrb[34].mxu0 }
0x111d   :  { %v4333_v14 = vpop.f32.mrb[35].mxu0 }
0x111e   :  { %7925 = vmatprep.mubr.msk.f32.mxu1 %vm450_vm1, %v4333_v14 }
0x111f   :  { %7926 = vmatmul.mubr.msk.f32.vlgmr.msra.gmra.mrb[42].mxu1 %vm450_vm1, %v7922_v60 }
0x1129   :  { %v7934_v38 = vpop.f32.mrb[36].mxu0 }
0x112a   :  { %v4584_v58 = vmul.f32 0.35355338, %v7934_v38  ;;  %v4564_v48 = vpop.f32.mrb[37].mxu0 }
0x112b   :  { %v4583_v7 = vmul.f32 0.35355338, %v4564_v48 }
0x112c   :  { %v4588_v21 = vadd.f32 %v4584_v58, %v9483_v41 }
0x112d   :  { %v4587_v0 = vadd.f32 %v4583_v7, %v9487_v45  ;;  %v7937_v27 = vpop.f32.mrb[38].mxu0 }
0x112e   :  { %v4586_v3 = vmul.f32 0.35355338, %v7937_v27  ;;  %v4574_v31 = vpop.f32.mrb[39].mxu0  ;;  %v4594_v11 = vsel %vm538_vm5, %v4588_v21, -inf }
0x112f   :  { %v4585_v4 = vmul.f32 0.35355338, %v4574_v31  ;;  %4595 = vmax.xlane.f32.xlu0 %v4594_v11  ;;  %v4591_v53 = vsel %vm538_vm5, %v4587_v0, -inf }
0x1130   :  { %4592 = vmax.xlane.f32.xlu1 %v4591_v53  ;;  %v4590_v23 = vadd.f32 %v4586_v3, %v10114_v8 }
0x1131   :  { %v4589_v39 = vadd.f32 %v4585_v4, %v10109_v57  ;;  %v7954_v12 = vpop.f32.mrb[40].mxu0 }
0x1132   :  { %v4828_v10 = vpop.f32.mrb[41].mxu0  ;;  %v4848_v26 = vmul.f32 0.35355338, %v7954_v12  ;;  %v4600_v13 = vsel %vm538_vm5, %v4590_v23, -inf }
0x1133   :  { %v4847_v22 = vmul.f32 0.35355338, %v4828_v10  ;;  %v4597_v20 = vsel %vm538_vm5, %v4589_v39, -inf }
0x1134   :  { %4598 = vmax.xlane.f32.xlu0 %v4597_v20  ;;  %v4852_v61 = vadd.f32 %v4848_v26, %v9483_v41 }
0x1135   :  { %v4851_v15 = vadd.f32 %v4847_v22, %v9487_v45  ;;  %v7957_v19 = vpop.f32.mrb[42].mxu0 }
0x1136   :  { %v4838_v43 = vpop.f32.mrb[43].mxu0  ;;  %v4850_v24 = vmul.f32 0.35355338, %v7957_v19  ;;  %v4858_v25 = vsel %vm538_vm5, %v4852_v61, -inf }
0x1137   :  { %v4849_v9 = vmul.f32 0.35355338, %v4838_v43  ;;  %v4855_v18 = vsel %vm538_vm5, %v4851_v15, -inf }
0x1138   :  { %4856 = vmax.xlane.f32.xlu1 %v4855_v18  ;;  %4601 = vmax.xlane.f32.xlu0 %v4600_v13  ;;  %v4854_v56 = vadd.f32 %v4850_v24, %v10114_v8 }
0x1139   :  { %v10125_v34 = vadd.f32 %v4849_v9, %v10109_v57 }
0x113a   :  { %v4864_v5 = vsel %vm538_vm5, %v4854_v56, -inf }
0x113b   :  { %v4861_v47 = vsel %vm538_vm5, %v10125_v34, -inf }
0x113c   :  { %4862 = vmax.xlane.f32.xlu1 %v4861_v47  ;;  %4859 = vmax.xlane.f32.xlu0 %v4858_v25 }
0x1140   :  { %4865 = vmax.xlane.f32.xlu0 %v4864_v5 }
0x114d   :  { %8754 = vrot.lane.b32.xlu1 %v9395_v49, %s9197_s28 }
0x11bc   :  { %v4596_v44 = vpop.xlane.xlu0 %4595 }
0x11bd   :  { %v4604_v1 = vsub.f32 %v4588_v21, %v4596_v44  ;;  %v4593_v30 = vpop.xlane.xlu1 %4592 }
0x11be   :  { %v4603_v40 = vsub.f32 %v4587_v0, %v4593_v30 }
0x11bf   :  { %v4609_v50 = vmul.f32 1.442695, %v4604_v1 }
0x11c0   :  { %v4607_v37 = vmul.f32 1.442695, %v4603_v40 }
0x11c1   :  { %8911 = vpow2.f32 %v4609_v50  ;;  %v4599_v60 = vpop.xlane.xlu0 %4598 }
0x11c2   :  { %8913 = vpow2.f32 %v4607_v37  ;;  %v4605_v14 = vsub.f32 %v4589_v39, %v4599_v60 }
0x11c4   :  { %v4611_v38 = vmul.f32 1.442695, %v4605_v14 }
0x11c5   :  { %v4857_v58 = vpop.xlane.xlu1 %4856  ;;  %v4602_v48 = vpop.xlane.xlu0 %4601 }
0x11c6   :  { %8915 = vpow2.f32 %v4611_v38  ;;  %v4867_v7 = vsub.f32 %v4851_v15, %v4857_v58  ;;  %v4606_v27 = vsub.f32 %v4590_v23, %v4602_v48 }
0x11c8   :  { %v4871_v3 = vmul.f32 1.442695, %v4867_v7  ;;  %v4613_v6 = vmul.f32 1.442695, %v4606_v27 }
0x11c9   :  { %v4863_v31 = vpop.xlane.xlu1 %4862  ;;  %v4860_v11 = vpop.xlane.xlu0 %4859 }
0x11ca   :  { %8917 = vpow2.f32 %v4871_v3  ;;  %v4868_v21 = vsub.f32 %v4852_v61, %v4860_v11  ;;  %v4869_v30 = vsub.f32 %v10125_v34, %v4863_v31 }
0x11cb   :  { %v8912_v4 = vpop.eup %8911  ;;  %8919 = vpow2.f32 %v4613_v6 }
0x11cc   :  { %v8914_v0 = vpop.eup %8913  ;;  %v4873_v53 = vmul.f32 1.442695, %v4868_v21  ;;  %v4618_v12 = vsel %vm538_vm5, %v8912_v4, 0.0  ;;  %v4875_v40 = vmul.f32 1.442695, %v4869_v30 }
0x11cd   :  { %v8755_v10 = vpop.permute.xlu1 %8754  ;;  %4619 = vadd.xlane.f32.xlu0 %v4618_v12  ;;  %v4866_v39 = vpop.xlane.xlu0 %4865  ;;  %v4615_v26 = vsel %vm538_vm5, %v8914_v0, 0.0 }
0x11ce   :  { %v8757_v22 = vunpack.i.h.bf16 %v8755_v10  ;;  %v8756_v20 = vunpack.i.l.bf16 %v8755_v10  ;;  %v4870_v23 = vsub.f32 %v4854_v56, %v4866_v39  ;;  %4616 = vadd.xlane.f32.xlu1 %v4615_v26  ;;  %8921 = vpow2.f32 %v4873_v53 }
0x11d0   :  { %v8916_v15 = vpop.eup %8915  ;;  %v8378_v19 = vpack.c.bf16 %v8757_v22, %v8756_v20  ;;  %v4877_v43 = vmul.f32 1.442695, %v4870_v23 }
0x11d1   :  { %v4621_v13 = vsel %vm538_vm5, %v8916_v15, 0.0 }
0x11d2   :  { %8923 = vpow2.f32 %v4877_v43  ;;  %8379 = vmatprep.subr.bf16.mxu1 %v8378_v19  ;;  %4622 = vadd.xlane.f32.xlu1 %v4621_v13 }
0x11d3   :  { %8381 = vmatpush3.bf16.msra.mxu1 %v8378_v19  ;;  %8925 = vpow2.f32 %v4875_v40 }
0x11d4   :  { %v8918_v61 = vpop.eup %8917 }
0x11d5   :  { %v8920_v24 = vpop.eup %8919  ;;  %v4879_v9 = vsel %vm538_vm5, %v8918_v61, 0.0 }
0x11d6   :  { %4880 = vadd.xlane.f32.xlu1 %v4879_v9  ;;  %v4624_v18 = vsel %vm538_vm5, %v8920_v24, 0.0 }
0x11d7   :  { %4625 = vadd.xlane.f32.xlu0 %v4624_v18 }
0x11d8   :  { %v8922_v56 = vpop.eup %8921 }
0x11d9   :  { %v4882_v47 = vsel %vm538_vm5, %v8922_v56, 0.0 }
0x11db   :  { %4883 = vadd.xlane.f32.xlu0 %v4882_v47 }
0x11dc   :  { %v10140_v25 = vpop.eup %8923 }
0x11dd   :  { %v4888_v5 = vsel %vm538_vm5, %v10140_v25, 0.0  ;;  %v8926_v50 = vpop.eup %8925 }
0x11de   :  { %v4885_v37 = vsel %vm538_vm5, %v8926_v50, 0.0 }
0x11df   :  { %4889 = vadd.xlane.f32.xlu0 %v4888_v5 }
0x11e7   :  { %8764 = vrot.lane.b32.xlu1 %v9395_v49, %s9198_s29 }
0x11eb   :  { %5196 = vrot.lane.b32.xlu1 %v9416_v55, %s9189_s14 }
0x11ef   :  { %5198 = vrot.lane.b32.xlu1 %v9420_v59, %s9189_s14 }
0x11f2   :  { %v10150_v44 = vpop.f32.mrb[42].mxu1 }
0x11f3   :  { %v10152_v1 = vpop.f32.mrb[43].mxu1 }
0x11f5   :  { %8759 = vrot.lane.b32.xlu0 %v9395_v49, %s9199_s30 }
0x11f9   :  { %5200 = vrot.lane.b32.xlu0 %v9523_v52, %s9189_s14 }
0x1213   :  { %4886 = vadd.xlane.f32.xlu1 %v4885_v37 }
0x1224   :  { %5202 = vrot.lane.b32.xlu1 %v9527_v54, %s9189_s14 }
0x125a   :  { %v4620_v60 = vpop.xlane.xlu0 %4619 }
0x125b   :  { %8927 = vrcp.f32 %v4620_v60  ;;  %v4617_v14 = vpop.xlane.xlu1 %4616 }
0x125c   :  { %8929 = vrcp.f32 %v4617_v14 }
0x125f   :  { %v4623_v38 = vpop.xlane.xlu1 %4622 }
0x1260   :  { %8931 = vrcp.f32 %v4623_v38 }
0x1263   :  { %v4881_v58 = vpop.xlane.xlu1 %4880 }
0x1264   :  { %8933 = vrcp.f32 %v4881_v58  ;;  %v4626_v48 = vpop.xlane.xlu0 %4625 }
0x1265   :  { %v8928_v7 = vpop.eup %8927  ;;  %8935 = vrcp.f32 %v4626_v48 }
0x1266   :  { %v8930_v34 = vpop.eup %8929  ;;  %v4630_v3 = vmul.f32 %v8928_v7, %v8912_v4 }
0x1267   :  { %v4628_v27 = vmul.f32 %v8930_v34, %v8914_v0  ;;  %v8765_v12 = vpop.permute.xlu1 %8764 }
0x1268   :  { %v4884_v6 = vpop.xlane.xlu0 %4883  ;;  %v8767_v20 = vunpack.i.h.bf16 %v8765_v12  ;;  %v8766_v0 = vunpack.i.l.bf16 %v8765_v12 }
0x1269   :  { %7942 = vmatprep.mubr.msk.f32.mxu1 %vm538_vm5, %v4628_v27  ;;  %8937 = vrcp.f32 %v4884_v6 }
0x126a   :  { %v8932_v31 = vpop.eup %8931  ;;  %7943 = vmatmul.mubr.msk.f32.vlgmr.msra.gmra.mrb[48].mxu1 %vm538_vm5, %v4630_v3 }
0x126b   :  { %v4632_v11 = vmul.f32 %v8932_v31, %v8916_v15  ;;  %v8392_v15 = vpack.c.bf16 %v8767_v20, %v8766_v0 }
0x126c   :  { %v4890_v21 = vpop.xlane.xlu0 %4889 }
0x126d   :  { %7945 = vmatprep.mubr.msk.f32.mxu1 %vm538_vm5, %v4632_v11  ;;  %8939 = vrcp.f32 %v4890_v21 }
0x126e   :  { %v8934_v53 = vpop.eup %8933 }
0x126f   :  { %v8936_v10 = vpop.eup %8935  ;;  %v4892_v39 = vmul.f32 %v8934_v53, %v8918_v61  ;;  %v5197_v61 = vpop.permute.xlu1 %5196 }
0x1270   :  { %v8760_v26 = vpop.permute.xlu0 %8759  ;;  %v4634_v22 = vmul.f32 %v8936_v10, %v8920_v24 }
0x1271   :  { %v8762_v4 = vunpack.i.h.bf16 %v8760_v26  ;;  %v8761_v23 = vunpack.i.l.bf16 %v8760_v26 }
0x1272   :  { %7946 = vmatmul.mubr.msk.f32.gmra.mrb[50].mxu1 %vm538_vm5, %v4634_v22 }
0x1273   :  { %v8388_v19 = vpack.c.bf16 %v8762_v4, %v8761_v23  ;;  %7962 = vmatprep.mubr.msk.f32.mxu1 %vm538_vm5, %v4892_v39  ;;  %v8938_v43 = vpop.eup %8937  ;;  %v5199_v24 = vpop.permute.xlu1 %5198 }
0x1274   :  { %v4894_v13 = vmul.f32 %v8938_v43, %v8922_v56  ;;  %v5201_v56 = vpop.permute.xlu0 %5200 }
0x1275   :  { %8389 = vmatprep.subr.bf16.mxu1 %v8388_v19 }
0x1276   :  { %8391 = vmatpush3.bf16.msra.mxu1 %v8388_v19 }
0x1277   :  { %8394 = vmatprep.subr.msk.bf16.mxu1 %vm9426_vm2, %v8392_v15  ;;  %v8940_v18 = vpop.eup %8939 }
0x1278   :  { %v4898_v30 = vmul.f32 %v8940_v18, %v10140_v25  ;;  %v7166_v25 = vld [vmem:[%s10686_s6 + $0x60] sm:$0xff] }
0x1279   :  { %7963 = vmatmul.mubr.msk.f32.vlgmr.msra.gmra.mrb[52].mxu1 %vm538_vm5, %v4894_v13 }
0x127f   :  { %8397 = vmatpush3.bf16.xpose.msk.msra.mxu1 %vm9426_vm2, %v8392_v15 }
0x12a0   :  { %v4887_v9 = vpop.xlane.xlu1 %4886 }
0x12a1   :  { %8941 = vrcp.f32 %v4887_v9 }
0x12a4   :  { %v5203_v40 = vpop.permute.xlu1 %5202 }
0x12ab   :  { %v8942_v47 = vpop.eup %8941 }
0x12ac   :  { %v4896_v5 = vmul.f32 %v8942_v47, %v8926_v50  ;;  %v7167_v50 = vld [vmem:[%s10686_s6 + $0x68] sm:$0xff] }
0x12ad   :  { %7968 = vmatprep.subr.mxu0 %v7167_v50 }
0x12ae   :  { %7965 = vmatprep.mubr.msk.f32.mxu1 %vm538_vm5, %v4896_v5  ;;  %7969 = vmatpush3.msra.mxu0 %v7167_v50 }
0x12af   :  { %7966 = vmatmul.mubr.msk.f32.gmra.mrb[54].mxu1 %vm538_vm5, %v4898_v30  ;;  %7976 = vmatprep.subr.mxu0 %v7166_v25 }
0x12b0   :  { %7988 = vmatprep.mubr.msk.f32.mxu1 %vm450_vm1, %v5197_v61 }
0x12b3   :  { %7989 = vmatmul.mubr.msk.f32.vlgmr.msra.gmra.mrb[56].mxu1 %vm450_vm1, %v5199_v24 }
0x12b4   :  { %7991 = vmatprep.mubr.msk.f32.mxu1 %vm450_vm1, %v5201_v56 }
0x12b7   :  { %7992 = vmatmul.mubr.msk.f32.gmra.mrb[58].mxu1 %vm450_vm1, %v5203_v40 }
0x133d   :  { %v7944_v37 = vpop.f32.mrb[48].mxu1 }
0x133e   :  { %v4719_v60 = vpop.f32.mrb[49].mxu1 }
0x1345   :  { %v7947_v14 = vpop.f32.mrb[50].mxu1 }
0x1346   :  { %v4729_v38 = vpop.f32.mrb[51].mxu1 }
0x134c   :  { %v7964_v58 = vpop.f32.mrb[52].mxu1 }
0x134d   :  { %v4983_v48 = vpop.f32.mrb[53].mxu1 }
0x134e   :  { %7970 = vmatprep.mubr.msk.f32.mxu0 %vm450_vm1, %v4983_v48 }
0x134f   :  { %7971 = vmatmul.mubr.msk.f32.vlgmr.msra.gmra.mrb[44].mxu0 %vm450_vm1, %v7964_v58 }
0x1350   :  { %7977 = vmatpush3.msra.mxu0 %v7166_v25 }
0x1382   :  { %v7967_v7 = vpop.f32.mrb[54].mxu1 }
0x1383   :  { %v4993_v34 = vpop.f32.mrb[55].mxu1 }
0x1384   :  { %7973 = vmatprep.mubr.msk.f32.mxu0 %vm450_vm1, %v4993_v34 }
0x1385   :  { %7974 = vmatmul.mubr.msk.f32.gmra.mrb[46].mxu0 %vm450_vm1, %v7967_v7 }
0x1386   :  { %7978 = vmatprep.mubr.msk.f32.mxu0 %vm450_vm1, %v4719_v60  ;;  %v7990_v27 = vpop.f32.mrb[56].mxu1 }
0x1387   :  { %v5306_v3 = vmul.f32 0.35355338, %v7990_v27  ;;  %v5286_v6 = vpop.f32.mrb[57].mxu1 }
0x1388   :  { %v5305_v31 = vmul.f32 0.35355338, %v5286_v6 }
0x1389   :  { %v5310_v11 = vadd.f32 %v5306_v3, %v9483_v41  ;;  %7979 = vmatmul.mubr.msk.f32.vlgmr.msra.gmra.mrb[44].mxu0 %vm450_vm1, %v7944_v37 }
0x138a   :  { %v5309_v21 = vadd.f32 %v5305_v31, %v9487_v45  ;;  %7981 = vmatprep.mubr.msk.f32.mxu0 %vm450_vm1, %v4729_v38  ;;  %v7993_v53 = vpop.f32.mrb[58].mxu1 }
0x138b   :  { %v5296_v12 = vpop.f32.mrb[59].mxu1  ;;  %v5316_v10 = vsel %vm538_vm5, %v5310_v11, -inf  ;;  %v5308_v39 = vmul.f32 0.35355338, %v7993_v53 }
0x138c   :  { %v5307_v26 = vmul.f32 0.35355338, %v5296_v12  ;;  %5317 = vmax.xlane.f32.xlu1 %v5316_v10  ;;  %v5313_v22 = vsel %vm538_vm5, %v5309_v21, -inf }
0x138d   :  { %5314 = vmax.xlane.f32.xlu0 %v5313_v22  ;;  %7982 = vmatmul.mubr.msk.f32.gmra.mrb[46].mxu0 %vm450_vm1, %v7947_v14  ;;  %v5312_v0 = vadd.f32 %v5308_v39, %v10114_v8 }
0x138e   :  { %v5311_v20 = vadd.f32 %v5307_v26, %v10109_v57 }
0x138f   :  { %v5322_v23 = vsel %vm538_vm5, %v5312_v0, -inf }
0x1390   :  { %v5319_v4 = vsel %vm538_vm5, %v5311_v20, -inf }
0x1391   :  { %5320 = vmax.xlane.f32.xlu0 %v5319_v4 }
0x1395   :  { %5323 = vmax.xlane.f32.xlu0 %v5322_v23 }
0x1419   :  { %v5318_v19 = vpop.xlane.xlu1 %5317 }
0x141a   :  { %v5326_v43 = vsub.f32 %v5310_v11, %v5318_v19  ;;  %v5315_v15 = vpop.xlane.xlu0 %5314 }
0x141b   :  { %v5325_v13 = vsub.f32 %v5309_v21, %v5315_v15 }
0x141c   :  { %v5331_v61 = vmul.f32 1.442695, %v5326_v43  ;;  %v7168_v43 = vld [vmem:[%s10686_s6 + $0x70] sm:$0xff] }
0x141d   :  { %v5329_v24 = vmul.f32 1.442695, %v5325_v13  ;;  %8004 = vmatprep.subr.mxu0 %v7168_v43 }
0x141e   :  { %8943 = vpow2.f32 %v5331_v61  ;;  %v5321_v9 = vpop.xlane.xlu0 %5320  ;;  %8005 = vmatpush3.msra.mxu0 %v7168_v43 }
0x141f   :  { %8945 = vpow2.f32 %v5329_v24  ;;  %v5327_v18 = vsub.f32 %v5311_v20, %v5321_v9 }
0x1421   :  { %v5333_v47 = vmul.f32 1.442695, %v5327_v18 }
0x1422   :  { %v5324_v5 = vpop.xlane.xlu0 %5323 }
0x1423   :  { %8947 = vpow2.f32 %v5333_v47  ;;  %v5328_v30 = vsub.f32 %v5312_v0, %v5324_v5 }
0x1425   :  { %v5335_v56 = vmul.f32 1.442695, %v5328_v30 }
0x1427   :  { %8949 = vpow2.f32 %v5335_v56 }
0x1428   :  { %v8944_v40 = vpop.eup %8943 }
0x1429   :  { %v8946_v50 = vpop.eup %8945  ;;  %v5340_v25 = vsel %vm538_vm5, %v8944_v40, 0.0 }
0x142a   :  { %5341 = vadd.xlane.f32.xlu1 %v5340_v25  ;;  %v5337_v37 = vsel %vm538_vm5, %v8946_v50, 0.0 }
0x142b   :  { %5338 = vadd.xlane.f32.xlu0 %v5337_v37 }
0x142d   :  { %v8948_v60 = vpop.eup %8947 }
0x142e   :  { %v5343_v14 = vsel %vm538_vm5, %v8948_v60, 0.0 }
0x142f   :  { %5344 = vadd.xlane.f32.xlu0 %v5343_v14 }
0x1431   :  { %v8950_v38 = vpop.eup %8949 }
0x1432   :  { %v5346_v58 = vsel %vm538_vm5, %v8950_v38, 0.0 }
0x1433   :  { %5347 = vadd.xlane.f32.xlu1 %v5346_v58 }
0x1444   :  { %8774 = vrot.lane.b32.xlu1 %v9395_v49, %s9204_s8 }
0x1445   :  { %8769 = vrot.lane.b32.xlu0 %v9395_v49, %s9200_s15 }
0x1448   :  { %5561 = vrot.lane.b32.xlu1 %v9416_v55, %s9192_s22 }
0x1449   :  { %5565 = vrot.lane.b32.xlu0 %v9523_v52, %s9192_s22 }
0x144c   :  { %5563 = vrot.lane.b32.xlu1 %v9420_v59, %s9192_s22 }
0x1450   :  { %5567 = vrot.lane.b32.xlu1 %v9527_v54, %s9192_s22 }
0x14b7   :  { %v5342_v48 = vpop.xlane.xlu1 %5341 }
0x14b8   :  { %v5339_v7 = vpop.xlane.xlu0 %5338 }
0x14b9   :  { %8951 = vrcp.f32 %v5339_v7 }
0x14ba   :  { %8953 = vrcp.f32 %v5342_v48 }
0x14bc   :  { %v5345_v34 = vpop.xlane.xlu0 %5344 }
0x14bd   :  { %8955 = vrcp.f32 %v5345_v34 }
0x14c0   :  { %v5348_v27 = vpop.xlane.xlu1 %5347  ;;  %v8770_v3 = vpop.permute.xlu0 %8769 }
0x14c1   :  { %8957 = vrcp.f32 %v5348_v27  ;;  %v8772_v6 = vunpack.i.h.bf16 %v8770_v3  ;;  %v8771_v55 = vunpack.i.l.bf16 %v8770_v3 }
0x14c3   :  { %v8952_v31 = vpop.eup %8951  ;;  %v8398_v11 = vpack.c.bf16 %v8772_v6, %v8771_v55 }
0x14c4   :  { %v8954_v52 = vpop.eup %8953  ;;  %v8775_v21 = vpop.permute.xlu1 %8774  ;;  %v5350_v53 = vmul.f32 %v8952_v31, %v8946_v50 }
0x14c5   :  { %v8777_v59 = vunpack.i.h.bf16 %v8775_v21  ;;  %v8776_v12 = vunpack.i.l.bf16 %v8775_v21  ;;  %8399 = vmatprep.subr.bf16.mxu1 %v8398_v11  ;;  %v5352_v10 = vmul.f32 %v8954_v52, %v8944_v40  ;;  %v5566_v23 = vpop.permute.xlu0 %5565 }
0x14c6   :  { %8401 = vmatpush3.bf16.msra.mxu1 %v8398_v11  ;;  %7998 = vmatprep.mubr.msk.f32.mxu1 %vm538_vm5, %v5350_v53 }
0x14c7   :  { %v8956_v54 = vpop.eup %8955  ;;  %v8402_v39 = vpack.c.bf16 %v8777_v59, %v8776_v12 }
0x14c8   :  { %v5354_v26 = vmul.f32 %v8956_v54, %v8948_v60  ;;  %v5562_v0 = vpop.permute.xlu1 %5561  ;;  %v4430_v54 = vrot.slane %v10006_v46, %v9373_v36 }
0x14c9   :  { %7999 = vmatmul.mubr.msk.f32.vlgmr.msra.gmra.mrb[60].mxu1 %vm538_vm5, %v5352_v10  ;;  %8404 = vmatprep.subr.msk.bf16.mxu1 %vm9426_vm2, %v8402_v39  ;;  %v9038_v10 = vld [vmem:[#allocation2] sm:$0xff] }
0x14ca   :  { %8001 = vmatprep.mubr.msk.f32.mxu1 %vm538_vm5, %v5354_v26  ;;  %v1588_v43 = vadd.f32 %v9038_v10, %v9706_v29 }
0x14cb   :  { %v8958_v22 = vpop.eup %8957 }
0x14cc   :  { %v5356_v20 = vmul.f32 %v8958_v22, %v8950_v38  ;;  %v5564_v4 = vpop.permute.xlu1 %5563 }
0x14ce   :  { %8002 = vmatmul.mubr.msk.f32.gmra.mrb[62].mxu1 %vm538_vm5, %v5356_v20  ;;  %v9039_v20 = vld [vmem:[#allocation2 + $0x8] sm:$0xff] }
0x14cf   :  { %8407 = vmatpush3.bf16.xpose.msk.msra.mxu1 %vm9426_vm2, %v8402_v39  ;;  %8016 = vmatprep.mubr.msk.f32.mxu1 %vm450_vm1, %v5562_v0  ;;  %v4425_v39 = vadd.f32 %v9038_v10, %v10152_v1  ;;  %v4426_v0 = vadd.f32 %v9039_v20, %v10150_v44  ;;  %v1589_v1 = vadd.f32 %v9039_v20, %v9704_v42 }
0x14d0   :  { %v5568_v19 = vpop.permute.xlu1 %5567 }
0x14d6   :  { %8017 = vmatmul.mubr.msk.f32.vlgmr.msra.gmra.mrb[64].mxu1 %vm450_vm1, %v5564_v4  ;;  %v4431_v4 = vadd.f32 %v4430_v54, %v4425_v39 }
0x14d7   :  { %8019 = vmatprep.mubr.msk.f32.mxu1 %vm450_vm1, %v5566_v23 }
0x14da   :  { %8020 = vmatmul.mubr.msk.f32.gmra.mrb[66].mxu1 %vm450_vm1, %v5568_v19  ;;  %v1593_v19 = vrot.slane %v10006_v46, %v9363_v33 }
0x14dc   :  { %v1595_v44 = vadd.f32 %v1593_v19, %v1589_v1  ;;  %v7227_v1 = vld [vmem:[%s10686_s6 + $0x88] sm:$0xff] }
0x159c   :  { %v8000_v15 = vpop.f32.mrb[60].mxu1 }
0x159d   :  { %v5441_v2 = vpop.f32.mrb[61].mxu1 }
0x159e   :  { %8006 = vmatprep.mubr.msk.f32.mxu0 %vm450_vm1, %v5441_v2  ;;  %v4433_v2 = vsel %vm137_vm0, %v4431_v4, 0.0 }
0x159f   :  { %8007 = vmatmul.mubr.msk.f32.vlgmr.msra.gmra.mrb[44].mxu0 %vm450_vm1, %v8000_v15  ;;  %v4432_v15 = vadd.f32 %v4430_v54, %v4426_v0 }
0x15a1   :  { %v8003_v13 = vpop.f32.mrb[62].mxu1 }
0x15a2   :  { %v5451_v61 = vpop.f32.mrb[63].mxu1 }
0x15a3   :  { %8009 = vmatprep.mubr.msk.f32.mxu0 %vm450_vm1, %v5451_v61  ;;  %v4436_v61 = vsel %vm137_vm0, %v4432_v15, 0.0 }
0x15a4   :  { %8010 = vmatmul.mubr.msk.f32.gmra.mrb[46].mxu0 %vm450_vm1, %v8003_v13  ;;  %v1594_v13 = vadd.f32 %v1593_v19, %v1588_v43  ;;  %v7232_v19 = vld [vmem:[%s10686_s6 + $0xb0] sm:$0xff]  ;;  %v7233_v43 = vld [vmem:[%s10686_s6 + $0xb8] sm:$0xff] }
0x15a9   :  { %v8018_v24 = vpop.f32.mrb[64].mxu1 }
0x15aa   :  { %v5671_v9 = vmul.f32 0.35355338, %v8018_v24  ;;  %v5651_v18 = vpop.f32.mrb[65].mxu1  ;;  %v1596_v24 = vsel %vm137_vm0, %v1594_v13, 0.0 }
0x15ab   :  { %v5670_v47 = vmul.f32 0.35355338, %v5651_v18 }
0x15ac   :  { %v5675_v5 = vadd.f32 %v5671_v9, %v9483_v41  ;;  %v1599_v9 = vsel %vm137_vm0, %v1595_v44, 0.0 }
0x15ad   :  { %v5674_v30 = vadd.f32 %v5670_v47, %v9487_v45  ;;  %v8021_v56 = vpop.f32.mrb[66].mxu1 }
0x15ae   :  { %v5661_v40 = vpop.f32.mrb[67].mxu1  ;;  %v5681_v50 = vsel %vm538_vm5, %v5675_v5, -inf  ;;  %v5673_v25 = vmul.f32 0.35355338, %v8021_v56 }
0x15af   :  { %v5672_v37 = vmul.f32 0.35355338, %v5661_v40  ;;  %5682 = vmax.xlane.f32.xlu1 %v5681_v50  ;;  %v5678_v60 = vsel %vm538_vm5, %v5674_v30, -inf }
0x15b0   :  { %5679 = vmax.xlane.f32.xlu0 %v5678_v60  ;;  %v5677_v38 = vadd.f32 %v5673_v25, %v10114_v8 }
0x15b1   :  { %v5676_v14 = vadd.f32 %v5672_v37, %v10109_v57 }
0x15b2   :  { %v5687_v41 = vsel %vm538_vm5, %v5677_v38, -inf }
0x15b3   :  { %v5684_v58 = vsel %vm538_vm5, %v5676_v14, -inf }
0x15b4   :  { %5685 = vmax.xlane.f32.xlu0 %v5684_v58 }
0x15b8   :  { %5688 = vmax.xlane.f32.xlu0 %v5687_v41 }
0x163c   :  { %v5683_v45 = vpop.xlane.xlu1 %5682 }
0x163d   :  { %v5691_v48 = vsub.f32 %v5675_v5, %v5683_v45  ;;  %v5680_v7 = vpop.xlane.xlu0 %5679 }
0x163e   :  { %v5690_v34 = vsub.f32 %v5674_v30, %v5680_v7 }
0x163f   :  { %v5696_v27 = vmul.f32 1.442695, %v5691_v48 }
0x1640   :  { %v5694_v3 = vmul.f32 1.442695, %v5690_v34 }
0x1641   :  { %8959 = vpow2.f32 %v5696_v27  ;;  %v5686_v6 = vpop.xlane.xlu0 %5685 }
0x1642   :  { %8961 = vpow2.f32 %v5694_v3  ;;  %v5692_v55 = vsub.f32 %v5676_v14, %v5686_v6 }
0x1644   :  { %v5698_v31 = vmul.f32 1.442695, %v5692_v55 }
0x1645   :  { %v5689_v57 = vpop.xlane.xlu0 %5688 }
0x1646   :  { %8963 = vpow2.f32 %v5698_v31  ;;  %v5693_v8 = vsub.f32 %v5677_v38, %v5689_v57  ;;  %v10278_v57 = vld [vmem:[%s10681_s1 + $0x18] sm:$0xff] }
0x1648   :  { %v5700_v11 = vmul.f32 1.442695, %v5693_v8  ;;  %v3147_v8 = vadd.f32 %v10278_v57, %v10020_v16 }
0x164a   :  { %8965 = vpow2.f32 %v5700_v11  ;;  %v10295_v16 = vadd.f32 %v10010_v28, %v3147_v8 }
0x164b   :  { %v8960_v52 = vpop.eup %8959 }
0x164c   :  { %v8962_v21 = vpop.eup %8961  ;;  %v5705_v53 = vsel %vm538_vm5, %v8960_v52, 0.0  ;;  %v3165_v20 = vsel %vm137_vm0, %v10295_v16, 0.0 }
0x164d   :  { %5706 = vadd.xlane.f32.xlu1 %v5705_v53  ;;  %v5702_v59 = vsel %vm538_vm5, %v8962_v21, 0.0 }
0x164e   :  { %5703 = vadd.xlane.f32.xlu0 %v5702_v59 }
0x1650   :  { %v8964_v12 = vpop.eup %8963 }
0x1651   :  { %v5708_v26 = vsel %vm538_vm5, %v8964_v12, 0.0 }
0x1652   :  { %5709 = vadd.xlane.f32.xlu0 %v5708_v26 }
0x1654   :  { %v8966_v22 = vpop.eup %8965 }
0x1655   :  { %v5711_v23 = vsel %vm538_vm5, %v8966_v22, 0.0 }
0x1656   :  { %5712 = vadd.xlane.f32.xlu1 %v5711_v23 }
0x165a   :  { %4434 = vadd.xlane.f32.xlu1 %v4433_v2  ;;  %v7226_v2 = vld [vmem:[%s10686_s6 + $0x80] sm:$0xff] }
0x165e   :  { %4437 = vadd.xlane.f32.xlu1 %v4436_v61  ;;  %v7169_v61 = vld [vmem:[%s10686_s6 + $0x78] sm:$0xff] }
0x1662   :  { %1597 = vadd.xlane.f32.xlu1 %v1596_v24 }
0x1666   :  { %1600 = vadd.xlane.f32.xlu1 %v1599_v9 }
0x1668   :  { %8779 = vrot.lane.b32.xlu0 %v9395_v49, %s9202_s7 }
0x16da   :  { %v5707_v29 = vpop.xlane.xlu1 %5706 }
0x16db   :  { %v5704_v46 = vpop.xlane.xlu0 %5703 }
0x16dc   :  { %8967 = vrcp.f32 %v5704_v46 }
0x16dd   :  { %8969 = vrcp.f32 %v5707_v29 }
0x16df   :  { %v5710_v18 = vpop.xlane.xlu0 %5709 }
0x16e0   :  { %8971 = vrcp.f32 %v5710_v18 }
0x16e3   :  { %v5713_v42 = vpop.xlane.xlu1 %5712  ;;  %v8780_v47 = vpop.permute.xlu0 %8779 }
0x16e4   :  { %8973 = vrcp.f32 %v5713_v42  ;;  %v8782_v5 = vunpack.i.h.bf16 %v8780_v47  ;;  %v8781_v30 = vunpack.i.l.bf16 %v8780_v47 }
0x16e6   :  { %v8968_v56 = vpop.eup %8967  ;;  %v8408_v40 = vpack.c.bf16 %v8782_v5, %v8781_v30  ;;  %v4461_v5 = vsub.s32 6, %v9360_v32 }
0x16e7   :  { %v8970_v50 = vpop.eup %8969  ;;  %v4435_v25 = vpop.xlane.xlu1 %4434  ;;  %v5715_v37 = vmul.f32 %v8968_v56, %v8962_v21 }
0x16e8   :  { %v4439_v60 = vmul.f32 0.03125, %v4435_v25  ;;  %8409 = vmatprep.subr.bf16.mxu0 %v8408_v40  ;;  %v5717_v14 = vmul.f32 %v8970_v50, %v8960_v52  ;;  %v10332_v50 = vld [vmem:[#allocation7 + $0x8] sm:$0xff]  ;;  %v10334_v25 = vld [vmem:[#allocation7] sm:$0xff] }
0x16e9   :  { %8411 = vmatpush3.bf16.msra.mxu0 %v8408_v40  ;;  %8026 = vmatprep.mubr.msk.f32.mxu0 %vm538_vm5, %v5715_v37  ;;  %v4462_v37 = vrot.slane %v10334_v25, %v4461_v5 }
0x16ea   :  { %v8972_v49 = vpop.eup %8971  ;;  %v10263_v38 = vsub.f32 %v4431_v4, %v4439_v60  ;;  %v7230_v4 = vld [vmem:[%s10686_s6 + $0xa0] sm:$0xff]  ;;  %8032 = vmatprep.subr.mxu0 %v7169_v61 }
0x16eb   :  { %v4438_v58 = vpop.xlane.xlu1 %4437  ;;  %v5719_v41 = vmul.f32 %v8972_v49, %v8964_v12  ;;  %v10290_v12 = vld [vmem:[%s10681_s1] sm:$0xff] }
0x16ec   :  { %v4440_v45 = vmul.f32 0.03125, %v4438_v58  ;;  %8027 = vmatmul.mubr.msk.f32.vlgmr.msra.gmra.mrb[48].mxu0 %vm538_vm5, %v5717_v14  ;;  %v4443_v48 = vmul.f32 %v10263_v38, %v10263_v38  ;;  %v3144_v54 = vadd.f32 %v10290_v12, %v10015_v35  ;;  %v4468_v58 = vrot.slane %v10332_v50, %v9373_v36 }
0x16ed   :  { %8029 = vmatprep.mubr.msk.f32.mxu0 %vm538_vm5, %v5719_v41  ;;  %8033 = vmatpush3.msra.mxu0 %v7169_v61 }
0x16ee   :  { %v8974_v7 = vpop.eup %8973  ;;  %v10269_v34 = vsub.f32 %v4432_v15, %v4440_v45  ;;  %v4445_v27 = vsel %vm137_vm0, %v4443_v48, 0.0  ;;  %v8416_v15 = vpack.c.bf16 %v7233_v43, %v7232_v19  ;;  %v1625_v45 = vsub.s32 4, %v9360_v32  ;;  %v6018_v19 = vld [vmem:[#allocation8 + $0x10] sm:$0xff]  ;;  %v6019_v43 = vld [vmem:[#allocation8 + $0x18] sm:$0xff] }
0x16ef   :  { %4446 = vadd.xlane.f32.xlu1 %v4445_v27  ;;  %v1598_v3 = vpop.xlane.xlu1 %1597  ;;  %v5721_v6 = vmul.f32 %v8974_v7, %v8966_v22  ;;  %v10303_v22 = vadd.f32 %v10010_v28, %v3144_v54  ;;  %v7231_v28 = vld [vmem:[%s10686_s6 + $0xa8] sm:$0xff] }
0x16f0   :  { %v1603_v55 = vmul.f32 0.03125, %v1598_v3  ;;  %v4444_v31 = vmul.f32 %v10269_v34, %v10269_v34  ;;  %v8412_v23 = vpack.c.bf16 %v7231_v28, %v7230_v4  ;;  %v7228_v3 = vld [vmem:[%s10686_s6 + $0x90] sm:$0xff] }
0x16f1   :  { %8030 = vmatmul.mubr.msk.f32.gmra.mrb[50].mxu0 %vm538_vm5, %v5721_v6  ;;  %v3156_v35 = vsel %vm137_vm0, %v10303_v22, 0.0  ;;  %v7229_v6 = vld [vmem:[%s10686_s6 + $0x98] sm:$0xff]  ;;  %v6017_v28 = vld [vmem:[#allocation8 + $0x8] sm:$0xff] }
0x16f2   :  { %v10282_v11 = vsub.f32 %v1594_v13, %v1603_v55  ;;  %v4448_v52 = vsel %vm137_vm0, %v4444_v31, 0.0  ;;  %8413 = vmatprep.subr.bf16.mxu1 %v8412_v23  ;;  %v8420_v13 = vpack.c.bf16 %v7227_v1, %v7226_v2  ;;  %v1626_v55 = vrot.slane %v10334_v25, %v1625_v45 }
0x16f3   :  { %4449 = vadd.xlane.f32.xlu1 %v4448_v52  ;;  %v1601_v21 = vpop.xlane.xlu1 %1600  ;;  %8415 = vmatpush3.bf16.msra.mxu1 %v8412_v23  ;;  %v8424_v52 = vpack.c.bf16 %v7229_v6, %v7228_v3  ;;  %v6193_v2 = vrot.slane %v10332_v50, %v1625_v45 }
0x16f4   :  { %v1604_v53 = vmul.f32 0.03125, %v1601_v21  ;;  %v1607_v59 = vmul.f32 %v10282_v11, %v10282_v11  ;;  %8417 = vmatprep.subr.bf16.mxu1 %v8416_v15 }
0x16f6   :  { %v10297_v10 = vsub.f32 %v1595_v44, %v1604_v53  ;;  %v1609_v39 = vsel %vm137_vm0, %v1607_v59, 0.0 }
0x16f7   :  { %1610 = vadd.xlane.f32.xlu0 %v1609_v39  ;;  %8419 = vmatpush3.bf16.msra.mxu1 %v8416_v15  ;;  %v8432_v15 = vpack.c.bf16 %v6019_v43, %v6018_v19  ;;  %v6025_v19 = vld [vmem:[%s10690_s10 + $0x28] sm:$0xff] }
0x16f8   :  { %v1608_v26 = vmul.f32 %v10297_v10, %v10297_v10  ;;  %8421 = vmatprep.subr.bf16.mxu1 %v8420_v13 }
0x16fa   :  { %v1612_v0 = vsel %vm137_vm0, %v1608_v26, 0.0 }
0x16fb   :  { %3166 = vadd.xlane.f32.xlu0 %v3165_v20  ;;  %1613 = vadd.xlane.f32.xlu1 %v1612_v0 }
0x16ff   :  { %3157 = vadd.xlane.f32.xlu1 %v3156_v35 }
0x177c   :  { %v4447_v44 = vpop.xlane.xlu1 %4446 }
0x177d   :  { %v4451_v24 = vmul.f32 0.03125, %v4447_v44 }
0x177f   :  { %v4453_v9 = vadd.f32 1e-05, %v4451_v24 }
0x1780   :  { %v4450_v29 = vpop.xlane.xlu1 %4449 }
0x1781   :  { %8975 = vrsqrt.f32 %v4453_v9  ;;  %v4452_v46 = vmul.f32 0.03125, %v4450_v29 }
0x1783   :  { %v4454_v18 = vadd.f32 1e-05, %v4452_v46 }
0x1784   :  { %v1611_v42 = vpop.xlane.xlu0 %1610 }
0x1785   :  { %8977 = vrsqrt.f32 %v4454_v18  ;;  %v1615_v47 = vmul.f32 0.03125, %v1611_v42 }
0x1787   :  { %v1617_v30 = vadd.f32 1e-05, %v1615_v47 }
0x1788   :  { %v1614_v56 = vpop.xlane.xlu1 %1613 }
0x1789   :  { %8979 = vrsqrt.f32 %v1617_v30  ;;  %v1616_v40 = vmul.f32 0.03125, %v1614_v56 }
0x178b   :  { %v8976_v60 = vpop.eup %8975  ;;  %v1618_v49 = vadd.f32 1e-05, %v1616_v40 }
0x178c   :  { %v4457_v14 = vmul.f32 %v8976_v60, %v10263_v38 }
0x178d   :  { %8981 = vrsqrt.f32 %v1618_v49 }
0x178e   :  { %v4463_v41 = vmul.f32 %v4462_v37, %v4457_v14 }
0x178f   :  { %v8978_v48 = vpop.eup %8977 }
0x1790   :  { %v4458_v7 = vmul.f32 %v8978_v48, %v10269_v34  ;;  %v4469_v27 = vadd.f32 %v4468_v58, %v4463_v41  ;;  %v1632_v34 = vrot.slane %v10332_v50, %v9363_v33  ;;  %v5933_v41 = vrot.slane %v10334_v25, %v9450_v17 }
0x1792   :  { %v4464_v38 = vmul.f32 %v4462_v37, %v4458_v7  ;;  %8048 = vmatprep.mubr.msk.f32.mxu1 %vm137_vm0, %v4469_v27  ;;  %v9043_v7 = vld [vmem:[%s10681_s1 + $0x8] sm:$0xff] }
0x1793   :  { %v8980_v31 = vpop.eup %8979 }
0x1794   :  { %v4470_v8 = vadd.f32 %v4468_v58, %v4464_v38  ;;  %v1621_v21 = vmul.f32 %v8980_v31, %v10282_v11 }
0x1796   :  { %8049 = vmatmul.mubr.msk.f32.vlgmr.msra.gmra.mrb[68].mxu1 %vm137_vm0, %v4470_v8  ;;  %v1627_v53 = vmul.f32 %v1626_v55, %v1621_v21 }
0x1797   :  { %v8982_v59 = vpop.eup %8981  ;;  %8423 = vmatpush3.bf16.msra.mxu1 %v8420_v13 }
0x1798   :  { %v1622_v54 = vmul.f32 %v8982_v59, %v10297_v10  ;;  %8425 = vmatprep.subr.bf16.mxu1 %v8424_v52  ;;  %v1633_v39 = vadd.f32 %v1632_v34, %v1627_v53  ;;  %v6016_v10 = vld [vmem:[#allocation8] sm:$0xff]  ;;  %v9044_v53 = vld [vmem:[%s10681_s1 + $0x10] sm:$0xff] }
0x1799   :  { %v8428_v23 = vpack.c.bf16 %v6017_v28, %v6016_v10  ;;  %v6023_v10 = vld [vmem:[%s10690_s10 + $0x18] sm:$0xff] }
0x179a   :  { %v1628_v26 = vmul.f32 %v1626_v55, %v1622_v54  ;;  %8059 = vmatprep.mubr.msk.f32.mxu1 %vm137_vm0, %v1633_v39 }
0x179b   :  { %8427 = vmatpush3.bf16.msra.mxu1 %v8424_v52  ;;  %8429 = vmatprep.subr.bf16.mxu0 %v8428_v23 }
0x179c   :  { %v1634_v20 = vadd.f32 %v1632_v34, %v1628_v26 }
0x179e   :  { %8060 = vmatmul.mubr.msk.f32.vlgmr.msra.gmra.mrb[68].mxu1 %vm137_vm0, %v1634_v20 }
0x17bf   :  { %v8028_v11 = vpop.f32.mrb[48].mxu0 }
0x17c0   :  { %v5806_v0 = vpop.f32.mrb[49].mxu0 }
0x17c1   :  { %8034 = vmatprep.mubr.msk.f32.mxu0 %vm450_vm1, %v5806_v0  ;;  %v6021_v0 = vld [vmem:[%s10690_s10 + $0x8] sm:$0xff] }
0x17c2   :  { %8035 = vmatmul.mubr.msk.f32.vlgmr.msra.gmra.mrb[44].mxu0 %vm450_vm1, %v8028_v11  ;;  %v6020_v11 = vld [vmem:[%s10690_s10] sm:$0xff] }
0x17c3   :  { %8431 = vmatpush3.bf16.msra.mxu0 %v8428_v23  ;;  %v6024_v23 = vld [vmem:[%s10690_s10 + $0x20] sm:$0xff] }
0x17c4   :  { %v8031_v35 = vpop.f32.mrb[50].mxu0  ;;  %8433 = vmatprep.subr.bf16.mxu0 %v8432_v15  ;;  %v8444_v43 = vpack.c.bf16 %v6025_v19, %v6024_v23  ;;  %v10482_v19 = vld [vmem:[%s10689_s9] sm:$0x3] }
0x17c5   :  { %v5816_v4 = vpop.f32.mrb[51].mxu0 }
0x17c6   :  { %8037 = vmatprep.mubr.msk.f32.mxu0 %vm450_vm1, %v5816_v4  ;;  %v8436_v4 = vpack.c.bf16 %v6021_v0, %v6020_v11  ;;  %v7250_v0 = vld [vmem:[%s10686_s6 + $0xf0] sm:$0xff] }
0x17c7   :  { %8038 = vmatmul.mubr.msk.f32.gmra.mrb[46].mxu0 %vm450_vm1, %v8031_v35  ;;  %v6022_v35 = vld [vmem:[%s10690_s10 + $0x10] sm:$0xff] }
0x17c8   :  { %8435 = vmatpush3.bf16.msra.mxu0 %v8432_v15  ;;  %v8440_v28 = vpack.c.bf16 %v6023_v10, %v6022_v35  ;;  %8437 = vmatprep.subr.bf16.mxu1 %v8436_v4  ;;  %v6026_v15 = vld [vmem:[%s10690_s10 + $0x30] sm:$0xff]  ;;  %v7251_v35 = vld [vmem:[%s10686_s6 + $0xf8] sm:$0xff]  ;;  %v7244_v10 = vld [vmem:[%s10686_s6 + $0xc0] sm:$0xff] }
0x17c9   :  { %8439 = vmatpush3.bf16.msra.mxu1 %v8436_v4  ;;  %v8456_v4 = vpack.c.bf16 %v7251_v35, %v7250_v0 }
0x17ca   :  { %8441 = vmatprep.subr.bf16.mxu1 %v8440_v28 }
0x17cd   :  { %8443 = vmatpush3.bf16.msra.mxu1 %v8440_v28  ;;  %v7245_v28 = vld [vmem:[%s10686_s6 + $0xc8] sm:$0xff] }
0x17ce   :  { %8445 = vmatprep.subr.bf16.mxu1 %v8444_v43  ;;  %v10476_v23 = vpack.c.bf16 %v7245_v28, %v7244_v10 }
0x17d1   :  { %8447 = vmatpush3.bf16.msra.mxu1 %v8444_v43  ;;  %v6219_v43 = vrot.slane %v10482_v19, %v9363_v33 }
0x1871   :  { %v8061_v1 = vpop.f32.mrb[68].mxu1 }
0x1872   :  { %v6195_v13 = vadd.f32 %v8061_v1, %v6193_v2  ;;  %v6181_v61 = vpop.f32.mrb[69].mxu1 }
0x1873   :  { %v6194_v44 = vadd.f32 %v6193_v2, %v6181_v61  ;;  %v6027_v2 = vld [vmem:[%s10690_s10 + $0x38] sm:$0xff] }
0x1874   :  { %v7239_v24 = vmul.f32 -1.442695, %v6195_v13  ;;  %v8448_v1 = vpack.c.bf16 %v6027_v2, %v6026_v15  ;;  %v3158_v13 = vpop.xlane.xlu1 %3157 }
0x1875   :  { %v7238_v9 = vmul.f32 -1.442695, %v6194_v44 }
0x1876   :  { %8983 = vpow2.f32 %v7239_v24  ;;  %8449 = vmatprep.subr.bf16.mxu1 %v8448_v1 }
0x1877   :  { %8985 = vpow2.f32 %v7238_v9  ;;  %8451 = vmatpush3.bf16.msra.mxu1 %v8448_v1 }
0x1880   :  { %v8984_v29 = vpop.eup %8983 }
0x1881   :  { %v8986_v46 = vpop.eup %8985  ;;  %v6203_v18 = vadd.f32 1.0, %v8984_v29 }
0x1882   :  { %v6202_v42 = vadd.f32 1.0, %v8986_v46 }
0x1883   :  { %8987 = vrcp.f32 %v6203_v18 }
0x1884   :  { %8989 = vrcp.f32 %v6202_v42 }
0x188d   :  { %v8988_v47 = vpop.eup %8987 }
0x188e   :  { %v8990_v30 = vpop.eup %8989  ;;  %v6211_v56 = vsub.f32 1.0, %v8988_v47  ;;  %v6209_v14 = vmul.f32 %v8988_v47, %v1634_v20  ;;  %v3162_v20 = vsel %vm137_vm0, %v10026_v63, 0.0 }
0x188f   :  { %v6210_v40 = vsub.f32 1.0, %v8990_v30  ;;  %v6208_v60 = vmul.f32 %v8990_v30, %v1633_v39 }
0x1890   :  { %v6213_v37 = vmul.f32 %v6211_v56, %v4470_v8 }
0x1891   :  { %v6212_v49 = vmul.f32 %v6210_v40, %v4469_v27  ;;  %v3168_v40 = vmul.f32 0.03125, %v3158_v13 }
0x1892   :  { %v10368_v45 = vadd.f32 %v6213_v37, %v6209_v14 }
0x1893   :  { %v10364_v58 = vadd.f32 %v6212_v49, %v6208_v60  ;;  %v3167_v49 = vpop.xlane.xlu0 %3166 }
0x1895   :  { %v8036_v48 = vpop.f32.mrb[44].mxu0  ;;  %8070 = vmatprep.mubr.msk.f32.mxu0 %vm137_vm0, %v10364_v58 }
0x1896   :  { %v5927_v3 = vadd.f32 %v9043_v7, %v8036_v48  ;;  %v5903_v6 = vpop.f32.mrb[45].mxu0  ;;  %8071 = vmatmul.mubr.msk.f32.vlgmr.msra.gmra.mrb[52].mxu0 %vm137_vm0, %v10368_v45  ;;  %v3171_v7 = vmul.f32 0.03125, %v3167_v49 }
0x1897   :  { %v5926_v27 = vadd.f32 %v10290_v12, %v5903_v6 }
0x1898   :  { %v5935_v38 = vadd.f32 %v5933_v41, %v5927_v3  ;;  %v10429_v3 = vsub.f32 %v10303_v22, %v3168_v40 }
0x1899   :  { %v5934_v55 = vadd.f32 %v5933_v41, %v5926_v27 }
0x189a   :  { %v8039_v31 = vpop.f32.mrb[46].mxu0  ;;  %v5941_v8 = vsel %vm137_vm0, %v5935_v38, 0.0  ;;  %v3176_v22 = vmul.f32 %v10429_v3, %v10429_v3 }
0x189b   :  { %v5929_v52 = vadd.f32 %v10278_v57, %v8039_v31  ;;  %v5913_v21 = vpop.f32.mrb[47].mxu0  ;;  %5942 = vadd.xlane.f32.xlu1 %v5941_v8  ;;  %v5938_v54 = vsel %vm137_vm0, %v5934_v55, 0.0  ;;  %v3159_v57 = vsel %vm137_vm0, %v10018_v62, 0.0  ;;  %v10437_v8 = vsub.f32 %v10295_v16, %v3171_v7 }
0x189c   :  { %v5928_v59 = vadd.f32 %v9044_v53, %v5913_v21  ;;  %v3180_v16 = vsel %vm137_vm0, %v3176_v22, 0.0 }
0x189d   :  { %v5937_v34 = vadd.f32 %v5933_v41, %v5929_v52 }
0x189e   :  { %v5936_v39 = vadd.f32 %v5933_v41, %v5928_v59 }
0x189f   :  { %5939 = vadd.xlane.f32.xlu1 %v5938_v54  ;;  %v5947_v12 = vsel %vm137_vm0, %v5937_v34, 0.0 }
0x18a0   :  { %v5944_v26 = vsel %vm137_vm0, %v5936_v39, 0.0 }
0x18a3   :  { %5948 = vadd.xlane.f32.xlu1 %v5947_v12 }
0x18a7   :  { %5945 = vadd.xlane.f32.xlu1 %v5944_v26 }
0x18ab   :  { %3160 = vadd.xlane.f32.xlu1 %v3159_v57 }
0x18af   :  { %3163 = vadd.xlane.f32.xlu1 %v3162_v20  ;;  %v7249_v20 = vld [vmem:[%s10686_s6 + $0xe8] sm:$0xff] }
0x1928   :  { %v5943_v61 = vpop.xlane.xlu1 %5942 }
0x1929   :  { %v5951_v44 = vmul.f32 0.03125, %v5943_v61 }
0x192b   :  { %v10414_v24 = vsub.f32 %v5935_v38, %v5951_v44 }
0x192c   :  { %v5940_v9 = vpop.xlane.xlu1 %5939 }
0x192d   :  { %v5950_v29 = vmul.f32 0.03125, %v5940_v9  ;;  %v5959_v46 = vmul.f32 %v10414_v24, %v10414_v24 }
0x192f   :  { %v10418_v18 = vsub.f32 %v5934_v55, %v5950_v29  ;;  %v5965_v42 = vsel %vm137_vm0, %v5959_v46, 0.0 }
0x1930   :  { %5966 = vadd.xlane.f32.xlu0 %v5965_v42  ;;  %v5949_v47 = vpop.xlane.xlu1 %5948 }
0x1931   :  { %v5953_v30 = vmul.f32 0.03125, %v5949_v47  ;;  %v5958_v56 = vmul.f32 %v10418_v18, %v10418_v18 }
0x1933   :  { %v10423_v37 = vsub.f32 %v5937_v34, %v5953_v30  ;;  %v5962_v60 = vsel %vm137_vm0, %v5958_v56, 0.0 }
0x1934   :  { %5963 = vadd.xlane.f32.xlu1 %v5962_v60  ;;  %v5946_v14 = vpop.xlane.xlu1 %5945 }
0x1935   :  { %v5952_v41 = vmul.f32 0.03125, %v5946_v14  ;;  %v5961_v48 = vmul.f32 %v10423_v37, %v10423_v37  ;;  %v5992_v14 = vsub.s32 7, %v9360_v32 }
0x1937   :  { %v10431_v6 = vsub.f32 %v5936_v39, %v5952_v41  ;;  %v5971_v27 = vsel %vm137_vm0, %v5961_v48, 0.0 }
0x1938   :  { %5972 = vadd.xlane.f32.xlu0 %v5971_v27  ;;  %v3161_v38 = vpop.xlane.xlu1 %3160 }
0x1939   :  { %v3169_v55 = vmul.f32 0.03125, %v3161_v38  ;;  %v5960_v31 = vmul.f32 %v10431_v6, %v10431_v6 }
0x193b   :  { %v10440_v52 = vsub.f32 %v10018_v62, %v3169_v55  ;;  %v5968_v21 = vsel %vm137_vm0, %v5960_v31, 0.0  ;;  %v3179_v62 = vmul.f32 %v10437_v8, %v10437_v8  ;;  %v5993_v55 = vrot.slane %v10334_v25, %v5992_v14 }
0x193c   :  { %5969 = vadd.xlane.f32.xlu1 %v5968_v21  ;;  %v3164_v34 = vpop.xlane.xlu1 %3163 }
0x193d   :  { %v3170_v53 = vmul.f32 0.03125, %v3164_v34  ;;  %v3177_v59 = vmul.f32 %v10440_v52, %v10440_v52  ;;  %v3189_v26 = vsel %vm137_vm0, %v3179_v62, 0.0 }
0x193f   :  { %v10448_v54 = vsub.f32 %v10026_v63, %v3170_v53  ;;  %v3183_v39 = vsel %vm137_vm0, %v3177_v59, 0.0  ;;  %v7248_v63 = vld [vmem:[%s10686_s6 + $0xe0] sm:$0xff] }
0x1940   :  { %3181 = vadd.xlane.f32.xlu1 %v3180_v16  ;;  %3184 = vadd.xlane.f32.xlu0 %v3183_v39  ;;  %v8452_v11 = vpack.c.bf16 %v7249_v20, %v7248_v63 }
0x1941   :  { %v3178_v12 = vmul.f32 %v10448_v54, %v10448_v54 }
0x1942   :  { %8453 = vmatprep.subr.bf16.mxu0 %v8452_v11 }
0x1943   :  { %v3186_v57 = vsel %vm137_vm0, %v3178_v12, 0.0  ;;  %8455 = vmatpush3.bf16.msra.mxu0 %v8452_v11  ;;  %v6001_v12 = vrot.slane %v10332_v50, %v9450_v17  ;;  %v7247_v11 = vld [vmem:[%s10686_s6 + $0xd8] sm:$0xff] }
0x1944   :  { %3190 = vadd.xlane.f32.xlu0 %v3189_v26  ;;  %3187 = vadd.xlane.f32.xlu1 %v3186_v57 }
0x1945   :  { %8457 = vmatprep.subr.bf16.mxu0 %v8456_v4 }
0x1947   :  { %8459 = vmatpush3.bf16.msra.mxu0 %v8456_v4 }
0x1948   :  { %8461 = vmatprep.subr.bf16.mxu0 %v10476_v23 }
0x1969   :  { %v8072_v15 = vpop.f32.mrb[52].mxu0 }
0x196a   :  { %v6298_v2 = vadd.f32 %v8072_v15, %v6219_v43  ;;  %v6292_v1 = vpop.f32.mrb[53].mxu0  ;;  %v3210_v15 = vsub.s32 5, %v9360_v32 }
0x196b   :  { %v6293_v13 = vadd.f32 %v6292_v1, %v6219_v43 }
0x196c   :  { %v6302_v44 = vmax.f32 %v6298_v2, 0.0 }
0x196d   :  { %v6301_v61 = vmax.f32 %v6293_v13, 0.0 }
0x196f   :  { %8089 = vmatprep.mubr.msk.f32.mxu1 %vm6307_vm8, %v6301_v61 }
0x1970   :  { %8090 = vmatmul.mubr.msk.f32.vlgmr.msra.gmra.mrb[70].mxu1 %vm6307_vm8, %v6302_v44 }
0x19bd   :  { %v5967_v9 = vpop.xlane.xlu0 %5966 }
0x19be   :  { %v5975_v29 = vmul.f32 0.03125, %v5967_v9 }
0x19c0   :  { %v5979_v46 = vadd.f32 1e-05, %v5975_v29 }
0x19c1   :  { %v5964_v42 = vpop.xlane.xlu1 %5963 }
0x19c2   :  { %8991 = vrsqrt.f32 %v5979_v46  ;;  %v5974_v47 = vmul.f32 0.03125, %v5964_v42  ;;  %v3219_v42 = vrot.slane %v10332_v50, %v9408_v51 }
0x19c4   :  { %v5978_v30 = vadd.f32 1e-05, %v5974_v47 }
0x19c5   :  { %v5973_v56 = vpop.xlane.xlu0 %5972 }
0x19c6   :  { %8993 = vrsqrt.f32 %v5978_v30  ;;  %v5977_v40 = vmul.f32 0.03125, %v5973_v56 }
0x19c8   :  { %v5981_v60 = vadd.f32 1e-05, %v5977_v40 }
0x19c9   :  { %v5970_v49 = vpop.xlane.xlu1 %5969 }
0x19ca   :  { %8995 = vrsqrt.f32 %v5981_v60  ;;  %v5976_v41 = vmul.f32 0.03125, %v5970_v49 }
0x19cc   :  { %v8992_v48 = vpop.eup %8991  ;;  %v5980_v7 = vadd.f32 1e-05, %v5976_v41 }
0x19cd   :  { %v3185_v27 = vpop.xlane.xlu0 %3184  ;;  %v3182_v38 = vpop.xlane.xlu1 %3181  ;;  %v5987_v31 = vmul.f32 %v8992_v48, %v10414_v24  ;;  %v7246_v24 = vld [vmem:[%s10686_s6 + $0xd0] sm:$0xff] }
0x19ce   :  { %8997 = vrsqrt.f32 %v5980_v7  ;;  %v3193_v21 = vmul.f32 0.03125, %v3185_v27  ;;  %v3192_v22 = vmul.f32 0.03125, %v3182_v38  ;;  %v8464_v43 = vpack.c.bf16 %v7247_v11, %v7246_v24  ;;  %v7257_v24 = vld [vmem:[%s10690_s10 + $0x68] sm:$0xff] }
0x19cf   :  { %v5995_v63 = vmul.f32 %v5993_v55, %v5987_v31 }
0x19d0   :  { %v8994_v34 = vpop.eup %8993  ;;  %v3197_v53 = vadd.f32 1e-05, %v3193_v21  ;;  %v3196_v59 = vadd.f32 1e-05, %v3192_v22 }
0x19d1   :  { %v3191_v16 = vpop.xlane.xlu0 %3190  ;;  %v3188_v39 = vpop.xlane.xlu1 %3187  ;;  %v5986_v62 = vmul.f32 %v8994_v34, %v10418_v18  ;;  %v10504_v10 = vadd.f32 %v6001_v12, %v5995_v63 }
0x19d2   :  { %8999 = vrsqrt.f32 %v3197_v53  ;;  %v3195_v26 = vmul.f32 0.03125, %v3191_v16  ;;  %v3194_v57 = vmul.f32 0.03125, %v3188_v39  ;;  %v6440_v53 = vld [vmem:[#allocation8 + $0x20] sm:$0xff]  ;;  %v6442_v16 = vld [vmem:[#allocation8 + $0x30] sm:$0xff]  ;;  %v6443_v39 = vld [vmem:[#allocation8 + $0x38] sm:$0xff] }
0x19d3   :  { %9001 = vrsqrt.f32 %v3196_v59  ;;  %v5994_v20 = vmul.f32 %v5993_v55, %v5986_v62  ;;  %v7253_v62 = vld [vmem:[%s10690_s10 + $0x48] sm:$0xff] }
0x19d4   :  { %v8996_v0 = vpop.eup %8995  ;;  %v3199_v35 = vadd.f32 1e-05, %v3195_v26  ;;  %v3198_v18 = vadd.f32 1e-05, %v3194_v57  ;;  %v7255_v57 = vld [vmem:[%s10690_s10 + $0x58] sm:$0xff] }
0x19d5   :  { %v10502_v4 = vadd.f32 %v6001_v12, %v5994_v20  ;;  %v5989_v28 = vmul.f32 %v8996_v0, %v10423_v37  ;;  %v3211_v37 = vrot.slane %v10334_v25, %v3210_v15  ;;  %v7256_v20 = vld [vmem:[%s10690_s10 + $0x60] sm:$0xff]  ;;  %v6650_v0 = vrot.slane %v10332_v50, %v3210_v15 }
0x19d6   :  { %9003 = vrsqrt.f32 %v3199_v35  ;;  %v8484_v11 = vpack.c.bf16 %v7257_v24, %v7256_v20 }
0x19d7   :  { %9005 = vrsqrt.f32 %v3198_v18  ;;  %8100 = vmatprep.mubr.msk.f32.mxu0 %vm137_vm0, %v10502_v4  ;;  %v5997_v13 = vmul.f32 %v5993_v55, %v5989_v28 }
0x19d8   :  { %v8998_v2 = vpop.eup %8997  ;;  %8101 = vmatmul.mubr.msk.f32.vlgmr.msra.gmra.mrb[54].mxu0 %vm137_vm0, %v10504_v10 }
0x19d9   :  { %8463 = vmatpush3.bf16.msra.mxu0 %v10476_v23  ;;  %v5988_v1 = vmul.f32 %v8998_v2, %v10431_v6  ;;  %v10522_v23 = vadd.f32 %v6001_v12, %v5997_v13 }
0x19da   :  { %8465 = vmatprep.subr.bf16.mxu0 %v8464_v43 }
0x19db   :  { %v5996_v61 = vmul.f32 %v5993_v55, %v5988_v1 }
0x19dc   :  { %v9000_v44 = vpop.eup %8999 }
0x19dd   :  { %v9002_v9 = vpop.eup %9001  ;;  %v3205_v29 = vmul.f32 %v9000_v44, %v10440_v52  ;;  %v10518_v46 = vadd.f32 %v6001_v12, %v5996_v61  ;;  %8467 = vmatpush3.bf16.msra.mxu0 %v8464_v43  ;;  %v7254_v12 = vld [vmem:[%s10690_s10 + $0x50] sm:$0xff] }
0x19de   :  { %v3204_v6 = vmul.f32 %v9002_v9, %v10429_v3  ;;  %v8480_v63 = vpack.c.bf16 %v7255_v57, %v7254_v12 }
0x19df   :  { %v3213_v47 = vmul.f32 %v3211_v37, %v3205_v29  ;;  %8103 = vmatprep.mubr.msk.f32.mxu0 %vm137_vm0, %v10518_v46 }
0x19e0   :  { %v9004_v25 = vpop.eup %9003  ;;  %8104 = vmatmul.mubr.msk.f32.gmra.mrb[56].mxu0 %vm137_vm0, %v10522_v23  ;;  %v3212_v30 = vmul.f32 %v3211_v37, %v3204_v6 }
0x19e1   :  { %v9006_v52 = vpop.eup %9005  ;;  %v10529_v56 = vadd.f32 %v3219_v42, %v3213_v47  ;;  %v3207_v40 = vmul.f32 %v9004_v25, %v10437_v8  ;;  %v6306_v8 = vrot.slane %v10332_v50, %v4461_v5  ;;  %v6441_v5 = vld [vmem:[#allocation8 + $0x28] sm:$0xff] }
0x19e2   :  { %v10532_v60 = vadd.f32 %v3219_v42, %v3212_v30  ;;  %v3206_v49 = vmul.f32 %v9006_v52, %v10448_v54  ;;  %v8468_v59 = vpack.c.bf16 %v6441_v5, %v6440_v53 }
0x19e3   :  { %v3215_v41 = vmul.f32 %v3211_v37, %v3207_v40 }
0x19e4   :  { %8114 = vmatprep.mubr.msk.f32.mxu0 %vm137_vm0, %v10532_v60  ;;  %v3214_v3 = vmul.f32 %v3211_v37, %v3206_v49  ;;  %8469 = vmatprep.subr.bf16.mxu1 %v8468_v59 }
0x19e5   :  { %8115 = vmatmul.mubr.msk.f32.vlgmr.msra.gmra.mrb[54].mxu0 %vm137_vm0, %v10529_v56  ;;  %v10539_v48 = vadd.f32 %v3219_v42, %v3215_v41  ;;  %8471 = vmatpush3.bf16.msra.mxu1 %v8468_v59 }
0x19e6   :  { %v10541_v7 = vadd.f32 %v3219_v42, %v3214_v3 }
0x19e8   :  { %8117 = vmatprep.mubr.msk.f32.mxu0 %vm137_vm0, %v10541_v7 }
0x19e9   :  { %8118 = vmatmul.mubr.msk.f32.gmra.mrb[56].mxu0 %vm137_vm0, %v10539_v48 }
0x1a43   :  { %v8091_v54 = vpop.f32.mrb[70].mxu1 }
0x1a44   :  { %v6386_v27 = vadd.f32 %v8091_v54, %v6306_v8  ;;  %v6380_v38 = vpop.f32.mrb[71].mxu1 }
0x1a45   :  { %v6381_v55 = vadd.f32 %v6380_v38, %v6306_v8 }
0x1a46   :  { %v10551_v31 = vadd.f32 %v6386_v27, %v10368_v45  ;;  %v8472_v45 = vpack.c.bf16 %v6443_v39, %v6442_v16 }
0x1a47   :  { %v10554_v21 = vadd.f32 %v6381_v55, %v10364_v58  ;;  %v7252_v58 = vld [vmem:[%s10690_s10 + $0x40] sm:$0xff] }
0x1a48   :  { %v6394_v22 = vsel %vm137_vm0, %v10551_v31, 0.0  ;;  %8473 = vmatprep.subr.bf16.mxu1 %v8472_v45  ;;  %v8476_v26 = vpack.c.bf16 %v7253_v62, %v7252_v58 }
0x1a49   :  { %6395 = vadd.xlane.f32.xlu0 %v6394_v22  ;;  %v6391_v34 = vsel %vm137_vm0, %v10554_v21, 0.0  ;;  %8475 = vmatpush3.bf16.msra.mxu1 %v8472_v45 }
0x1a4a   :  { %6392 = vadd.xlane.f32.xlu1 %v6391_v34  ;;  %8477 = vmatprep.subr.bf16.mxu0 %v8476_v26 }
0x1a4b   :  { %8479 = vmatpush3.bf16.msra.mxu0 %v8476_v26 }
0x1a4c   :  { %8481 = vmatprep.subr.bf16.mxu0 %v8480_v63 }
0x1a4f   :  { %8483 = vmatpush3.bf16.msra.mxu0 %v8480_v63 }
0x1a50   :  { %8485 = vmatprep.subr.bf16.mxu0 %v8484_v11 }
0x1a53   :  { %8487 = vmatpush3.bf16.msra.mxu0 %v8484_v11 }
0x1ab8   :  { %v8116_v35 = vpop.f32.mrb[54].mxu0 }
0x1ab9   :  { %v6652_v18 = vadd.f32 %v8116_v35, %v6650_v0  ;;  %v6628_v28 = vpop.f32.mrb[55].mxu0 }
0x1aba   :  { %v6651_v43 = vadd.f32 %v6650_v0, %v6628_v28 }
0x1abb   :  { %v7269_v2 = vmul.f32 -1.442695, %v6652_v18 }
0x1abc   :  { %v7268_v1 = vmul.f32 -1.442695, %v6651_v43  ;;  %v8119_v13 = vpop.f32.mrb[56].mxu0 }
0x1abd   :  { %9007 = vpow2.f32 %v7269_v2  ;;  %v6654_v37 = vadd.f32 %v8119_v13, %v6650_v0  ;;  %v6638_v61 = vpop.f32.mrb[57].mxu0 }
0x1abe   :  { %9009 = vpow2.f32 %v7268_v1  ;;  %v6653_v44 = vadd.f32 %v6650_v0, %v6638_v61 }
0x1abf   :  { %v7271_v9 = vmul.f32 -1.442695, %v6654_v37 }
0x1ac0   :  { %v7270_v29 = vmul.f32 -1.442695, %v6653_v44 }
0x1ac1   :  { %9011 = vpow2.f32 %v7271_v9 }
0x1ac2   :  { %9013 = vpow2.f32 %v7270_v29 }
0x1ac7   :  { %v9008_v42 = vpop.eup %9007 }
0x1ac8   :  { %v9010_v6 = vpop.eup %9009  ;;  %v6668_v47 = vadd.f32 1.0, %v9008_v42 }
0x1ac9   :  { %v6667_v15 = vadd.f32 1.0, %v9010_v6 }
0x1aca   :  { %9015 = vrcp.f32 %v6668_v47 }
0x1acb   :  { %v9012_v25 = vpop.eup %9011  ;;  %9017 = vrcp.f32 %v6667_v15 }
0x1acc   :  { %v9014_v30 = vpop.eup %9013  ;;  %v6670_v52 = vadd.f32 1.0, %v9012_v25 }
0x1acd   :  { %v6669_v40 = vadd.f32 1.0, %v9014_v30 }
0x1ace   :  { %9019 = vrcp.f32 %v6670_v52 }
0x1acf   :  { %9021 = vrcp.f32 %v6669_v40 }
0x1ad4   :  { %v9016_v49 = vpop.eup %9015 }
0x1ad5   :  { %v9018_v41 = vpop.eup %9017  ;;  %v6684_v3 = vsub.f32 1.0, %v9016_v49  ;;  %v6680_v34 = vmul.f32 %v9016_v49, %v10529_v56  ;;  %v7259_v56 = vld [vmem:[%s10690_s10 + $0x78] sm:$0xff] }
0x1ad6   :  { %v6683_v8 = vsub.f32 1.0, %v9018_v41  ;;  %v6679_v38 = vmul.f32 %v9018_v41, %v10532_v60  ;;  %v6396_v28 = vpop.xlane.xlu0 %6395 }
0x1ad7   :  { %v6688_v54 = vmul.f32 %v6684_v3, %v10504_v10  ;;  %v6393_v43 = vpop.xlane.xlu1 %6392  ;;  %v6398_v1 = vmul.f32 0.03125, %v6396_v28 }
0x1ad8   :  { %v9020_v27 = vpop.eup %9019  ;;  %v6687_v55 = vmul.f32 %v6683_v8, %v10502_v4  ;;  %v6397_v61 = vmul.f32 0.03125, %v6393_v43 }
0x1ad9   :  { %v9022_v22 = vpop.eup %9021  ;;  %v6686_v53 = vsub.f32 1.0, %v9020_v27  ;;  %v6692_v16 = vadd.f32 %v6688_v54, %v6680_v34  ;;  %v6682_v60 = vmul.f32 %v9020_v27, %v10539_v48  ;;  %v6400_v6 = vsub.f32 %v10551_v31, %v6398_v1 }
0x1ada   :  { %v6691_v5 = vadd.f32 %v6687_v55, %v6679_v38  ;;  %v6685_v59 = vsub.f32 1.0, %v9022_v22  ;;  %v6681_v45 = vmul.f32 %v9022_v22, %v10541_v7  ;;  %v6399_v32 = vsub.f32 %v10554_v21, %v6397_v61 }
0x1adb   :  { %v6690_v39 = vmul.f32 %v6686_v53, %v10522_v23  ;;  %v7258_v23 = vld [vmem:[%s10690_s10 + $0x70] sm:$0xff]  ;;  %v6402_v49 = vmul.f32 %v6400_v6, %v6400_v6  ;;  %s9209_s10 = smov [#allocation10]  }
0x1adc   :  { %8128 = vmatprep.mubr.msk.f32.mxu1 %vm137_vm0, %v6691_v5  ;;  %v6689_v10 = vmul.f32 %v6685_v59, %v10518_v46  ;;  %v8488_v7 = vpack.c.bf16 %v7259_v56, %v7258_v23  ;;  %v6698_v46 = vrot.slane %v10482_v19, %v9408_v51  ;;  %v6803_v19 = vrot.slane %v10332_v50, %v5992_v14  ;;  %s6984_s1 = sshll.u32 %s9209_s10, 4  ;;  %s6985_s1 = int_to_ptr.vmem [resolvable:$true] %s6984_s1 }
0x1add   :  { %8129 = vmatmul.mubr.msk.f32.vlgmr.msra.gmra.mrb[72].mxu1 %vm137_vm0, %v6692_v16  ;;  %v6694_v58 = vadd.f32 %v6690_v39, %v6682_v60  ;;  %v6401_v31 = vmul.f32 %v6399_v32, %v6399_v32  ;;  %v6406_v3 = vsel %vm137_vm0, %v6402_v49, 0.0  ;;  %s9133_s27 = scalar_lea.vmem %s6985_s1, 256  ;;  %p9138_p5 = scmp.lt.s32.totalorder %s6985_s1, %s6985_s1 }
0x1ade   :  { %v6693_v4 = vadd.f32 %v6689_v10, %v6681_v45  ;;  %8489 = vmatprep.subr.bf16.mxu0 %v8488_v7  ;;  %p9134_p4 = scmp.ne.s32.totalorder %s6985_s1, %s9133_s27  ;;  %p9139_p6 = scmp.lt.s32.totalorder %s9133_s27, %s9133_s27 }
0x1adf   :  { %8491 = vmatpush3.bf16.msra.mxu0 %v8488_v7  ;;  %v6403_v21 = vsel %vm137_vm0, %v6401_v31, 0.0 }
0x1ae0   :  { %8131 = vmatprep.mubr.msk.f32.mxu1 %vm137_vm0, %v6693_v4  ;;  %p9140_p7 = por %p9139_p6, %p9138_p5 }
0x1ae1   :  { %8132 = vmatmul.mubr.msk.f32.gmra.mrb[74].mxu1 %vm137_vm0, %v6694_v58 }
0x1ae2   :  { %p9141_p8 = pnand %p9140_p7, %p9134_p4 }
0x1bb0   :  { %v8130_v48 = vpop.f32.mrb[72].mxu1 }
0x1bb1   :  { %v6783_v62 = vadd.f32 %v8130_v48, %v6698_v46  ;;  %v6777_v12 = vpop.f32.mrb[73].mxu1 }
0x1bb2   :  { %v6778_v26 = vadd.f32 %v6777_v12, %v6698_v46 }
0x1bb3   :  { %v6797_v20 = vmax.f32 %v6783_v62, 0.0 }
0x1bb4   :  { %v6796_v57 = vmax.f32 %v6778_v26, 0.0  ;;  %v8133_v63 = vpop.f32.mrb[74].mxu1 }
0x1bb5   :  { %v6793_v24 = vadd.f32 %v8133_v63, %v6698_v46  ;;  %v6787_v11 = vpop.f32.mrb[75].mxu1  ;;  %v108_v63 = vld [vmem:[#allocation7 + $0x10] sm:$0xf] }
0x1bb6   :  { %v6788_v0 = vadd.f32 %v6787_v11, %v6698_v46  ;;  %8150 = vmatprep.mubr.msk.f32.mxu0 %vm6307_vm8, %v6796_v57 }
0x1bb7   :  { %8151 = vmatmul.mubr.msk.f32.vlgmr.msra.gmra.mrb[58].mxu0 %vm6307_vm8, %v6797_v20  ;;  %v6799_v18 = vmax.f32 %v6793_v24, 0.0  ;;  %v6420_v20 = vrot.slane %v108_v63, %v9363_v33 }
0x1bb8   :  { %v6798_v35 = vmax.f32 %v6788_v0, 0.0 }
0x1bba   :  { %8153 = vmatprep.mubr.msk.f32.mxu0 %vm6307_vm8, %v6798_v35  ;;  %v6426_v35 = vrot.slane %v108_v63, %v9373_v36 }
0x1bbb   :  { %8154 = vmatmul.mubr.msk.f32.gmra.mrb[60].mxu0 %vm6307_vm8, %v6799_v18 }
0x1c8a   :  { %v8152_v2 = vpop.f32.mrb[58].mxu0 }
0x1c8b   :  { %v6888_v13 = vadd.f32 %v8152_v2, %v6803_v19  ;;  %v6882_v37 = vpop.f32.mrb[59].mxu0 }
0x1c8c   :  { %v6883_v44 = vadd.f32 %v6882_v37, %v6803_v19 }
0x1c8d   :  { %v6902_v9 = vadd.f32 %v6888_v13, %v6692_v16 }
0x1c8e   :  { %v6901_v29 = vadd.f32 %v6883_v44, %v6691_v5  ;;  %v8155_v42 = vpop.f32.mrb[60].mxu0 }
0x1c8f   :  { %v6898_v47 = vadd.f32 %v8155_v42, %v6803_v19  ;;  %v6892_v15 = vpop.f32.mrb[61].mxu0  ;;  %v6908_v25 = vsel %vm137_vm0, %v6902_v9, 0.0 }
0x1c90   :  { %v6893_v50 = vadd.f32 %v6892_v15, %v6803_v19  ;;  %6909 = vadd.xlane.f32.xlu0 %v6908_v25  ;;  %v6905_v14 = vsel %vm137_vm0, %v6901_v29, 0.0 }
0x1c91   :  { %v6904_v30 = vadd.f32 %v6898_v47, %v6694_v58  ;;  %6906 = vadd.xlane.f32.xlu1 %v6905_v14 }
0x1c92   :  { %v6903_v52 = vadd.f32 %v6893_v50, %v6693_v4 }
0x1c93   :  { %v6914_v40 = vsel %vm137_vm0, %v6904_v30, 0.0 }
0x1c94   :  { %6915 = vadd.xlane.f32.xlu0 %v6914_v40  ;;  %v6911_v41 = vsel %vm137_vm0, %v6903_v52, 0.0 }
0x1c95   :  { %6912 = vadd.xlane.f32.xlu1 %v6911_v41 }
0x1c98   :  { %6407 = vadd.xlane.f32.xlu0 %v6406_v3 }
0x1c99   :  { %6404 = vadd.xlane.f32.xlu1 %v6403_v21 }
0x1d1d   :  { %v6910_v8 = vpop.xlane.xlu0 %6909 }
0x1d1e   :  { %v6918_v54 = vmul.f32 0.03125, %v6910_v8  ;;  %v6907_v27 = vpop.xlane.xlu1 %6906 }
0x1d1f   :  { %v6917_v38 = vmul.f32 0.03125, %v6907_v27 }
0x1d20   :  { %v10616_v55 = vsub.f32 %v6902_v9, %v6918_v54 }
0x1d21   :  { %v10618_v22 = vsub.f32 %v6901_v29, %v6917_v38  ;;  %v6916_v34 = vpop.xlane.xlu0 %6915 }
0x1d22   :  { %v6920_v53 = vmul.f32 0.03125, %v6916_v34  ;;  %v6913_v5 = vpop.xlane.xlu1 %6912  ;;  %v6926_v59 = vmul.f32 %v10616_v55, %v10616_v55 }
0x1d23   :  { %v6919_v16 = vmul.f32 0.03125, %v6913_v5  ;;  %v6925_v39 = vmul.f32 %v10618_v22, %v10618_v22 }
0x1d24   :  { %v10624_v45 = vsub.f32 %v6904_v30, %v6920_v53  ;;  %v6932_v10 = vsel %vm137_vm0, %v6926_v59, 0.0 }
0x1d25   :  { %v10627_v60 = vsub.f32 %v6903_v52, %v6919_v16  ;;  %6933 = vadd.xlane.f32.xlu0 %v6932_v10  ;;  %v6408_v4 = vpop.xlane.xlu0 %6407  ;;  %v6929_v58 = vsel %vm137_vm0, %v6925_v39, 0.0 }
0x1d26   :  { %v6410_v23 = vmul.f32 0.03125, %v6408_v4  ;;  %6930 = vadd.xlane.f32.xlu1 %v6929_v58  ;;  %v6405_v56 = vpop.xlane.xlu1 %6404  ;;  %v6928_v7 = vmul.f32 %v10624_v45, %v10624_v45 }
0x1d27   :  { %v6409_v46 = vmul.f32 0.03125, %v6405_v56  ;;  %v6927_v48 = vmul.f32 %v10627_v60, %v10627_v60 }
0x1d28   :  { %v6412_v62 = vadd.f32 1e-05, %v6410_v23  ;;  %v6938_v12 = vsel %vm137_vm0, %v6928_v7, 0.0 }
0x1d29   :  { %v6411_v26 = vadd.f32 1e-05, %v6409_v46  ;;  %6939 = vadd.xlane.f32.xlu0 %v6938_v12  ;;  %v6935_v57 = vsel %vm137_vm0, %v6927_v48, 0.0 }
0x1d2a   :  { %9023 = vrsqrt.f32 %v6412_v62  ;;  %6936 = vadd.xlane.f32.xlu1 %v6935_v57 }
0x1d2b   :  { %9025 = vrsqrt.f32 %v6411_v26 }
0x1d34   :  { %v9024_v24 = vpop.eup %9023 }
0x1d35   :  { %v9026_v11 = vpop.eup %9025  ;;  %v6416_v0 = vmul.f32 %v9024_v24, %v6400_v6 }
0x1d36   :  { %v6415_v18 = vmul.f32 %v9026_v11, %v6399_v32 }
0x1d37   :  { %v6422_v19 = vmul.f32 %v6420_v20, %v6416_v0 }
0x1d38   :  { %v6421_v28 = vmul.f32 %v6420_v20, %v6415_v18 }
0x1d39   :  { %v6428_v43 = vadd.f32 %v6426_v35, %v6422_v19 }
0x1d3a   :  { %v6427_v2 = vadd.f32 %v6426_v35, %v6421_v28 }
0x1d3b   :  { %6974 = vst.msk [vmem:[#allocation10 + $0x8] sm:$0xff] %vm137_vm0, %v6428_v43 }
0x1d3c   :  { %6973 = vst.msk [vmem:[#allocation10] sm:$0xff] %vm137_vm0, %v6427_v2 }
0x1d3d   :  { %9144 = shalt.err (!%p9141_p8)
}
0x1d3e   :  { %s9145_s19 = scalar_lea.hbm %s10691_s11, 256 }
0x1d3f   :  { %p9146_p9 = scmp.ne.s32.totalorder %s10691_s11, %s9145_s19  ;;  %p9149_p10 = scmp.lt.u32.totalorder %s9145_s19, %s10691_s11 }
0x1d41   :  { %p9151_p11 = pnand %p9149_p10, %p9146_p9 }
0x1d43   :  { %9154 = shalt.err (!%p9151_p11)
}
0x1d44   :  { %6990 = dma.vmem_to_hbm [thread:$0]  %s6985_s1, 256, %s10691_s11, [#allocation4], %s9191_s4, %s9191_s4, %s9192_s22   ;;  %v6960_v15 = vrot.slane %v108_v63, %v9408_v51  ;;  %v6968_v14 = vrot.slane %v108_v63, %v9450_v17 }
0x1d45   :  { %s9210_s11 = smov [#allocation11]  }
0x1d46   :  { %s6996_s16 = sshll.u32 %s9210_s11, 4  ;;  %s6997_s16 = int_to_ptr.vmem [resolvable:$true] %s6996_s16 }
0x1d47   :  { %s9155_s0 = scalar_lea.vmem %s6997_s16, 512  ;;  %p9160_p13 = scmp.lt.s32.totalorder %s6997_s16, %s6997_s16 }
0x1d48   :  { %p9156_p12 = scmp.ne.s32.totalorder %s6997_s16, %s9155_s0  ;;  %p9161_p0 = scmp.lt.s32.totalorder %s9155_s0, %s9155_s0 }
0x1d4a   :  { %p9162_p1 = por %p9161_p0, %p9160_p13 }
0x1d4c   :  { %p9163_p2 = pnand %p9162_p1, %p9156_p12 }
0x1db2   :  { %v6934_v33 = vpop.xlane.xlu0 %6933 }
0x1db3   :  { %v6942_v36 = vmul.f32 0.03125, %v6934_v33  ;;  %v6931_v1 = vpop.xlane.xlu1 %6930 }
0x1db4   :  { %v6941_v13 = vmul.f32 0.03125, %v6931_v1 }
0x1db5   :  { %v6946_v37 = vadd.f32 1e-05, %v6942_v36 }
0x1db6   :  { %v6945_v61 = vadd.f32 1e-05, %v6941_v13  ;;  %v6940_v44 = vpop.xlane.xlu0 %6939 }
0x1db7   :  { %9027 = vrsqrt.f32 %v6946_v37  ;;  %v6944_v9 = vmul.f32 0.03125, %v6940_v44  ;;  %v6937_v29 = vpop.xlane.xlu1 %6936 }
0x1db8   :  { %9029 = vrsqrt.f32 %v6945_v61  ;;  %v6943_v42 = vmul.f32 0.03125, %v6937_v29 }
0x1db9   :  { %v6948_v6 = vadd.f32 1e-05, %v6944_v9 }
0x1dba   :  { %v6947_v47 = vadd.f32 1e-05, %v6943_v42 }
0x1dbb   :  { %9031 = vrsqrt.f32 %v6948_v6 }
0x1dbc   :  { %9033 = vrsqrt.f32 %v6947_v47 }
0x1dc1   :  { %v9028_v25 = vpop.eup %9027 }
0x1dc2   :  { %v9030_v32 = vpop.eup %9029  ;;  %v6954_v50 = vmul.f32 %v9028_v25, %v10616_v55 }
0x1dc3   :  { %v6953_v30 = vmul.f32 %v9030_v32, %v10618_v22 }
0x1dc4   :  { %v6962_v52 = vmul.f32 %v6960_v15, %v6954_v50 }
0x1dc5   :  { %v9032_v40 = vpop.eup %9031  ;;  %v6961_v49 = vmul.f32 %v6960_v15, %v6953_v30 }
0x1dc6   :  { %v9034_v41 = vpop.eup %9033  ;;  %v6956_v31 = vmul.f32 %v9032_v40, %v10624_v45  ;;  %v6970_v3 = vadd.f32 %v6968_v14, %v6962_v52 }
0x1dc7   :  { %v6955_v21 = vmul.f32 %v9034_v41, %v10627_v60  ;;  %v6969_v8 = vadd.f32 %v6968_v14, %v6961_v49 }
0x1dc8   :  { %v6964_v54 = vmul.f32 %v6960_v15, %v6956_v31  ;;  %6976 = vst.msk [vmem:[#allocation11 + $0x8] sm:$0xff] %vm137_vm0, %v6970_v3 }
0x1dc9   :  { %v6963_v51 = vmul.f32 %v6960_v15, %v6955_v21  ;;  %6975 = vst.msk [vmem:[#allocation11] sm:$0xff] %vm137_vm0, %v6969_v8 }
0x1dca   :  { %v6972_v17 = vadd.f32 %v6968_v14, %v6964_v54 }
0x1dcb   :  { %v6971_v27 = vadd.f32 %v6968_v14, %v6963_v51 }
0x1dcc   :  { %6978 = vst.msk [vmem:[#allocation11 + $0x18] sm:$0xff] %vm137_vm0, %v6972_v17 }
0x1dcd   :  { %6977 = vst.msk [vmem:[#allocation11 + $0x10] sm:$0xff] %vm137_vm0, %v6971_v27 }
0x1dce   :  { %9166 = shalt.err (!%p9163_p2)
}
0x1dcf   :  { %s9167_s25 = scalar_lea.hbm %s10692_s12, 512 }
0x1dd0   :  { %p9168_p3 = scmp.ne.s32.totalorder %s10692_s12, %s9167_s25  ;;  %p9171_p4 = scmp.lt.u32.totalorder %s9167_s25, %s10692_s12 }
0x1dd2   :  { %p9173_p5 = pnand %p9171_p4, %p9168_p3 }
0x1dd4   :  { %9176 = shalt.err (!%p9173_p5)
}
0x1dd5   :  { %7002 = dma.vmem_to_hbm [thread:$0]  %s6997_s16, 512, %s10692_s12, [#allocation12], %s9191_s4, %s9191_s4, %s9192_s22  }
0x1dd6   :  { %9183 = dma.done.wait [#allocation4], 256  }
0x1dd7   :  { %9184 = vsyncadd [#allocation4], 4294967040 }
0x1dd8   :  { %9185 = dma.done.wait [#allocation12], 512  }
0x1dd9   :  { %9186 = vsyncadd [#allocation12], 4294966784 }
0x1dda   :  { %7009 = vsyncpa [#allocation3], 1 }
0x1ddb   :  { %7010 = vsyncpa [#allocation6], 1 }
0x1ddc   :  { %7011 = vsyncpa [#allocation9], 1 }
0x1ddd   :  { %7012 = vsyncpa [#allocation4], 1 }
0x1dde   :  { %7013 = vsyncpa [#allocation12], 1 }

</bundles_post_ra>
